<compile_context>
chip_gen: v7x
topology: tpu7x:2x2x1
jax: 0.10.0
libtpu: 0.0.40
codegen_flags: <defaults>
</compile_context>

<pallas_src>
import functools
import math

import jax
import jax.numpy as jnp
import numpy as np
from jax.experimental import pallas as pl
from jax.experimental.pallas import tpu as pltpu


def _attn_kernel(x_ref, wqkv_ref, bqkv_ref, wo_ref, bo_ref, out_ref,
                 q_s, k_s, v_s, *, num_heads, dim, tq):
    # x_ref:    (1, C, S)  f32   (full image for this batch element, resident across qt)
    # wqkv_ref: (3C, C)    bf16  fused [Wq; Wk; Wv]   bqkv_ref: (3C, 1) f32
    # wo_ref:   (C, C)     bf16                       bo_ref:   (C, 1)  f32
    # out_ref:  (1, C, TQ) f32   (query tile of the output, lane-dense)
    # q_s: (S, C) bf16 scratch (Q^T, pre-scaled)   k_s/v_s: (C, S) bf16 scratch
    C = dim
    hd = C // num_heads
    S = x_ref.shape[-1]
    qt = pl.program_id(1)

    # ---- once per batch image: fused QKV projection into VMEM scratch ----------
    @pl.when(qt == 0)
    def _():
        x_bf = x_ref[0].astype(jnp.bfloat16)                                   # (C, S)
        qkv = jnp.dot(wqkv_ref[...], x_bf,
                      preferred_element_type=jnp.float32) + bqkv_ref[...]      # (3C, S) f32
        # NOTE: the torch module scales scores by sqrt(dim) (full dim), not sqrt(head_dim).
        scale = 1.0 / math.sqrt(float(dim))
        q_s[...] = (jnp.transpose(qkv[0:C, :]) * scale).astype(jnp.bfloat16)   # (S, C)
        k_s[...] = qkv[C:2 * C, :].astype(jnp.bfloat16)                        # (C, S)
        v_s[...] = qkv[2 * C:3 * C, :].astype(jnp.bfloat16)                    # (C, S)

    start = pl.multiple_of(qt * tq, tq)

    # ---- attention for this query tile ------------------------------------------
    acc = jnp.zeros((C, tq), jnp.float32)
    for h in range(num_heads):
        d0 = h * hd
        qh = q_s[pl.ds(start, tq), pl.ds(d0, hd)]        # (tq, hd) bf16, pre-scaled
        kh = k_s[d0:d0 + hd, :]                          # (hd, S)  bf16
        vh = v_s[d0:d0 + hd, :]                          # (hd, S)  bf16

        # scores: a[q, t] = sum_d qh[q, d] * kh[d, t]
        a = jnp.dot(qh, kh, preferred_element_type=jnp.float32)                # (tq, S) f32

        # numerically stable softmax over keys (lane axis); dropout = identity
        a_max = jnp.max(a, axis=-1, keepdims=True)
        p = jnp.exp(a - a_max)
        p = p * pl.reciprocal(jnp.sum(p, axis=-1, keepdims=True), approx=True)

        # o[d, q] = sum_t vh[d, t] * p[q, t]  (contract the shared last axis)
        oh = jax.lax.dot_general(vh, p.astype(jnp.bfloat16),
                                 (((1,), (1,)), ((), ())),
                                 preferred_element_type=jnp.float32)           # (hd, tq)

        # fused per-head output projection: out += Wo[:, head] @ o_head
        acc = acc + jnp.dot(wo_ref[:, d0:d0 + hd], oh.astype(jnp.bfloat16),
                            preferred_element_type=jnp.float32)                # (C, tq)

    out = acc + bo_ref[...]                                # output-conv bias
    out_ref[0] = x_ref[0, :, pl.ds(start, tq)] + out       # residual connection


def self_attention_2d(x_nchw, params, *, num_heads):
    """x_nchw: (B, C, H, W) float32.  params: (C, C) weights stored (out, in) and (C,) biases."""
    B, C, H, W = x_nchw.shape
    assert C % num_heads == 0
    S = H * W

    # NCHW -> (B, C, S): a free reshape, no transpose (channel-major kernel layout).
    x_bcs = x_nchw.reshape(B, C, S)

    # Fuse q/k/v into one (3C, C) projection; pre-cast matmul weights to bf16.
    wqkv = jnp.concatenate([params["wq"], params["wk"], params["wv"]],
                           axis=0).astype(jnp.bfloat16)                        # (3C, C)
    bqkv = jnp.concatenate([params["bq"], params["bk"], params["bv"]],
                           axis=0).reshape(3 * C, 1).astype(jnp.float32)       # (3C, 1)
    wo = params["wo"].astype(jnp.bfloat16)                                     # (C, C)
    bo = params["bo"].reshape(C, 1).astype(jnp.float32)                        # (C, 1)

    # Query tile: keep the output lane dim a multiple of 128 whenever possible.
    TQ = 128 if S % 128 == 0 else S
    NQ = S // TQ

    kernel = functools.partial(_attn_kernel, num_heads=num_heads, dim=C, tq=TQ)

    out_bcs = pl.pallas_call(
        kernel,
        out_shape=jax.ShapeDtypeStruct((B, C, S), jnp.float32),
        grid_spec=pltpu.PrefetchScalarGridSpec(
            num_scalar_prefetch=0,
            grid=(B, NQ),
            in_specs=[
                pl.BlockSpec((1, C, S), lambda b, qt: (b, 0, 0)),   # x (resident across qt)
                pl.BlockSpec((3 * C, C), lambda b, qt: (0, 0)),     # fused Wqkv
                pl.BlockSpec((3 * C, 1), lambda b, qt: (0, 0)),     # fused bqkv
                pl.BlockSpec((C, C), lambda b, qt: (0, 0)),         # Wo
                pl.BlockSpec((C, 1), lambda b, qt: (0, 0)),         # bo
            ],
            out_specs=pl.BlockSpec((1, C, TQ), lambda b, qt: (b, 0, qt)),
            scratch_shapes=[
                pltpu.VMEM((S, C), jnp.bfloat16),   # Q^T (pre-scaled), per batch image
                pltpu.VMEM((C, S), jnp.bfloat16),   # K
                pltpu.VMEM((C, S), jnp.bfloat16),   # V
            ],
        ),
        compiler_params=pltpu.CompilerParams(
            # Batch axis shards across megacore TCs; the query-tile axis carries the
            # per-image QKV scratch, so it must remain "arbitrary".
            dimension_semantics=("parallel", "arbitrary"),
            vmem_limit_bytes=48 * 1024 * 1024,
        ),
    )(x_bcs, wqkv, bqkv, wo, bo)

    # (B, C, S) -> NCHW: again a free reshape.
    return out_bcs.reshape(B, C, H, W)


def _reference(x_nchw, params, *, num_heads):
    """Pure-JAX f32 reference mirroring the PyTorch forward (dropout = identity)."""
    B, C, H, W = x_nchw.shape
    S = H * W
    dim = C
    hd = C // num_heads

    def conv1x1(x, w, b):  # x: (B,C,H,W), w: (C,C) stored (out, in)
        x_bsc = jnp.transpose(x.reshape(B, C, S), (0, 2, 1))
        y = x_bsc @ w.T + b
        return jnp.transpose(y, (0, 2, 1)).reshape(B, C, H, W)

    q = conv1x1(x_nchw, params["wq"], params["bq"])
    k = conv1x1(x_nchw, params["wk"], params["bk"])
    v = conv1x1(x_nchw, params["wv"], params["bv"])

    def split(t):  # b (g c) h w -> (b g) c (h w)
        return t.reshape(B, num_heads, hd, S).reshape(B * num_heads, hd, S)

    qs, ks, vs = split(q), split(k), split(v)
    a = jnp.einsum("bcs,bct->bst", qs, ks) / math.sqrt(dim)
    a = jax.nn.softmax(a, axis=-1)
    o = jnp.einsum("bst,bct->bcs", a, vs)
    o = o.reshape(B, num_heads, hd, S).reshape(B, C, H, W)
    o = conv1x1(o, params["wo"], params["bo"])
    return x_nchw + o


def init_params(key, dim):
    ks = jax.random.split(key, 8)
    bound = 1.0 / math.sqrt(dim)  # conv2d 1x1 fan_in = dim

    def u(k, shape):
        return jax.random.uniform(k, shape, jnp.float32, -bound, bound)

    return {
        "wq": u(ks[0], (dim, dim)), "bq": u(ks[1], (dim,)),
        "wk": u(ks[2], (dim, dim)), "bk": u(ks[3], (dim,)),
        "wv": u(ks[4], (dim, dim)), "bv": u(ks[5], (dim,)),
        "wo": u(ks[6], (dim, dim)), "bo": u(ks[7], (dim,)),
    }


if __name__ == "__main__":
    key = jax.random.PRNGKey(0)
    k_x, k_p = jax.random.split(key)

    B, dim, H, W = 2, 32, 16, 16   # S = 256, num_heads = 8 -> head_dim = 4
    num_heads = 8

    x = jax.random.normal(k_x, (B, dim, H, W), jnp.float32)
    params = init_params(k_p, dim)

    out = self_attention_2d(x, params, num_heads=num_heads)
    out = jax.block_until_ready(out)

    ref = _reference(x, params, num_heads=num_heads)
    # bf16 matmul operands (f32 accumulation) vs f32 reference -> loose tolerance.
    np.testing.assert_allclose(np.asarray(out), np.asarray(ref), rtol=3e-2, atol=3e-2)

    print("KERNEL_OK")
</pallas_src>

<mosaic_0001>
module attributes {stable_mosaic.version = 11 : i64} {
  func.func @_attn_kernel(%arg0: i32, %arg1: i32, %arg2: memref<1x32x256xf32, #tpu.memory_space<vmem>>, %arg3: memref<96x32xbf16, #tpu.memory_space<vmem>>, %arg4: memref<96x1xf32, #tpu.memory_space<vmem>>, %arg5: memref<32x32xbf16, #tpu.memory_space<vmem>>, %arg6: memref<32x1xf32, #tpu.memory_space<vmem>>, %arg7: memref<1x32x128xf32, #tpu.memory_space<vmem>>, %arg8: memref<256x32xbf16, #tpu.memory_space<vmem>>, %arg9: memref<32x256xbf16, #tpu.memory_space<vmem>>, %arg10: memref<32x256xbf16, #tpu.memory_space<vmem>>) attributes {dimension_semantics = [#tpu.dimension_semantics<parallel>, #tpu.dimension_semantics<arbitrary>], iteration_bounds = array<i64: 2, 2>, scalar_prefetch = 0 : i64, scratch_operands = 3 : i64, tpu.core_type = #tpu.core_type<tc>, window_params = [{transform_indices = @transform_0, window_bounds = array<i64: 1, 32, 256>}, {pipeline_mode = #tpu.pipeline_mode<synchronous>, transform_indices = @transform_1, window_bounds = array<i64: 96, 32>}, {pipeline_mode = #tpu.pipeline_mode<synchronous>, transform_indices = @transform_2, window_bounds = array<i64: 96, 1>}, {pipeline_mode = #tpu.pipeline_mode<synchronous>, transform_indices = @transform_3, window_bounds = array<i64: 32, 32>}, {pipeline_mode = #tpu.pipeline_mode<synchronous>, transform_indices = @transform_4, window_bounds = array<i64: 32, 1>}, {transform_indices = @transform_5, window_bounds = array<i64: 1, 32, 128>}]} {
    %c0_i32 = arith.constant 0 : i32
    %0 = arith.cmpi eq, %arg1, %c0_i32 : i32
    %1 = arith.extui %0 : i1 to i32
    %c0_i32_0 = arith.constant 0 : i32
    %2 = arith.cmpi ne, %1, %c0_i32_0 : i32
    scf.if %2 {
      %c0_96 = arith.constant 0 : index
      %c0_97 = arith.constant 0 : index
      %c0_98 = arith.constant 0 : index
      %184 = vector.load %arg2[%c0_96, %c0_97, %c0_98] : memref<1x32x256xf32, #tpu.memory_space<vmem>>, vector<1x32x256xf32>
      %185 = vector.shape_cast %184 : vector<1x32x256xf32> to vector<32x256xf32>
      %186 = arith.truncf %185 : vector<32x256xf32> to vector<32x256xbf16>
      %c0_99 = arith.constant 0 : index
      %c0_100 = arith.constant 0 : index
      %187 = vector.load %arg3[%c0_99, %c0_100] : memref<96x32xbf16, #tpu.memory_space<vmem>>, vector<96x32xbf16>
      %cst_101 = arith.constant dense<0.000000e+00> : vector<96x256xf32>
      %188 = tpu.matmul %187, %186, %cst_101 {dimension_numbers = #tpu.dot_dimension_numbers<[1], [0], [0], [1], [0, 0, 1, 1], [], []>} : vector<96x32xbf16>, vector<32x256xbf16>, vector<96x256xf32> -> vector<96x256xf32>
      %c0_102 = arith.constant 0 : index
      %c0_103 = arith.constant 0 : index
      %189 = vector.load %arg4[%c0_102, %c0_103] : memref<96x1xf32, #tpu.memory_space<vmem>>, vector<96x1xf32>
      %190 = vector.broadcast %189 : vector<96x1xf32> to vector<96x256xf32>
      %191 = arith.addf %188, %190 : vector<96x256xf32>
      %192 = vector.extract_strided_slice %191 {offsets = [0, 0], sizes = [32, 256], strides = [1, 1]} : vector<96x256xf32> to vector<32x256xf32>
      %193 = tpu.transpose %192, [1, 0] : vector<32x256xf32> -> vector<256x32xf32>
      %cst_104 = arith.constant 0.176776692 : f32
      %194 = vector.broadcast %cst_104 : f32 to vector<256x32xf32>
      %195 = arith.mulf %193, %194 : vector<256x32xf32>
      %196 = arith.truncf %195 : vector<256x32xf32> to vector<256x32xbf16>
      %c0_105 = arith.constant 0 : index
      %c0_106 = arith.constant 0 : index
      %197 = vector.load %arg8[%c0_105, %c0_106] : memref<256x32xbf16, #tpu.memory_space<vmem>>, vector<256x32xbf16>
      tpu.vector_store %arg8[%c0_105, %c0_106], %196 {strides = array<i32>} : memref<256x32xbf16, #tpu.memory_space<vmem>>, vector<256x32xbf16>,
      %198 = vector.extract_strided_slice %191 {offsets = [32, 0], sizes = [32, 256], strides = [1, 1]} : vector<96x256xf32> to vector<32x256xf32>
      %199 = arith.truncf %198 : vector<32x256xf32> to vector<32x256xbf16>
      %c0_107 = arith.constant 0 : index
      %c0_108 = arith.constant 0 : index
      %200 = vector.load %arg9[%c0_107, %c0_108] : memref<32x256xbf16, #tpu.memory_space<vmem>>, vector<32x256xbf16>
      tpu.vector_store %arg9[%c0_107, %c0_108], %199 {strides = array<i32>} : memref<32x256xbf16, #tpu.memory_space<vmem>>, vector<32x256xbf16>,
      %201 = vector.extract_strided_slice %191 {offsets = [64, 0], sizes = [32, 256], strides = [1, 1]} : vector<96x256xf32> to vector<32x256xf32>
      %202 = arith.truncf %201 : vector<32x256xf32> to vector<32x256xbf16>
      %c0_109 = arith.constant 0 : index
      %c0_110 = arith.constant 0 : index
      %203 = vector.load %arg10[%c0_109, %c0_110] : memref<32x256xbf16, #tpu.memory_space<vmem>>, vector<32x256xbf16>
      tpu.vector_store %arg10[%c0_109, %c0_110], %202 {strides = array<i32>} : memref<32x256xbf16, #tpu.memory_space<vmem>>, vector<32x256xbf16>,
    } else {
    }
    %c128_i32 = arith.constant 128 : i32
    %3 = arith.muli %arg1, %c128_i32 : i32
    %4 = tpu.assume_multiple %3, 128 : i32
    %cst = arith.constant 0.000000e+00 : f32
    %5 = vector.broadcast %cst : f32 to vector<32x128xf32>
    %6 = arith.index_cast %4 : i32 to index
    %c0 = arith.constant 0 : index
    %7 = vector.load %arg8[%6, %c0] : memref<256x32xbf16, #tpu.memory_space<vmem>>, vector<128x4xbf16>
    %c0_1 = arith.constant 0 : index
    %c0_2 = arith.constant 0 : index
    %8 = vector.load %arg9[%c0_1, %c0_2] : memref<32x256xbf16, #tpu.memory_space<vmem>>, vector<4x256xbf16>
    %c0_3 = arith.constant 0 : index
    %c0_4 = arith.constant 0 : index
    %9 = vector.load %arg10[%c0_3, %c0_4] : memref<32x256xbf16, #tpu.memory_space<vmem>>, vector<4x256xbf16>
    %cst_5 = arith.constant dense<0.000000e+00> : vector<128x256xf32>
    %10 = tpu.matmul %7, %8, %cst_5 {dimension_numbers = #tpu.dot_dimension_numbers<[1], [0], [0], [1], [0, 0, 1, 1], [], []>} : vector<128x4xbf16>, vector<4x256xbf16>, vector<128x256xf32> -> vector<128x256xf32>
    %cst_6 = arith.constant dense<0xFF800000> : vector<128xf32>
    %11 = vector.multi_reduction <maximumf>, %10, %cst_6 [1] : vector<128x256xf32> to vector<128xf32>
    %12 = vector.shape_cast %11 : vector<128xf32> to vector<128x1xf32>
    %13 = vector.broadcast %12 : vector<128x1xf32> to vector<128x256xf32>
    %14 = arith.subf %10, %13 : vector<128x256xf32>
    %15 = math.exp %14 : vector<128x256xf32>
    %cst_7 = arith.constant dense<0.000000e+00> : vector<128xf32>
    %16 = vector.multi_reduction <add>, %15, %cst_7 [1] : vector<128x256xf32> to vector<128xf32>
    %17 = vector.shape_cast %16 : vector<128xf32> to vector<128x1xf32>
    %18 = tpu.reciprocal %17 {approx = true} : vector<128x1xf32> -> vector<128x1xf32>
    %19 = vector.broadcast %18 : vector<128x1xf32> to vector<128x256xf32>
    %20 = arith.mulf %15, %19 : vector<128x256xf32>
    %21 = arith.truncf %20 : vector<128x256xf32> to vector<128x256xbf16>
    %cst_8 = arith.constant dense<0.000000e+00> : vector<4x128xf32>
    %22 = tpu.matmul %9, %21, %cst_8 {dimension_numbers = #tpu.dot_dimension_numbers<[1], [1], [0], [0], [0, 0, 1, 0], [], []>} : vector<4x256xbf16>, vector<128x256xbf16>, vector<4x128xf32> -> vector<4x128xf32>
    %c0_9 = arith.constant 0 : index
    %c0_10 = arith.constant 0 : index
    %23 = vector.load %arg5[%c0_9, %c0_10] : memref<32x32xbf16, #tpu.memory_space<vmem>>, vector<32x4xbf16>
    %24 = arith.truncf %22 : vector<4x128xf32> to vector<4x128xbf16>
    %cst_11 = arith.constant dense<0.000000e+00> : vector<32x128xf32>
    %25 = tpu.matmul %23, %24, %cst_11 {dimension_numbers = #tpu.dot_dimension_numbers<[1], [0], [0], [1], [0, 0, 1, 1], [], []>} : vector<32x4xbf16>, vector<4x128xbf16>, vector<32x128xf32> -> vector<32x128xf32>
    %26 = arith.addf %5, %25 : vector<32x128xf32>
    %27 = arith.index_cast %4 : i32 to index
    %c4 = arith.constant 4 : index
    %28 = vector.load %arg8[%27, %c4] : memref<256x32xbf16, #tpu.memory_space<vmem>>, vector<128x4xbf16>
    %c4_12 = arith.constant 4 : index
    %c0_13 = arith.constant 0 : index
    %29 = vector.load %arg9[%c4_12, %c0_13] : memref<32x256xbf16, #tpu.memory_space<vmem>>, vector<4x256xbf16>
    %c4_14 = arith.constant 4 : index
    %c0_15 = arith.constant 0 : index
    %30 = vector.load %arg10[%c4_14, %c0_15] : memref<32x256xbf16, #tpu.memory_space<vmem>>, vector<4x256xbf16>
    %cst_16 = arith.constant dense<0.000000e+00> : vector<128x256xf32>
    %31 = tpu.matmul %28, %29, %cst_16 {dimension_numbers = #tpu.dot_dimension_numbers<[1], [0], [0], [1], [0, 0, 1, 1], [], []>} : vector<128x4xbf16>, vector<4x256xbf16>, vector<128x256xf32> -> vector<128x256xf32>
    %cst_17 = arith.constant dense<0xFF800000> : vector<128xf32>
    %32 = vector.multi_reduction <maximumf>, %31, %cst_17 [1] : vector<128x256xf32> to vector<128xf32>
    %33 = vector.shape_cast %32 : vector<128xf32> to vector<128x1xf32>
    %34 = vector.broadcast %33 : vector<128x1xf32> to vector<128x256xf32>
    %35 = arith.subf %31, %34 : vector<128x256xf32>
    %36 = math.exp %35 : vector<128x256xf32>
    %cst_18 = arith.constant dense<0.000000e+00> : vector<128xf32>
    %37 = vector.multi_reduction <add>, %36, %cst_18 [1] : vector<128x256xf32> to vector<128xf32>
    %38 = vector.shape_cast %37 : vector<128xf32> to vector<128x1xf32>
    %39 = tpu.reciprocal %38 {approx = true} : vector<128x1xf32> -> vector<128x1xf32>
    %40 = vector.broadcast %39 : vector<128x1xf32> to vector<128x256xf32>
    %41 = arith.mulf %36, %40 : vector<128x256xf32>
    %42 = arith.truncf %41 : vector<128x256xf32> to vector<128x256xbf16>
    %cst_19 = arith.constant dense<0.000000e+00> : vector<4x128xf32>
    %43 = tpu.matmul %30, %42, %cst_19 {dimension_numbers = #tpu.dot_dimension_numbers<[1], [1], [0], [0], [0, 0, 1, 0], [], []>} : vector<4x256xbf16>, vector<128x256xbf16>, vector<4x128xf32> -> vector<4x128xf32>
    %c0_20 = arith.constant 0 : index
    %c4_21 = arith.constant 4 : index
    %44 = vector.load %arg5[%c0_20, %c4_21] : memref<32x32xbf16, #tpu.memory_space<vmem>>, vector<32x4xbf16>
    %45 = arith.truncf %43 : vector<4x128xf32> to vector<4x128xbf16>
    %cst_22 = arith.constant dense<0.000000e+00> : vector<32x128xf32>
    %46 = tpu.matmul %44, %45, %cst_22 {dimension_numbers = #tpu.dot_dimension_numbers<[1], [0], [0], [1], [0, 0, 1, 1], [], []>} : vector<32x4xbf16>, vector<4x128xbf16>, vector<32x128xf32> -> vector<32x128xf32>
    %47 = arith.addf %26, %46 : vector<32x128xf32>
    %48 = arith.index_cast %4 : i32 to index
    %c8 = arith.constant 8 : index
    %49 = vector.load %arg8[%48, %c8] : memref<256x32xbf16, #tpu.memory_space<vmem>>, vector<128x4xbf16>
    %c8_23 = arith.constant 8 : index
    %c0_24 = arith.constant 0 : index
    %50 = vector.load %arg9[%c8_23, %c0_24] : memref<32x256xbf16, #tpu.memory_space<vmem>>, vector<4x256xbf16>
    %c8_25 = arith.constant 8 : index
    %c0_26 = arith.constant 0 : index
    %51 = vector.load %arg10[%c8_25, %c0_26] : memref<32x256xbf16, #tpu.memory_space<vmem>>, vector<4x256xbf16>
    %cst_27 = arith.constant dense<0.000000e+00> : vector<128x256xf32>
    %52 = tpu.matmul %49, %50, %cst_27 {dimension_numbers = #tpu.dot_dimension_numbers<[1], [0], [0], [1], [0, 0, 1, 1], [], []>} : vector<128x4xbf16>, vector<4x256xbf16>, vector<128x256xf32> -> vector<128x256xf32>
    %cst_28 = arith.constant dense<0xFF800000> : vector<128xf32>
    %53 = vector.multi_reduction <maximumf>, %52, %cst_28 [1] : vector<128x256xf32> to vector<128xf32>
    %54 = vector.shape_cast %53 : vector<128xf32> to vector<128x1xf32>
    %55 = vector.broadcast %54 : vector<128x1xf32> to vector<128x256xf32>
    %56 = arith.subf %52, %55 : vector<128x256xf32>
    %57 = math.exp %56 : vector<128x256xf32>
    %cst_29 = arith.constant dense<0.000000e+00> : vector<128xf32>
    %58 = vector.multi_reduction <add>, %57, %cst_29 [1] : vector<128x256xf32> to vector<128xf32>
    %59 = vector.shape_cast %58 : vector<128xf32> to vector<128x1xf32>
    %60 = tpu.reciprocal %59 {approx = true} : vector<128x1xf32> -> vector<128x1xf32>
    %61 = vector.broadcast %60 : vector<128x1xf32> to vector<128x256xf32>
    %62 = arith.mulf %57, %61 : vector<128x256xf32>
    %63 = arith.truncf %62 : vector<128x256xf32> to vector<128x256xbf16>
    %cst_30 = arith.constant dense<0.000000e+00> : vector<4x128xf32>
    %64 = tpu.matmul %51, %63, %cst_30 {dimension_numbers = #tpu.dot_dimension_numbers<[1], [1], [0], [0], [0, 0, 1, 0], [], []>} : vector<4x256xbf16>, vector<128x256xbf16>, vector<4x128xf32> -> vector<4x128xf32>
    %c0_31 = arith.constant 0 : index
    %c8_32 = arith.constant 8 : index
    %65 = vector.load %arg5[%c0_31, %c8_32] : memref<32x32xbf16, #tpu.memory_space<vmem>>, vector<32x4xbf16>
    %66 = arith.truncf %64 : vector<4x128xf32> to vector<4x128xbf16>
    %cst_33 = arith.constant dense<0.000000e+00> : vector<32x128xf32>
    %67 = tpu.matmul %65, %66, %cst_33 {dimension_numbers = #tpu.dot_dimension_numbers<[1], [0], [0], [1], [0, 0, 1, 1], [], []>} : vector<32x4xbf16>, vector<4x128xbf16>, vector<32x128xf32> -> vector<32x128xf32>
    %68 = arith.addf %47, %67 : vector<32x128xf32>
    %69 = arith.index_cast %4 : i32 to index
    %c12 = arith.constant 12 : index
    %70 = vector.load %arg8[%69, %c12] : memref<256x32xbf16, #tpu.memory_space<vmem>>, vector<128x4xbf16>
    %c12_34 = arith.constant 12 : index
    %c0_35 = arith.constant 0 : index
    %71 = vector.load %arg9[%c12_34, %c0_35] : memref<32x256xbf16, #tpu.memory_space<vmem>>, vector<4x256xbf16>
    %c12_36 = arith.constant 12 : index
    %c0_37 = arith.constant 0 : index
    %72 = vector.load %arg10[%c12_36, %c0_37] : memref<32x256xbf16, #tpu.memory_space<vmem>>, vector<4x256xbf16>
    %cst_38 = arith.constant dense<0.000000e+00> : vector<128x256xf32>
    %73 = tpu.matmul %70, %71, %cst_38 {dimension_numbers = #tpu.dot_dimension_numbers<[1], [0], [0], [1], [0, 0, 1, 1], [], []>} : vector<128x4xbf16>, vector<4x256xbf16>, vector<128x256xf32> -> vector<128x256xf32>
    %cst_39 = arith.constant dense<0xFF800000> : vector<128xf32>
    %74 = vector.multi_reduction <maximumf>, %73, %cst_39 [1] : vector<128x256xf32> to vector<128xf32>
    %75 = vector.shape_cast %74 : vector<128xf32> to vector<128x1xf32>
    %76 = vector.broadcast %75 : vector<128x1xf32> to vector<128x256xf32>
    %77 = arith.subf %73, %76 : vector<128x256xf32>
    %78 = math.exp %77 : vector<128x256xf32>
    %cst_40 = arith.constant dense<0.000000e+00> : vector<128xf32>
    %79 = vector.multi_reduction <add>, %78, %cst_40 [1] : vector<128x256xf32> to vector<128xf32>
    %80 = vector.shape_cast %79 : vector<128xf32> to vector<128x1xf32>
    %81 = tpu.reciprocal %80 {approx = true} : vector<128x1xf32> -> vector<128x1xf32>
    %82 = vector.broadcast %81 : vector<128x1xf32> to vector<128x256xf32>
    %83 = arith.mulf %78, %82 : vector<128x256xf32>
    %84 = arith.truncf %83 : vector<128x256xf32> to vector<128x256xbf16>
    %cst_41 = arith.constant dense<0.000000e+00> : vector<4x128xf32>
    %85 = tpu.matmul %72, %84, %cst_41 {dimension_numbers = #tpu.dot_dimension_numbers<[1], [1], [0], [0], [0, 0, 1, 0], [], []>} : vector<4x256xbf16>, vector<128x256xbf16>, vector<4x128xf32> -> vector<4x128xf32>
    %c0_42 = arith.constant 0 : index
    %c12_43 = arith.constant 12 : index
    %86 = vector.load %arg5[%c0_42, %c12_43] : memref<32x32xbf16, #tpu.memory_space<vmem>>, vector<32x4xbf16>
    %87 = arith.truncf %85 : vector<4x128xf32> to vector<4x128xbf16>
    %cst_44 = arith.constant dense<0.000000e+00> : vector<32x128xf32>
    %88 = tpu.matmul %86, %87, %cst_44 {dimension_numbers = #tpu.dot_dimension_numbers<[1], [0], [0], [1], [0, 0, 1, 1], [], []>} : vector<32x4xbf16>, vector<4x128xbf16>, vector<32x128xf32> -> vector<32x128xf32>
    %89 = arith.addf %68, %88 : vector<32x128xf32>
    %90 = arith.index_cast %4 : i32 to index
    %c16 = arith.constant 16 : index
    %91 = vector.load %arg8[%90, %c16] : memref<256x32xbf16, #tpu.memory_space<vmem>>, vector<128x4xbf16>
    %c16_45 = arith.constant 16 : index
    %c0_46 = arith.constant 0 : index
    %92 = vector.load %arg9[%c16_45, %c0_46] : memref<32x256xbf16, #tpu.memory_space<vmem>>, vector<4x256xbf16>
    %c16_47 = arith.constant 16 : index
    %c0_48 = arith.constant 0 : index
    %93 = vector.load %arg10[%c16_47, %c0_48] : memref<32x256xbf16, #tpu.memory_space<vmem>>, vector<4x256xbf16>
    %cst_49 = arith.constant dense<0.000000e+00> : vector<128x256xf32>
    %94 = tpu.matmul %91, %92, %cst_49 {dimension_numbers = #tpu.dot_dimension_numbers<[1], [0], [0], [1], [0, 0, 1, 1], [], []>} : vector<128x4xbf16>, vector<4x256xbf16>, vector<128x256xf32> -> vector<128x256xf32>
    %cst_50 = arith.constant dense<0xFF800000> : vector<128xf32>
    %95 = vector.multi_reduction <maximumf>, %94, %cst_50 [1] : vector<128x256xf32> to vector<128xf32>
    %96 = vector.shape_cast %95 : vector<128xf32> to vector<128x1xf32>
    %97 = vector.broadcast %96 : vector<128x1xf32> to vector<128x256xf32>
    %98 = arith.subf %94, %97 : vector<128x256xf32>
    %99 = math.exp %98 : vector<128x256xf32>
    %cst_51 = arith.constant dense<0.000000e+00> : vector<128xf32>
    %100 = vector.multi_reduction <add>, %99, %cst_51 [1] : vector<128x256xf32> to vector<128xf32>
    %101 = vector.shape_cast %100 : vector<128xf32> to vector<128x1xf32>
    %102 = tpu.reciprocal %101 {approx = true} : vector<128x1xf32> -> vector<128x1xf32>
    %103 = vector.broadcast %102 : vector<128x1xf32> to vector<128x256xf32>
    %104 = arith.mulf %99, %103 : vector<128x256xf32>
    %105 = arith.truncf %104 : vector<128x256xf32> to vector<128x256xbf16>
    %cst_52 = arith.constant dense<0.000000e+00> : vector<4x128xf32>
    %106 = tpu.matmul %93, %105, %cst_52 {dimension_numbers = #tpu.dot_dimension_numbers<[1], [1], [0], [0], [0, 0, 1, 0], [], []>} : vector<4x256xbf16>, vector<128x256xbf16>, vector<4x128xf32> -> vector<4x128xf32>
    %c0_53 = arith.constant 0 : index
    %c16_54 = arith.constant 16 : index
    %107 = vector.load %arg5[%c0_53, %c16_54] : memref<32x32xbf16, #tpu.memory_space<vmem>>, vector<32x4xbf16>
    %108 = arith.truncf %106 : vector<4x128xf32> to vector<4x128xbf16>
    %cst_55 = arith.constant dense<0.000000e+00> : vector<32x128xf32>
    %109 = tpu.matmul %107, %108, %cst_55 {dimension_numbers = #tpu.dot_dimension_numbers<[1], [0], [0], [1], [0, 0, 1, 1], [], []>} : vector<32x4xbf16>, vector<4x128xbf16>, vector<32x128xf32> -> vector<32x128xf32>
    %110 = arith.addf %89, %109 : vector<32x128xf32>
    %111 = arith.index_cast %4 : i32 to index
    %c20 = arith.constant 20 : index
    %112 = vector.load %arg8[%111, %c20] : memref<256x32xbf16, #tpu.memory_space<vmem>>, vector<128x4xbf16>
    %c20_56 = arith.constant 20 : index
    %c0_57 = arith.constant 0 : index
    %113 = vector.load %arg9[%c20_56, %c0_57] : memref<32x256xbf16, #tpu.memory_space<vmem>>, vector<4x256xbf16>
    %c20_58 = arith.constant 20 : index
    %c0_59 = arith.constant 0 : index
    %114 = vector.load %arg10[%c20_58, %c0_59] : memref<32x256xbf16, #tpu.memory_space<vmem>>, vector<4x256xbf16>
    %cst_60 = arith.constant dense<0.000000e+00> : vector<128x256xf32>
    %115 = tpu.matmul %112, %113, %cst_60 {dimension_numbers = #tpu.dot_dimension_numbers<[1], [0], [0], [1], [0, 0, 1, 1], [], []>} : vector<128x4xbf16>, vector<4x256xbf16>, vector<128x256xf32> -> vector<128x256xf32>
    %cst_61 = arith.constant dense<0xFF800000> : vector<128xf32>
    %116 = vector.multi_reduction <maximumf>, %115, %cst_61 [1] : vector<128x256xf32> to vector<128xf32>
    %117 = vector.shape_cast %116 : vector<128xf32> to vector<128x1xf32>
    %118 = vector.broadcast %117 : vector<128x1xf32> to vector<128x256xf32>
    %119 = arith.subf %115, %118 : vector<128x256xf32>
    %120 = math.exp %119 : vector<128x256xf32>
    %cst_62 = arith.constant dense<0.000000e+00> : vector<128xf32>
    %121 = vector.multi_reduction <add>, %120, %cst_62 [1] : vector<128x256xf32> to vector<128xf32>
    %122 = vector.shape_cast %121 : vector<128xf32> to vector<128x1xf32>
    %123 = tpu.reciprocal %122 {approx = true} : vector<128x1xf32> -> vector<128x1xf32>
    %124 = vector.broadcast %123 : vector<128x1xf32> to vector<128x256xf32>
    %125 = arith.mulf %120, %124 : vector<128x256xf32>
    %126 = arith.truncf %125 : vector<128x256xf32> to vector<128x256xbf16>
    %cst_63 = arith.constant dense<0.000000e+00> : vector<4x128xf32>
    %127 = tpu.matmul %114, %126, %cst_63 {dimension_numbers = #tpu.dot_dimension_numbers<[1], [1], [0], [0], [0, 0, 1, 0], [], []>} : vector<4x256xbf16>, vector<128x256xbf16>, vector<4x128xf32> -> vector<4x128xf32>
    %c0_64 = arith.constant 0 : index
    %c20_65 = arith.constant 20 : index
    %128 = vector.load %arg5[%c0_64, %c20_65] : memref<32x32xbf16, #tpu.memory_space<vmem>>, vector<32x4xbf16>
    %129 = arith.truncf %127 : vector<4x128xf32> to vector<4x128xbf16>
    %cst_66 = arith.constant dense<0.000000e+00> : vector<32x128xf32>
    %130 = tpu.matmul %128, %129, %cst_66 {dimension_numbers = #tpu.dot_dimension_numbers<[1], [0], [0], [1], [0, 0, 1, 1], [], []>} : vector<32x4xbf16>, vector<4x128xbf16>, vector<32x128xf32> -> vector<32x128xf32>
    %131 = arith.addf %110, %130 : vector<32x128xf32>
    %132 = arith.index_cast %4 : i32 to index
    %c24 = arith.constant 24 : index
    %133 = vector.load %arg8[%132, %c24] : memref<256x32xbf16, #tpu.memory_space<vmem>>, vector<128x4xbf16>
    %c24_67 = arith.constant 24 : index
    %c0_68 = arith.constant 0 : index
    %134 = vector.load %arg9[%c24_67, %c0_68] : memref<32x256xbf16, #tpu.memory_space<vmem>>, vector<4x256xbf16>
    %c24_69 = arith.constant 24 : index
    %c0_70 = arith.constant 0 : index
    %135 = vector.load %arg10[%c24_69, %c0_70] : memref<32x256xbf16, #tpu.memory_space<vmem>>, vector<4x256xbf16>
    %cst_71 = arith.constant dense<0.000000e+00> : vector<128x256xf32>
    %136 = tpu.matmul %133, %134, %cst_71 {dimension_numbers = #tpu.dot_dimension_numbers<[1], [0], [0], [1], [0, 0, 1, 1], [], []>} : vector<128x4xbf16>, vector<4x256xbf16>, vector<128x256xf32> -> vector<128x256xf32>
    %cst_72 = arith.constant dense<0xFF800000> : vector<128xf32>
    %137 = vector.multi_reduction <maximumf>, %136, %cst_72 [1] : vector<128x256xf32> to vector<128xf32>
    %138 = vector.shape_cast %137 : vector<128xf32> to vector<128x1xf32>
    %139 = vector.broadcast %138 : vector<128x1xf32> to vector<128x256xf32>
    %140 = arith.subf %136, %139 : vector<128x256xf32>
    %141 = math.exp %140 : vector<128x256xf32>
    %cst_73 = arith.constant dense<0.000000e+00> : vector<128xf32>
    %142 = vector.multi_reduction <add>, %141, %cst_73 [1] : vector<128x256xf32> to vector<128xf32>
    %143 = vector.shape_cast %142 : vector<128xf32> to vector<128x1xf32>
    %144 = tpu.reciprocal %143 {approx = true} : vector<128x1xf32> -> vector<128x1xf32>
    %145 = vector.broadcast %144 : vector<128x1xf32> to vector<128x256xf32>
    %146 = arith.mulf %141, %145 : vector<128x256xf32>
    %147 = arith.truncf %146 : vector<128x256xf32> to vector<128x256xbf16>
    %cst_74 = arith.constant dense<0.000000e+00> : vector<4x128xf32>
    %148 = tpu.matmul %135, %147, %cst_74 {dimension_numbers = #tpu.dot_dimension_numbers<[1], [1], [0], [0], [0, 0, 1, 0], [], []>} : vector<4x256xbf16>, vector<128x256xbf16>, vector<4x128xf32> -> vector<4x128xf32>
    %c0_75 = arith.constant 0 : index
    %c24_76 = arith.constant 24 : index
    %149 = vector.load %arg5[%c0_75, %c24_76] : memref<32x32xbf16, #tpu.memory_space<vmem>>, vector<32x4xbf16>
    %150 = arith.truncf %148 : vector<4x128xf32> to vector<4x128xbf16>
    %cst_77 = arith.constant dense<0.000000e+00> : vector<32x128xf32>
    %151 = tpu.matmul %149, %150, %cst_77 {dimension_numbers = #tpu.dot_dimension_numbers<[1], [0], [0], [1], [0, 0, 1, 1], [], []>} : vector<32x4xbf16>, vector<4x128xbf16>, vector<32x128xf32> -> vector<32x128xf32>
    %152 = arith.addf %131, %151 : vector<32x128xf32>
    %153 = arith.index_cast %4 : i32 to index
    %c28 = arith.constant 28 : index
    %154 = vector.load %arg8[%153, %c28] : memref<256x32xbf16, #tpu.memory_space<vmem>>, vector<128x4xbf16>
    %c28_78 = arith.constant 28 : index
    %c0_79 = arith.constant 0 : index
    %155 = vector.load %arg9[%c28_78, %c0_79] : memref<32x256xbf16, #tpu.memory_space<vmem>>, vector<4x256xbf16>
    %c28_80 = arith.constant 28 : index
    %c0_81 = arith.constant 0 : index
    %156 = vector.load %arg10[%c28_80, %c0_81] : memref<32x256xbf16, #tpu.memory_space<vmem>>, vector<4x256xbf16>
    %cst_82 = arith.constant dense<0.000000e+00> : vector<128x256xf32>
    %157 = tpu.matmul %154, %155, %cst_82 {dimension_numbers = #tpu.dot_dimension_numbers<[1], [0], [0], [1], [0, 0, 1, 1], [], []>} : vector<128x4xbf16>, vector<4x256xbf16>, vector<128x256xf32> -> vector<128x256xf32>
    %cst_83 = arith.constant dense<0xFF800000> : vector<128xf32>
    %158 = vector.multi_reduction <maximumf>, %157, %cst_83 [1] : vector<128x256xf32> to vector<128xf32>
    %159 = vector.shape_cast %158 : vector<128xf32> to vector<128x1xf32>
    %160 = vector.broadcast %159 : vector<128x1xf32> to vector<128x256xf32>
    %161 = arith.subf %157, %160 : vector<128x256xf32>
    %162 = math.exp %161 : vector<128x256xf32>
    %cst_84 = arith.constant dense<0.000000e+00> : vector<128xf32>
    %163 = vector.multi_reduction <add>, %162, %cst_84 [1] : vector<128x256xf32> to vector<128xf32>
    %164 = vector.shape_cast %163 : vector<128xf32> to vector<128x1xf32>
    %165 = tpu.reciprocal %164 {approx = true} : vector<128x1xf32> -> vector<128x1xf32>
    %166 = vector.broadcast %165 : vector<128x1xf32> to vector<128x256xf32>
    %167 = arith.mulf %162, %166 : vector<128x256xf32>
    %168 = arith.truncf %167 : vector<128x256xf32> to vector<128x256xbf16>
    %cst_85 = arith.constant dense<0.000000e+00> : vector<4x128xf32>
    %169 = tpu.matmul %156, %168, %cst_85 {dimension_numbers = #tpu.dot_dimension_numbers<[1], [1], [0], [0], [0, 0, 1, 0], [], []>} : vector<4x256xbf16>, vector<128x256xbf16>, vector<4x128xf32> -> vector<4x128xf32>
    %c0_86 = arith.constant 0 : index
    %c28_87 = arith.constant 28 : index
    %170 = vector.load %arg5[%c0_86, %c28_87] : memref<32x32xbf16, #tpu.memory_space<vmem>>, vector<32x4xbf16>
    %171 = arith.truncf %169 : vector<4x128xf32> to vector<4x128xbf16>
    %cst_88 = arith.constant dense<0.000000e+00> : vector<32x128xf32>
    %172 = tpu.matmul %170, %171, %cst_88 {dimension_numbers = #tpu.dot_dimension_numbers<[1], [0], [0], [1], [0, 0, 1, 1], [], []>} : vector<32x4xbf16>, vector<4x128xbf16>, vector<32x128xf32> -> vector<32x128xf32>
    %173 = arith.addf %152, %172 : vector<32x128xf32>
    %c0_89 = arith.constant 0 : index
    %c0_90 = arith.constant 0 : index
    %174 = vector.load %arg6[%c0_89, %c0_90] : memref<32x1xf32, #tpu.memory_space<vmem>>, vector<32x1xf32>
    %175 = vector.broadcast %174 : vector<32x1xf32> to vector<32x128xf32>
    %176 = arith.addf %173, %175 : vector<32x128xf32>
    %c0_91 = arith.constant 0 : index
    %c0_92 = arith.constant 0 : index
    %177 = arith.index_cast %4 : i32 to index
    %178 = vector.load %arg2[%c0_91, %c0_92, %177] : memref<1x32x256xf32, #tpu.memory_space<vmem>>, vector<1x32x128xf32>
    %179 = vector.shape_cast %178 : vector<1x32x128xf32> to vector<32x128xf32>
    %180 = arith.addf %179, %176 : vector<32x128xf32>
    %c0_93 = arith.constant 0 : index
    %c0_94 = arith.constant 0 : index
    %c0_95 = arith.constant 0 : index
    %181 = vector.load %arg7[%c0_93, %c0_94, %c0_95] : memref<1x32x128xf32, #tpu.memory_space<vmem>>, vector<1x32x128xf32>
    %182 = vector.shape_cast %181 : vector<1x32x128xf32> to vector<32x128xf32>
    %183 = vector.shape_cast %180 : vector<32x128xf32> to vector<1x32x128xf32>
    tpu.vector_store %arg7[%c0_93, %c0_94, %c0_95], %183 {strides = array<i32>} : memref<1x32x128xf32, #tpu.memory_space<vmem>>, vector<1x32x128xf32>,
    return
  }
  func.func @transform_0(%arg0: i32, %arg1: i32) -> (i32, i32, i32) {
    %c0_i32 = arith.constant 0 : i32
    %c0_i32_0 = arith.constant 0 : i32
    %c0_i32_1 = arith.constant 0 : i32
    return %arg0, %c0_i32, %c0_i32_0 : i32, i32, i32
  }
  func.func @transform_1(%arg0: i32, %arg1: i32) -> (i32, i32) {
    %c0_i32 = arith.constant 0 : i32
    %c0_i32_0 = arith.constant 0 : i32
    %c0_i32_1 = arith.constant 0 : i32
    return %c0_i32, %c0_i32_0 : i32, i32
  }
  func.func @transform_2(%arg0: i32, %arg1: i32) -> (i32, i32) {
    %c0_i32 = arith.constant 0 : i32
    %c0_i32_0 = arith.constant 0 : i32
    %c0_i32_1 = arith.constant 0 : i32
    return %c0_i32, %c0_i32_0 : i32, i32
  }
  func.func @transform_3(%arg0: i32, %arg1: i32) -> (i32, i32) {
    %c0_i32 = arith.constant 0 : i32
    %c0_i32_0 = arith.constant 0 : i32
    %c0_i32_1 = arith.constant 0 : i32
    return %c0_i32, %c0_i32_0 : i32, i32
  }
  func.func @transform_4(%arg0: i32, %arg1: i32) -> (i32, i32) {
    %c0_i32 = arith.constant 0 : i32
    %c0_i32_0 = arith.constant 0 : i32
    %c0_i32_1 = arith.constant 0 : i32
    return %c0_i32, %c0_i32_0 : i32, i32
  }
  func.func @transform_5(%arg0: i32, %arg1: i32) -> (i32, i32, i32) {
    %c0_i32 = arith.constant 0 : i32
    %c0_i32_0 = arith.constant 0 : i32
    return %arg0, %c0_i32, %arg1 : i32, i32, i32
  }
}

</mosaic_0001>

<bundles_post_ra>
// kernel: tpu_custom_call.1
= control target key start
LH: loop header
LB: loop body
LE: loop exit
PB: predicated region body
PF: predicated region fallthrough
CT: control target
= control target key end

     0   :  { %10 = vsyncpa [#allocation6], 0  ;;  %s9079_s0 = inlined_call_operand.vmem [shape: f32[2,32,256], index: 0, kind: input, shape index: {}]   ;;  %s9080_s1 = inlined_call_operand.vmem [shape: bf16[96,32], index: 1, kind: input, shape index: {}]   ;;  %s9081_s2 = inlined_call_operand.vmem [shape: f32[96,1], index: 2, kind: input, shape index: {}]   ;;  %s9082_s3 = inlined_call_operand.vmem [shape: bf16[32,32], index: 3, kind: input, shape index: {}]   ;;  %s9083_s4 = inlined_call_operand.vmem [shape: f32[32,1], index: 4, kind: input, shape index: {}]   ;;  %s9084_s5 = inlined_call_operand.hbm [shape: f32[2,32,256], index: 5, kind: output, shape index: {}]  }
   0x1   :  { %12 = vsyncpa [#allocation6 + $0x1], 0  ;;  %s6304_s18 = smov 0   ;;  %s6306_s19 = smov 0  }
   0x2   :  { %s6308_s20 = smov 0   ;;  %s6310_s21 = smov 0  }
   0x3   :  { %s6312_s22 = smov 0   ;;  %s6314_s23 = smov 0  }
   0x4   :  { %s6316_s24 = smov 0   ;;  %s6318_s25 = smov 0  }
   0x5 LB: > { %s5039_s26 = sadd.s32 4294967295, %s6259_s25   ;;  %s5040_s27 = sadd.s32 4294967294, %s6259_s25   ;;  %s6259_s25 = sphi %s6318_s25, %s18_s25   ;;  %s6255_s24 = sphi %s6316_s24, %s9336_s24   ;;  %s6251_s23 = sphi %s6314_s23, %s9335_s23   ;;  %s6247_s22 = sphi %s6312_s22, %s9334_s22   ;;  %s6243_s21 = sphi %s6310_s21, %s9333_s21   ;;  %s6239_s20 = sphi %s6308_s20, %s9332_s20   ;;  %s6235_s19 = sphi %s6306_s19, %s9331_s19   ;;  %s6231_s18 = sphi %s6304_s18, %s9330_s18  }
   0x6   : > { %s27_s28 = sadd.s32 1, %s6251_s23  ;;  %s30_s29 = sadd.s32 1, %s6255_s24 }
   0x7   : > { %p28_p0 = scmp.ge.s32.totalorder %s27_s28, 2  ;;  %p159_p1 = scmp.ne.s32.totalorder %s6239_s20, %s6235_s19 }
   0x8   : > { %p160_p2 = scmp.eq.s32.totalorder %s5039_s26, 3  ;;  %p165_p5 = scmp.ne.s32.totalorder %s6235_s19, %s6231_s18 }
   0x9   : > { %s9338_s28 = smov (%p28_p0, %s27_s28), 0  ;;  %s9340_s29 = smov (!%p28_p0, %s30_s29), %s6255_s24 }
   0xa   : > { %s145_s30 = ssub.s32 %s6251_s23, %s9338_s28  ;;  %p6355_p3 = por %p160_p2, %p159_p1 }
   0xb   : > { %p32_p4 = scmp.ge.s32.totalorder %s9340_s29, 2  ;;  %p166_p6 = scmp.eq.s32.totalorder %s5040_s27, 3 }
   0xc   : > { %p5043_p7 = scmp.ge.s32.totalorder %s6259_s25, 1  ;;  %p204_p9 = scmp.lt.s32.totalorder %s6259_s25, 5 }
   0xd   : > { %s9342_s29 = smov (%p32_p4, %s9340_s29), 0  ;;  %p6364_p8 = por %p166_p6, %p165_p5 }
   0xe   : > { %s144_s8 = ssub.s32 %s6255_s24, %s9342_s29  ;;  %s149_s9 = sadd.s32 1, %s6239_s20 }
   0xf   : > { %s146_s10 = sor.u32 %s145_s30, %s144_s8  ;;  %p205_p10 = pnand %p5043_p7, %p204_p9 }
  0x10   : > { %p147_p11 = scmp.eq.s32.totalorder %s146_s10, 0 }
  0x11   : > { %208 = sbr.rel (%p205_p10) target bundleno = 4757 (0x1295), region = 40 }
  0x12   : > { %s6373_s11 = scalar_select %p147_p11, %s6239_s20, %s149_s9  }
  0x18   : > { %s9085_s12 = sand.u32 1, %s6235_s19   ;;  %p232_p12 = scmp.lt.s32.totalorder %s6247_s22, 1 }
  0x19   : > { %s5044_s13 = sshll.u32 %s9085_s12, 5  ;;  %p5047_p13 = scmp.ne.s32.totalorder %s6243_s21, 0 }
  0x1a   : > { %s233_s14 = scalar_select %p232_p12, %s6247_s22, 1 }
  0x1b   : > { %s6385_s27 = scalar_lea.vmem [#allocation5], %s5044_s13  ;;  %241 = sbr.rel (%p5047_p13) target bundleno = 450 (0x1c2), region = 44  ;;  %v6261_v7 = vmov (!%p5047_p13), 0   ;;  %v5357_v13 = vld [vmem:[%s9080_s1] sm:$0xff] (!%p5047_p13)   ;;  %v5358_v14 = vld [vmem:[%s9080_s1 + $0x18] sm:$0xff] (!%p5047_p13)   ;;  %vm368_vm0 = vcmask (!%p5047_p13), 261120  }
  0x1c   : > { %s5158_s15 = sshll.u32 %s233_s14, 6  ;;  %419 = vmatprep.mubr.bf16.mxu0 (!%p5047_p13), %v6261_v7  ;;  %449 = vmatprep.mubr.bf16.mxu1 (!%p5047_p13), %v6261_v7  ;;  %v266_v15 = vld [vmem:[%s9081_s2] sm:$0xff] (!%p5047_p13)  ;;  %v268_v16 = vld [vmem:[%s9081_s2 + $0x10] sm:$0xff] (!%p5047_p13)  ;;  %v267_v17 = vld [vmem:[%s9081_s2 + $0x8] sm:$0xff] (!%p5047_p13) }
  0x1d   : > { %s6383_s26 = scalar_lea.vmem %s9079_s0, %s5158_s15  ;;  %5355 = vset.pattern.permute.xlu0 (!%p5047_p13), %v6261_v7  ;;  %5356 = vset.pattern.permute.xlu1 (!%p5047_p13), %v6261_v7  ;;  %v269_v18 = vld [vmem:[%s9081_s2 + $0x18] sm:$0xff] (!%p5047_p13)  ;;  %v270_v19 = vld [vmem:[%s9081_s2 + $0x20] sm:$0xff] (!%p5047_p13)  ;;  %v5359_v20 = vld [vmem:[%s9080_s1 + $0x8] sm:$0xff] (!%p5047_p13)  }
  0x1e   : > { %v243_v0 = vld [vmem:[%s6383_s26 + $0x8] sm:$0xff] (!%p5047_p13)  ;;  %v245_v1 = vld [vmem:[%s6383_s26 + $0x18] sm:$0xff] (!%p5047_p13)  ;;  %v242_v2 = vld [vmem:[%s6383_s26] sm:$0xff] (!%p5047_p13)  ;;  %280 = vperm.xlu0 (!%p5047_p13), %5355, %v266_v15   ;;  %290 = vperm.xlu1 (!%p5047_p13), %5356, %v268_v16  }
  0x1f   : > { %v251_v3 = vpack.c.bf16 (!%p5047_p13), %v245_v1, %v243_v0  ;;  %v244_v4 = vld [vmem:[%s6383_s26 + $0x10] sm:$0xff] (!%p5047_p13)  ;;  %v247_v5 = vld [vmem:[%s6383_s26 + $0x28] sm:$0xff] (!%p5047_p13)  ;;  %v249_v6 = vld [vmem:[%s6383_s26 + $0x38] sm:$0xff] (!%p5047_p13) }
  0x20   : > { %v250_v8 = vpack.c.bf16 (!%p5047_p13), %v244_v4, %v242_v2  ;;  %v253_v9 = vpack.c.bf16 (!%p5047_p13), %v249_v6, %v247_v5  ;;  %v246_v10 = vld [vmem:[%s6383_s26 + $0x20] sm:$0xff] (!%p5047_p13)  ;;  %v248_v11 = vld [vmem:[%s6383_s26 + $0x30] sm:$0xff] (!%p5047_p13)  ;;  %v271_v22 = vld [vmem:[%s9081_s2 + $0x28] sm:$0xff] (!%p5047_p13) }
  0x21   : > { %387 = vmatprep.subr.bf16.mxu0 (!%p5047_p13), %v251_v3  ;;  %5231 = vmatprep.subr.bf16.mxu1 (!%p5047_p13), %v251_v3  ;;  %v252_v12 = vpack.c.bf16 (!%p5047_p13), %v248_v11, %v246_v10  ;;  %v5360_v21 = vld [vmem:[%s9080_s1 + $0x20] sm:$0xff] (!%p5047_p13)   ;;  %v272_v23 = vld [vmem:[%s9081_s2 + $0x30] sm:$0xff] (!%p5047_p13)  ;;  %v273_v24 = vld [vmem:[%s9081_s2 + $0x38] sm:$0xff] (!%p5047_p13) }
  0x22   : > { %388 = vmatpush1.bf16.msra.mxu0 %v250_v8  ;;  %5233 = vmatpush1.bf16.msra.mxu1 %v250_v8  ;;  %v274_v25 = vld [vmem:[%s9081_s2 + $0x40] sm:$0xff]  ;;  %v5361_v26 = vld [vmem:[%s9080_s1 + $0x10] sm:$0xff]   ;;  %v5362_v27 = vld [vmem:[%s9080_s1 + $0x28] sm:$0xff]  }
  0x23   : > { %389 = vmatprep.subr.bf16.mxu0 %v253_v9  ;;  %5232 = vmatprep.subr.bf16.mxu1 %v253_v9  ;;  %v275_v28 = vld [vmem:[%s9081_s2 + $0x48] sm:$0xff]  ;;  %v276_v29 = vld [vmem:[%s9081_s2 + $0x50] sm:$0xff]  ;;  %v277_v30 = vld [vmem:[%s9081_s2 + $0x58] sm:$0xff] }
  0x24   : > { %285 = vperm.xlu0 %5355, %v267_v17   ;;  %295 = vperm.xlu1 %5356, %v269_v18  }
  0x26   : > { %390 = vmatpush1.bf16.msra.mxu0 %v252_v12  ;;  %5234 = vmatpush1.bf16.msra.mxu1 %v252_v12 }
  0x28   : > { %300 = vperm.xlu0 %5355, %v270_v19   ;;  %305 = vperm.xlu1 %5356, %v271_v22  }
  0x29   : > { %5054 = vmatmul.mubr.msk.bf16.vlgmr.msra.gmra.mrb[0].mxu0 %vm368_vm0, %v5357_v13  ;;  %5057 = vmatmul.mubr.msk.bf16.vlgmr.msra.gmra.mrb[0].mxu1 %vm368_vm0, %v5358_v14 }
  0x2a   : > { %429 = vmatprep.mubr.bf16.mxu0 %v6261_v7  ;;  %459 = vmatprep.mubr.bf16.mxu1 %v6261_v7 }
  0x2c   : > { %310 = vperm.xlu0 %5355, %v272_v23   ;;  %315 = vperm.xlu1 %5356, %v273_v24  }
  0x30   : > { %320 = vperm.xlu0 %5355, %v274_v25   ;;  %325 = vperm.xlu1 %5356, %v275_v28  }
  0x31   : > { %5055 = vmatmul.mubr.msk.bf16.gmra.mrb[4].mxu0 %vm368_vm0, %v5359_v20  ;;  %5058 = vmatmul.mubr.msk.bf16.gmra.mrb[4].mxu1 %vm368_vm0, %v5360_v21 }
  0x32   : > { %439 = vmatprep.mubr.bf16.mxu0 %v6261_v7  ;;  %469 = vmatprep.mubr.bf16.mxu1 %v6261_v7 }
  0x34   : > { %330 = vperm.xlu0 %5355, %v276_v29   ;;  %335 = vperm.xlu1 %5356, %v277_v30  }
  0x39   : > { %5056 = vmatmul.mubr.msk.bf16.gmra.mrb[8].mxu0 %vm368_vm0, %v5361_v26  ;;  %5059 = vmatmul.mubr.msk.bf16.gmra.mrb[8].mxu1 %vm368_vm0, %v5362_v27 }
  0x9d   : > { %v281_v31 = vpop.permute.xlu0 %280  ;;  %v291_v32 = vpop.permute.xlu1 %290 }
  0xa3   : > { %v286_v33 = vpop.permute.xlu0 %285  ;;  %v296_v34 = vpop.permute.xlu1 %295 }
  0xa7   : > { %v6456_v35 = vpop.permute.xlu0 %300  ;;  %v6458_v36 = vpop.permute.xlu1 %305 }
  0xab   : > { %v311_v37 = vpop.permute.xlu0 %310  ;;  %v316_v38 = vpop.permute.xlu1 %315 }
  0xaf   : > { %v321_v57 = vpop.permute.xlu0 %320  ;;  %v326_v58 = vpop.permute.xlu1 %325 }
  0xb3   : > { %v331_v13 = vpop.permute.xlu0 %330  ;;  %v336_v14 = vpop.permute.xlu1 %335 }
  0xfc   : > { %v421_v39 = vpop.f32.mrb[0].mxu0  ;;  %v451_v40 = vpop.f32.mrb[0].mxu1 }
  0xfd   : > { %v422_v41 = vadd.f32 %v421_v39, %v281_v31  ;;  %v452_v42 = vadd.f32 %v451_v40, %v311_v37  ;;  %v423_v43 = vpop.f32.mrb[1].mxu0  ;;  %v453_v44 = vpop.f32.mrb[1].mxu1 }
  0xfe   : > { %v424_v45 = vadd.f32 %v423_v43, %v281_v31  ;;  %v425_v46 = vpop.f32.mrb[2].mxu0  ;;  %v455_v47 = vpop.f32.mrb[2].mxu1  ;;  %v454_v51 = vadd.f32 %v453_v44, %v311_v37 }
  0xff   : > { %v456_v48 = vadd.f32 %v455_v47, %v316_v38  ;;  %v427_v49 = vpop.f32.mrb[3].mxu0  ;;  %v457_v50 = vpop.f32.mrb[3].mxu1  ;;  %480 = vxpose.xlu0.b32.start [1/4] (short) %v422_v41, 128  ;;  %v426_v53 = vadd.f32 %v425_v46, %v286_v33 }
 0x100   : > { %v458_v52 = vadd.f32 %v457_v50, %v316_v38  ;;  %512 = vxpose.xlu1.b32.start [1/4] (short) %v424_v45, 128  ;;  %v428_v55 = vadd.f32 %v427_v49, %v286_v33 }
 0x101   : > { %v610_v54 = vpack.c.bf16 %v456_v48, %v452_v42 }
 0x102   : > { %v611_v56 = vpack.c.bf16 %v458_v52, %v454_v51 }
 0x103   : > { %614 = vst [vmem:[#allocation3 + $0x10] sm:$0xff] %v610_v54  ;;  %481 = vxpose.xlu0.b32.cont [2/4] (short) %v426_v53, 128 }
 0x104   : > { %615 = vst [vmem:[#allocation3 + $0x18] sm:$0xff] %v611_v56  ;;  %v431_v59 = vpop.f32.mrb[4].mxu0  ;;  %v461_v60 = vpop.f32.mrb[4].mxu1  ;;  %513 = vxpose.xlu1.b32.cont [2/4] (short) %v428_v55, 128 }
 0x105   : > { %v432_v61 = vadd.f32 %v431_v59, %v291_v32  ;;  %v433_v62 = vpop.f32.mrb[5].mxu0  ;;  %v463_v63 = vpop.f32.mrb[5].mxu1  ;;  %v462_v3 = vadd.f32 %v461_v60, %v321_v57 }
 0x106   : > { %v434_v0 = vadd.f32 %v433_v62, %v291_v32  ;;  %v435_v1 = vpop.f32.mrb[6].mxu0  ;;  %v465_v2 = vpop.f32.mrb[6].mxu1  ;;  %v464_v7 = vadd.f32 %v463_v63, %v321_v57 }
 0x107   : > { %v466_v4 = vadd.f32 %v465_v2, %v326_v58  ;;  %v437_v5 = vpop.f32.mrb[7].mxu0  ;;  %v467_v6 = vpop.f32.mrb[7].mxu1  ;;  %482 = vxpose.xlu0.b32.cont [3/4] (short) %v432_v61, 128  ;;  %v436_v9 = vadd.f32 %v435_v1, %v296_v34 }
 0x108   : > { %v468_v8 = vadd.f32 %v467_v6, %v326_v58  ;;  %514 = vxpose.xlu1.b32.cont [3/4] (short) %v434_v0, 128  ;;  %v438_v11 = vadd.f32 %v437_v5, %v296_v34 }
 0x109   : > { %v616_v10 = vpack.c.bf16 %v466_v4, %v462_v3 }
 0x10a   : > { %v617_v12 = vpack.c.bf16 %v468_v8, %v464_v7 }
 0x10b   : > { %620 = vst [vmem:[#allocation4] sm:$0xff] %v616_v10  ;;  %483 = vxpose.xlu0.b32.end [4/4] (short) %v436_v9, 128 }
 0x10c   : > { %621 = vst [vmem:[#allocation4 + $0x8] sm:$0xff] %v617_v12  ;;  %v441_v15 = vpop.f32.mrb[8].mxu0  ;;  %v471_v16 = vpop.f32.mrb[8].mxu1  ;;  %515 = vxpose.xlu1.b32.end [4/4] (short) %v438_v11, 128 }
 0x10d   : > { %v443_v17 = vpop.f32.mrb[9].mxu0  ;;  %v473_v18 = vpop.f32.mrb[9].mxu1  ;;  %v442_v21 = vadd.f32 %v441_v15, %v6456_v35  ;;  %v472_v22 = vadd.f32 %v471_v16, %v331_v13 }
 0x10e   : > { %v445_v19 = vpop.f32.mrb[10].mxu0  ;;  %v475_v20 = vpop.f32.mrb[10].mxu1  ;;  %v444_v27 = vadd.f32 %v443_v17, %v6456_v35  ;;  %v474_v28 = vadd.f32 %v473_v18, %v331_v13 }
 0x10f   : > { %v446_v23 = vadd.f32 %v445_v19, %v6458_v36  ;;  %v476_v24 = vadd.f32 %v475_v20, %v336_v14  ;;  %v447_v25 = vpop.f32.mrb[11].mxu0  ;;  %v477_v26 = vpop.f32.mrb[11].mxu1 }
 0x110   : > { %v448_v29 = vadd.f32 %v447_v25, %v6458_v36  ;;  %v478_v30 = vadd.f32 %v477_v26, %v336_v14 }
 0x111   : > { %v608_v31 = vpack.c.bf16 %v446_v23, %v442_v21  ;;  %v618_v32 = vpack.c.bf16 %v476_v24, %v472_v22 }
 0x112   : > { %v609_v33 = vpack.c.bf16 %v448_v29, %v444_v27  ;;  %v619_v34 = vpack.c.bf16 %v478_v30, %v474_v28 }
 0x113   : > { %612 = vst [vmem:[#allocation3] sm:$0xff] %v608_v31  ;;  %622 = vst [vmem:[#allocation4 + $0x10] sm:$0xff] %v618_v32 }
 0x114   : > { %613 = vst [vmem:[#allocation3 + $0x8] sm:$0xff] %v609_v33  ;;  %623 = vst [vmem:[#allocation4 + $0x18] sm:$0xff] %v619_v34 }
 0x17f   : > { %v496_v37 = vpop.trf.xlu0 }
 0x180   : > { %v528_v38 = vpop.trf.xlu1  ;;  %v544_v40 = vmul.f32 0.17677669, %v496_v37 }
 0x181   : > { %v560_v43 = vmul.f32 0.17677669, %v528_v38 }
 0x183   : > { %v497_v39 = vpop.trf.xlu0 }
 0x184   : > { %v545_v41 = vmul.f32 0.17677669, %v497_v39  ;;  %v529_v42 = vpop.trf.xlu1 }
 0x185   : > { %v561_v35 = vmul.f32 0.17677669, %v529_v42 }
 0x186   : > { %v576_v44 = vpack.c.bf16 %v545_v41, %v544_v40 }
 0x187   : > { %v584_v45 = vpack.c.bf16 %v561_v35, %v560_v43  ;;  %v498_v36 = vpop.trf.xlu0 }
 0x188   : > { %592 = vst.msk [vmem:[#allocation2] sm:$0xff] %vm368_vm0, %v576_v44  ;;  %v530_v46 = vpop.trf.xlu1  ;;  %v546_v48 = vmul.f32 0.17677669, %v498_v36 }
 0x189   : > { %600 = vst.msk [vmem:[#allocation2 + $0x40] sm:$0xff] %vm368_vm0, %v584_v45  ;;  %v562_v51 = vmul.f32 0.17677669, %v530_v46 }
 0x18b   : > { %v499_v47 = vpop.trf.xlu0 }
 0x18c   : > { %v547_v49 = vmul.f32 0.17677669, %v499_v47  ;;  %v531_v50 = vpop.trf.xlu1 }
 0x18d   : > { %v563_v52 = vmul.f32 0.17677669, %v531_v50 }
 0x18e   : > { %v577_v53 = vpack.c.bf16 %v547_v49, %v546_v48 }
 0x18f   : > { %v585_v54 = vpack.c.bf16 %v563_v52, %v562_v51  ;;  %v500_v55 = vpop.trf.xlu0 }
 0x190   : > { %593 = vst.msk [vmem:[#allocation2 + $0x8] sm:$0xff] %vm368_vm0, %v577_v53  ;;  %v532_v56 = vpop.trf.xlu1  ;;  %v548_v58 = vmul.f32 0.17677669, %v500_v55 }
 0x191   : > { %601 = vst.msk [vmem:[#allocation2 + $0x48] sm:$0xff] %vm368_vm0, %v585_v54  ;;  %v564_v61 = vmul.f32 0.17677669, %v532_v56 }
 0x193   : > { %v501_v57 = vpop.trf.xlu0 }
 0x194   : > { %v549_v59 = vmul.f32 0.17677669, %v501_v57  ;;  %v533_v60 = vpop.trf.xlu1 }
 0x195   : > { %v565_v62 = vmul.f32 0.17677669, %v533_v60 }
 0x196   : > { %v578_v63 = vpack.c.bf16 %v549_v59, %v548_v58 }
 0x197   : > { %v586_v0 = vpack.c.bf16 %v565_v62, %v564_v61  ;;  %v502_v1 = vpop.trf.xlu0 }
 0x198   : > { %594 = vst.msk [vmem:[#allocation2 + $0x10] sm:$0xff] %vm368_vm0, %v578_v63  ;;  %v534_v2 = vpop.trf.xlu1  ;;  %v550_v4 = vmul.f32 0.17677669, %v502_v1 }
 0x199   : > { %602 = vst.msk [vmem:[#allocation2 + $0x50] sm:$0xff] %vm368_vm0, %v586_v0  ;;  %v566_v7 = vmul.f32 0.17677669, %v534_v2 }
 0x19b   : > { %v503_v3 = vpop.trf.xlu0 }
 0x19c   : > { %v551_v5 = vmul.f32 0.17677669, %v503_v3  ;;  %v535_v6 = vpop.trf.xlu1 }
 0x19d   : > { %v567_v8 = vmul.f32 0.17677669, %v535_v6 }
 0x19e   : > { %v579_v9 = vpack.c.bf16 %v551_v5, %v550_v4 }
 0x19f   : > { %v587_v10 = vpack.c.bf16 %v567_v8, %v566_v7  ;;  %v504_v11 = vpop.trf.xlu0 }
 0x1a0   : > { %595 = vst.msk [vmem:[#allocation2 + $0x18] sm:$0xff] %vm368_vm0, %v579_v9  ;;  %v536_v12 = vpop.trf.xlu1  ;;  %v552_v14 = vmul.f32 0.17677669, %v504_v11 }
 0x1a1   : > { %603 = vst.msk [vmem:[#allocation2 + $0x58] sm:$0xff] %vm368_vm0, %v587_v10  ;;  %v568_v17 = vmul.f32 0.17677669, %v536_v12 }
 0x1a3   : > { %v505_v13 = vpop.trf.xlu0 }
 0x1a4   : > { %v553_v15 = vmul.f32 0.17677669, %v505_v13  ;;  %v537_v16 = vpop.trf.xlu1 }
 0x1a5   : > { %v569_v18 = vmul.f32 0.17677669, %v537_v16 }
 0x1a6   : > { %v580_v19 = vpack.c.bf16 %v553_v15, %v552_v14 }
 0x1a7   : > { %v588_v20 = vpack.c.bf16 %v569_v18, %v568_v17  ;;  %v506_v21 = vpop.trf.xlu0 }
 0x1a8   : > { %596 = vst.msk [vmem:[#allocation2 + $0x20] sm:$0xff] %vm368_vm0, %v580_v19  ;;  %v538_v22 = vpop.trf.xlu1  ;;  %v554_v24 = vmul.f32 0.17677669, %v506_v21 }
 0x1a9   : > { %604 = vst.msk [vmem:[#allocation2 + $0x60] sm:$0xff] %vm368_vm0, %v588_v20  ;;  %v570_v27 = vmul.f32 0.17677669, %v538_v22 }
 0x1ab   : > { %v507_v23 = vpop.trf.xlu0 }
 0x1ac   : > { %v555_v25 = vmul.f32 0.17677669, %v507_v23  ;;  %v539_v26 = vpop.trf.xlu1 }
 0x1ad   : > { %v571_v28 = vmul.f32 0.17677669, %v539_v26 }
 0x1ae   : > { %v581_v29 = vpack.c.bf16 %v555_v25, %v554_v24 }
 0x1af   : > { %v589_v30 = vpack.c.bf16 %v571_v28, %v570_v27  ;;  %v508_v31 = vpop.trf.xlu0 }
 0x1b0   : > { %597 = vst.msk [vmem:[#allocation2 + $0x28] sm:$0xff] %vm368_vm0, %v581_v29  ;;  %v540_v32 = vpop.trf.xlu1  ;;  %v556_v34 = vmul.f32 0.17677669, %v508_v31 }
 0x1b1   : > { %605 = vst.msk [vmem:[#allocation2 + $0x68] sm:$0xff] %vm368_vm0, %v589_v30  ;;  %v572_v39 = vmul.f32 0.17677669, %v540_v32 }
 0x1b3   : > { %v509_v33 = vpop.trf.xlu0 }
 0x1b4   : > { %v557_v37 = vmul.f32 0.17677669, %v509_v33  ;;  %v541_v38 = vpop.trf.xlu1 }
 0x1b5   : > { %v573_v40 = vmul.f32 0.17677669, %v541_v38 }
 0x1b6   : > { %v582_v41 = vpack.c.bf16 %v557_v37, %v556_v34 }
 0x1b7   : > { %v590_v42 = vpack.c.bf16 %v573_v40, %v572_v39  ;;  %v510_v43 = vpop.trf.xlu0 }
 0x1b8   : > { %598 = vst.msk [vmem:[#allocation2 + $0x30] sm:$0xff] %vm368_vm0, %v582_v41  ;;  %v542_v35 = vpop.trf.xlu1  ;;  %v558_v45 = vmul.f32 0.17677669, %v510_v43 }
 0x1b9   : > { %606 = vst.msk [vmem:[#allocation2 + $0x70] sm:$0xff] %vm368_vm0, %v590_v42  ;;  %v574_v47 = vmul.f32 0.17677669, %v542_v35 }
 0x1bb   : > { %v511_v44 = vpop.trf.xlu0 }
 0x1bc   : > { %v559_v36 = vmul.f32 0.17677669, %v511_v44  ;;  %v543_v46 = vpop.trf.xlu1 }
 0x1bd   : > { %v575_v48 = vmul.f32 0.17677669, %v543_v46 }
 0x1be   : > { %v583_v49 = vpack.c.bf16 %v559_v36, %v558_v45 }
 0x1bf   : > { %v591_v50 = vpack.c.bf16 %v575_v48, %v574_v47 }
 0x1c0   : > { %599 = vst.msk [vmem:[#allocation2 + $0x38] sm:$0xff] %vm368_vm0, %v583_v49 }
 0x1c1   : > { %607 = vst.msk [vmem:[#allocation2 + $0x78] sm:$0xff] %vm368_vm0, %v591_v50 }
 0x1c2 PF: > { %v638_v51 = vld [vmem:[#allocation3 + $0x8] sm:$0x3]  ;;  %vm666_vm1 = vcmask 1041408   ;;  %v637_v52 = vld [vmem:[#allocation3] sm:$0x3]  ;;  %v9086_v54 = vmov 0  }
 0x1c3   : > { %5062 = vmatprep.subr.msk.bf16.mxu1 %vm666_vm1, %v638_v51  ;;  %v668_v53 = vsel %vm666_vm1, %v637_v52, 0  ;;  %705 = vmatprep.mubr.bf16.mxu1 %v9086_v54  ;;  %s5060_s14 = sshll.u32 %s6243_s21, 7  ;;  %vm641_vm2 = vcmask 31744   ;;  %v1088_v55 = vld [vmem:[#allocation3 + $0x8] sm:$0xc]  ;;  %s6263_s30 = smov 124  }
 0x1c4   : > { %674 = vmatpush1.bf16.msra.mxu1 %v668_v53  ;;  %s625_s15 = sshra.s32 %s5060_s14, 4  ;;  %v1118_v56 = vrot.slane %v1088_v55, 2  ;;  %v1087_v57 = vld [vmem:[#allocation3] sm:$0xc]  ;;  %1181 = vmatprep.mubr.bf16.mxu0 %v9086_v54  ;;  %s6264_s8 = smov 120  }
 0x1c5   : > { %s5061_s16 = sshll.u32 %s625_s15, 3  ;;  %v1117_v58 = vrot.slane %v1087_v57, 2  ;;  %5363 = vset.pattern.permute.xlu1 %v9086_v54  ;;  %5364 = vset.pattern.permute.xlu0 %v9086_v54  ;;  %s6265_s15 = smov 116  }
 0x1c6   : > { %5071 = vmatprep.subr.msk.bf16.mxu0 %vm666_vm1, %v1118_v56  ;;  %s6490_s17 = scalar_lea.vmem [#allocation2], %s5061_s16  ;;  %s6266_s16 = smov 112  }
 0x1c7   : > { %v1144_v61 = vsel %vm666_vm1, %v1117_v58, 0  ;;  %s6267_s13 = smov 108   ;;  %s6268_s12 = smov 104  }
 0x1c8   : > { %v629_v59 = vld [vmem:[%s6490_s17] sm:$0xff]  ;;  %v631_v60 = vld [vmem:[%s6490_s17 + $0x10] sm:$0xff]  ;;  %v630_v62 = vld [vmem:[%s6490_s17 + $0x8] sm:$0xff]  ;;  %1150 = vmatpush1.bf16.msra.mxu0 %v1144_v61  ;;  %s6269_s9 = smov 100  }
 0x1c9   : > { %1099 = vrot.lane.b32.xlu0 %v629_v59, %s6263_s30  ;;  %5063 = vmatmul.mubr.msk.bf16.vlgmr.msra.gmra.mrb[0].mxu1 %vm641_vm2, %v629_v59  ;;  %v632_v63 = vld [vmem:[%s6490_s17 + $0x18] sm:$0xff]  ;;  %v633_v0 = vld [vmem:[%s6490_s17 + $0x20] sm:$0xff]  ;;  %v634_v1 = vld [vmem:[%s6490_s17 + $0x28] sm:$0xff] }
 0x1ca   : > { %715 = vmatprep.mubr.bf16.mxu1 %v9086_v54  ;;  %1103 = vrot.lane.b32.xlu1 %v631_v60, %s6263_s30  ;;  %v635_v2 = vld [vmem:[%s6490_s17 + $0x30] sm:$0xff]  ;;  %v636_v3 = vld [vmem:[%s6490_s17 + $0x38] sm:$0xff] }
 0x1cd   : > { %1101 = vrot.lane.b32.xlu0 %v630_v62, %s6263_s30 }
 0x1ce   : > { %1105 = vrot.lane.b32.xlu1 %v632_v63, %s6263_s30 }
 0x1d1   : > { %5064 = vmatmul.mubr.msk.bf16.gmra.mrb[4].mxu1 %vm641_vm2, %v630_v62  ;;  %1107 = vrot.lane.b32.xlu0 %v633_v0, %s6263_s30 }
 0x1d2   : > { %725 = vmatprep.mubr.bf16.mxu1 %v9086_v54  ;;  %1109 = vrot.lane.b32.xlu1 %v634_v1, %s6263_s30 }
 0x1d5   : > { %1111 = vrot.lane.b32.xlu0 %v635_v2, %s6263_s30 }
 0x1d6   : > { %1113 = vrot.lane.b32.xlu1 %v636_v3, %s6263_s30 }
 0x1d9   : > { %5065 = vmatmul.mubr.msk.bf16.gmra.mrb[8].mxu1 %vm641_vm2, %v631_v60 }
 0x1da   : > { %735 = vmatprep.mubr.bf16.mxu1 %v9086_v54 }
 0x1e1   : > { %5066 = vmatmul.mubr.msk.bf16.gmra.mrb[12].mxu1 %vm641_vm2, %v632_v63 }
 0x1e2   : > { %745 = vmatprep.mubr.bf16.mxu1 %v9086_v54 }
 0x1e9   : > { %5067 = vmatmul.mubr.msk.bf16.gmra.mrb[16].mxu1 %vm641_vm2, %v633_v0 }
 0x1ea   : > { %755 = vmatprep.mubr.bf16.mxu1 %v9086_v54 }
 0x1f1   : > { %5068 = vmatmul.mubr.msk.bf16.gmra.mrb[20].mxu1 %vm641_vm2, %v634_v1 }
 0x1f2   : > { %765 = vmatprep.mubr.bf16.mxu1 %v9086_v54 }
 0x1f9   : > { %5069 = vmatmul.mubr.msk.bf16.gmra.mrb[24].mxu1 %vm641_vm2, %v635_v2 }
 0x1fa   : > { %775 = vmatprep.mubr.bf16.mxu1 %v9086_v54 }
 0x201   : > { %5070 = vmatmul.mubr.msk.bf16.gmra.mrb[28].mxu1 %vm641_vm2, %v636_v3 }
 0x23b   : > { %v1100_v4 = vpop.permute.xlu0 %1099 }
 0x23c   : > { %5072 = vmatmul.mubr.msk.bf16.vlgmr.msra.gmra.mrb[0].mxu0 %vm641_vm2, %v1100_v4  ;;  %v1104_v6 = vpop.permute.xlu1 %1103 }
 0x23d   : > { %1191 = vmatprep.mubr.bf16.mxu0 %v9086_v54 }
 0x23f   : > { %v1102_v5 = vpop.permute.xlu0 %1101 }
 0x240   : > { %v1106_v7 = vpop.permute.xlu1 %1105 }
 0x243   : > { %v1108_v8 = vpop.permute.xlu0 %1107 }
 0x244   : > { %5073 = vmatmul.mubr.msk.bf16.gmra.mrb[4].mxu0 %vm641_vm2, %v1102_v5  ;;  %v1110_v9 = vpop.permute.xlu1 %1109 }
 0x245   : > { %1201 = vmatprep.mubr.bf16.mxu0 %v9086_v54 }
 0x247   : > { %v1112_v10 = vpop.permute.xlu0 %1111 }
 0x248   : > { %v1114_v11 = vpop.permute.xlu1 %1113 }
 0x24c   : > { %5074 = vmatmul.mubr.msk.bf16.gmra.mrb[8].mxu0 %vm641_vm2, %v1104_v6 }
 0x24d   : > { %1211 = vmatprep.mubr.bf16.mxu0 %v9086_v54 }
 0x254   : > { %5075 = vmatmul.mubr.msk.bf16.gmra.mrb[12].mxu0 %vm641_vm2, %v1106_v7 }
 0x255   : > { %1221 = vmatprep.mubr.bf16.mxu0 %v9086_v54 }
 0x25c   : > { %5076 = vmatmul.mubr.msk.bf16.gmra.mrb[16].mxu0 %vm641_vm2, %v1108_v8 }
 0x25d   : > { %1231 = vmatprep.mubr.bf16.mxu0 %v9086_v54 }
 0x264   : > { %5077 = vmatmul.mubr.msk.bf16.gmra.mrb[20].mxu0 %vm641_vm2, %v1110_v9 }
 0x265   : > { %1241 = vmatprep.mubr.bf16.mxu0 %v9086_v54 }
 0x26c   : > { %5078 = vmatmul.mubr.msk.bf16.gmra.mrb[24].mxu0 %vm641_vm2, %v1112_v10 }
 0x26d   : > { %1251 = vmatprep.mubr.bf16.mxu0 %v9086_v54 }
 0x274   : > { %5079 = vmatmul.mubr.msk.bf16.gmra.mrb[28].mxu0 %vm641_vm2, %v1114_v11 }
 0x29c   : > { %v6539_v12 = vpop.f32.mrb[0].mxu1 }
 0x29d   : > { %v6541_v13 = vpop.f32.mrb[1].mxu1 }
 0x29e   : > { %v6543_v14 = vpop.f32.mrb[2].mxu1  ;;  %v786_v15 = vmax.f32 %v6539_v12, %v6541_v13 }
 0x29f   : > { %v6547_v16 = vpop.f32.mrb[3].mxu1 }
 0x2a0   : > { %787 = vmax.xlane.f32.xlu0 %v786_v15  ;;  %v789_v17 = vmax.f32 %v6543_v14, %v6547_v16 }
 0x2a2   : > { %790 = vmax.xlane.f32.xlu1 %v789_v17 }
 0x2a4   : > { %v6551_v18 = vpop.f32.mrb[4].mxu1 }
 0x2a5   : > { %v6553_v19 = vpop.f32.mrb[5].mxu1 }
 0x2a6   : > { %v6555_v20 = vpop.f32.mrb[6].mxu1  ;;  %v792_v21 = vmax.f32 %v6551_v18, %v6553_v19 }
 0x2a7   : > { %v6559_v22 = vpop.f32.mrb[7].mxu1 }
 0x2a8   : > { %793 = vmax.xlane.f32.xlu0 %v792_v21  ;;  %v795_v23 = vmax.f32 %v6555_v20, %v6559_v22 }
 0x2ac   : > { %796 = vmax.xlane.f32.xlu0 %v795_v23  ;;  %v6563_v24 = vpop.f32.mrb[8].mxu1 }
 0x2ad   : > { %v6565_v25 = vpop.f32.mrb[9].mxu1 }
 0x2ae   : > { %v6567_v26 = vpop.f32.mrb[10].mxu1  ;;  %v798_v27 = vmax.f32 %v6563_v24, %v6565_v25 }
 0x2af   : > { %v6571_v28 = vpop.f32.mrb[11].mxu1 }
 0x2b0   : > { %799 = vmax.xlane.f32.xlu1 %v798_v27  ;;  %v801_v29 = vmax.f32 %v6567_v26, %v6571_v28 }
 0x2b2   : > { %802 = vmax.xlane.f32.xlu0 %v801_v29 }
 0x2b4   : > { %v6575_v30 = vpop.f32.mrb[12].mxu1 }
 0x2b5   : > { %v6577_v31 = vpop.f32.mrb[13].mxu1 }
 0x2b6   : > { %v6579_v32 = vpop.f32.mrb[14].mxu1  ;;  %v804_v33 = vmax.f32 %v6575_v30, %v6577_v31 }
 0x2b7   : > { %v6583_v34 = vpop.f32.mrb[15].mxu1 }
 0x2b8   : > { %805 = vmax.xlane.f32.xlu1 %v804_v33  ;;  %v807_v37 = vmax.f32 %v6579_v32, %v6583_v34 }
 0x2ba   : > { %808 = vmax.xlane.f32.xlu0 %v807_v37 }
 0x2bc   : > { %v6587_v38 = vpop.f32.mrb[16].mxu1 }
 0x2bd   : > { %v6589_v39 = vpop.f32.mrb[17].mxu1 }
 0x2be   : > { %v6591_v40 = vpop.f32.mrb[18].mxu1  ;;  %v810_v41 = vmax.f32 %v6587_v38, %v6589_v39 }
 0x2bf   : > { %v6595_v42 = vpop.f32.mrb[19].mxu1 }
 0x2c0   : > { %811 = vmax.xlane.f32.xlu1 %v810_v41  ;;  %v813_v43 = vmax.f32 %v6591_v40, %v6595_v42 }
 0x2c2   : > { %814 = vmax.xlane.f32.xlu0 %v813_v43 }
 0x2c4   : > { %v6599_v35 = vpop.f32.mrb[20].mxu1 }
 0x2c5   : > { %v6601_v44 = vpop.f32.mrb[21].mxu1 }
 0x2c6   : > { %v6603_v45 = vpop.f32.mrb[22].mxu1  ;;  %v816_v36 = vmax.f32 %v6599_v35, %v6601_v44 }
 0x2c7   : > { %v6607_v46 = vpop.f32.mrb[23].mxu1 }
 0x2c8   : > { %817 = vmax.xlane.f32.xlu1 %v816_v36  ;;  %v819_v47 = vmax.f32 %v6603_v45, %v6607_v46 }
 0x2ca   : > { %820 = vmax.xlane.f32.xlu0 %v819_v47 }
 0x2cc   : > { %v6611_v48 = vpop.f32.mrb[24].mxu1 }
 0x2cd   : > { %v6613_v49 = vpop.f32.mrb[25].mxu1 }
 0x2ce   : > { %v6615_v50 = vpop.f32.mrb[26].mxu1  ;;  %v822_v51 = vmax.f32 %v6611_v48, %v6613_v49 }
 0x2cf   : > { %v6619_v52 = vpop.f32.mrb[27].mxu1 }
 0x2d0   : > { %823 = vmax.xlane.f32.xlu1 %v822_v51  ;;  %v825_v53 = vmax.f32 %v6615_v50, %v6619_v52 }
 0x2d2   : > { %826 = vmax.xlane.f32.xlu0 %v825_v53 }
 0x2d4   : > { %v6623_v55 = vpop.f32.mrb[28].mxu1 }
 0x2d5   : > { %v6625_v56 = vpop.f32.mrb[29].mxu1 }
 0x2d6   : > { %v6627_v57 = vpop.f32.mrb[30].mxu1  ;;  %v828_v58 = vmax.f32 %v6623_v55, %v6625_v56 }
 0x2d7   : > { %v6631_v59 = vpop.f32.mrb[31].mxu1 }
 0x2d8   : > { %829 = vmax.xlane.f32.xlu1 %v828_v58  ;;  %v831_v60 = vmax.f32 %v6627_v57, %v6631_v59 }
 0x2da   : > { %832 = vmax.xlane.f32.xlu0 %v831_v60 }
 0x30f   : > { %v6635_v61 = vpop.f32.mrb[0].mxu0 }
 0x310   : > { %v6637_v62 = vpop.f32.mrb[1].mxu0 }
 0x311   : > { %v6639_v63 = vpop.f32.mrb[2].mxu0  ;;  %v1262_v0 = vmax.f32 %v6635_v61, %v6637_v62 }
 0x312   : > { %v6643_v1 = vpop.f32.mrb[3].mxu0 }
 0x313   : > { %1263 = vmax.xlane.f32.xlu1 %v1262_v0  ;;  %v1265_v2 = vmax.f32 %v6639_v63, %v6643_v1 }
 0x315   : > { %1266 = vmax.xlane.f32.xlu0 %v1265_v2 }
 0x317   : > { %v6647_v3 = vpop.f32.mrb[4].mxu0 }
 0x318   : > { %v6649_v4 = vpop.f32.mrb[5].mxu0 }
 0x319   : > { %v6651_v5 = vpop.f32.mrb[6].mxu0  ;;  %v1268_v6 = vmax.f32 %v6647_v3, %v6649_v4 }
 0x31a   : > { %v6655_v7 = vpop.f32.mrb[7].mxu0 }
 0x31b   : > { %1269 = vmax.xlane.f32.xlu1 %v1268_v6  ;;  %v1271_v8 = vmax.f32 %v6651_v5, %v6655_v7 }
 0x31d   : > { %1272 = vmax.xlane.f32.xlu0 %v1271_v8 }
 0x31f   : > { %v6659_v9 = vpop.f32.mrb[8].mxu0 }
 0x320   : > { %v6661_v10 = vpop.f32.mrb[9].mxu0 }
 0x321   : > { %v6663_v11 = vpop.f32.mrb[10].mxu0  ;;  %v1274_v15 = vmax.f32 %v6659_v9, %v6661_v10 }
 0x322   : > { %v6667_v17 = vpop.f32.mrb[11].mxu0 }
 0x323   : > { %1275 = vmax.xlane.f32.xlu1 %v1274_v15  ;;  %v1277_v21 = vmax.f32 %v6663_v11, %v6667_v17 }
 0x325   : > { %1278 = vmax.xlane.f32.xlu0 %v1277_v21 }
 0x327   : > { %v6671_v23 = vpop.f32.mrb[12].mxu0 }
 0x328   : > { %v6673_v27 = vpop.f32.mrb[13].mxu0 }
 0x329   : > { %v6675_v29 = vpop.f32.mrb[14].mxu0  ;;  %v1280_v33 = vmax.f32 %v6671_v23, %v6673_v27 }
 0x32a   : > { %v6679_v37 = vpop.f32.mrb[15].mxu0 }
 0x32b   : > { %1281 = vmax.xlane.f32.xlu1 %v1280_v33  ;;  %v1283_v41 = vmax.f32 %v6675_v29, %v6679_v37 }
 0x32d   : > { %v788_v43 = vpop.xlane.xlu0 %787  ;;  %1284 = vmax.xlane.f32.xlu0 %v1283_v41 }
 0x32e   : > { %v834_v36 = vsub.f32 %v6539_v12, %v788_v43  ;;  %v835_v47 = vsub.f32 %v6541_v13, %v788_v43 }
 0x32f   : > { %v791_v51 = vpop.xlane.xlu1 %790  ;;  %v6685_v53 = vpop.f32.mrb[16].mxu0 }
 0x330   : > { %v866_v58 = vmul.f32 1.442695, %v834_v36  ;;  %v868_v60 = vmul.f32 1.442695, %v835_v47  ;;  %v836_v0 = vsub.f32 %v6543_v14, %v791_v51  ;;  %v837_v2 = vsub.f32 %v6547_v16, %v791_v51  ;;  %v6689_v6 = vpop.f32.mrb[17].mxu0 }
 0x331   : > { %v6691_v8 = vpop.f32.mrb[18].mxu0  ;;  %v1286_v15 = vmax.f32 %v6685_v53, %v6689_v6 }
 0x332   : > { %9164 = vst [vmem:[#allocation8_spill] sm:$0xff] %v6691_v8  ;;  %5367 = vpow2.f32 %v866_v58  ;;  %v870_v12 = vmul.f32 1.442695, %v836_v0  ;;  %v872_v21 = vmul.f32 1.442695, %v837_v2  ;;  %v6695_v13 = vpop.f32.mrb[19].mxu0 }
 0x333   : > { %9165 = vst [vmem:[#allocation9_spill] sm:$0xff] %v6695_v13  ;;  %5369 = vpow2.f32 %v868_v60  ;;  %v1289_v33 = vmax.f32 %v6691_v8, %v6695_v13 }
 0x334   : > { %5371 = vpow2.f32 %v870_v12 }
 0x335   : > { %5373 = vpow2.f32 %v872_v21  ;;  %v794_v14 = vpop.xlane.xlu0 %793 }
 0x336   : > { %v838_v16 = vsub.f32 %v6551_v18, %v794_v14  ;;  %v839_v41 = vsub.f32 %v6553_v19, %v794_v14 }
 0x337   : > { %v6701_v43 = vpop.f32.mrb[20].mxu0 }
 0x338   : > { %v874_v36 = vmul.f32 1.442695, %v838_v16  ;;  %v876_v47 = vmul.f32 1.442695, %v839_v41  ;;  %v6703_v51 = vpop.f32.mrb[21].mxu0 }
 0x339   : > { %v797_v58 = vpop.xlane.xlu0 %796  ;;  %v6705_v0 = vpop.f32.mrb[22].mxu0 }
 0x33a   : > { %5375 = vpow2.f32 %v874_v36  ;;  %v840_v2 = vsub.f32 %v6555_v20, %v797_v58  ;;  %v841_v12 = vsub.f32 %v6559_v22, %v797_v58  ;;  %v6711_v18 = vpop.f32.mrb[23].mxu0 }
 0x33b   : > { %5377 = vpow2.f32 %v876_v47 }
 0x33c   : > { %v6715_v21 = vpop.eup %5367  ;;  %v878_v14 = vmul.f32 1.442695, %v840_v2  ;;  %v880_v16 = vmul.f32 1.442695, %v841_v12 }
 0x33d   : > { %9166 = vst [vmem:[#allocation10_spill] sm:$0xff] %v6715_v21  ;;  %v6717_v41 = vpop.eup %5369  ;;  %v800_v54 = vpop.xlane.xlu1 %799 }
 0x33e   : > { %v6719_v13 = vpop.eup %5371  ;;  %5379 = vpow2.f32 %v878_v14  ;;  %v842_v20 = vsub.f32 %v6563_v24, %v800_v54  ;;  %v843_v22 = vsub.f32 %v6565_v25, %v800_v54  ;;  %v930_v36 = vadd.f32 %v6717_v41, %v6715_v21 }
 0x33f   : > { %v6725_v47 = vpop.eup %5373  ;;  %5381 = vpow2.f32 %v880_v16  ;;  %v803_v58 = vpop.xlane.xlu0 %802 }
 0x340   : > { %v6727_v19 = vpop.f32.mrb[24].mxu0  ;;  %v882_v2 = vmul.f32 1.442695, %v842_v20  ;;  %v884_v12 = vmul.f32 1.442695, %v843_v22  ;;  %v844_v60 = vsub.f32 %v6567_v26, %v803_v58  ;;  %v845_v8 = vsub.f32 %v6571_v28, %v803_v58  ;;  %931 = vadd.xlane.f32.xlu1 %v930_v36 }
 0x341   : > { %v6731_v14 = vpop.f32.mrb[25].mxu0  ;;  %v933_v54 = vadd.f32 %v6725_v47, %v6719_v13 }
 0x342   : > { %9167 = vst [vmem:[#allocation11_spill] sm:$0xff] %v6731_v14  ;;  %v6735_v24 = vpop.f32.mrb[26].mxu0  ;;  %v1298_v25 = vmax.f32 %v6727_v19, %v6731_v14  ;;  %5383 = vpow2.f32 %v882_v2  ;;  %v886_v16 = vmul.f32 1.442695, %v844_v60  ;;  %v888_v21 = vmul.f32 1.442695, %v845_v8 }
 0x343   : > { %v6739_v20 = vpop.f32.mrb[27].mxu0  ;;  %5385 = vpow2.f32 %v884_v12  ;;  %934 = vadd.xlane.f32.xlu0 %v933_v54 }
 0x344   : > { %v6743_v28 = vpop.eup %5375  ;;  %5387 = vpow2.f32 %v886_v16  ;;  %1287 = vmax.xlane.f32.xlu1 %v1286_v15 }
 0x345   : > { %9168 = vst [vmem:[#allocation12_spill] sm:$0xff] %v6743_v28  ;;  %v6745_v22 = vpop.eup %5377  ;;  %5389 = vpow2.f32 %v888_v21  ;;  %v806_v36 = vpop.xlane.xlu1 %805 }
 0x346   : > { %v846_v58 = vsub.f32 %v6575_v30, %v806_v36  ;;  %v847_v60 = vsub.f32 %v6577_v31, %v806_v36  ;;  %v936_v8 = vadd.f32 %v6745_v22, %v6743_v28 }
 0x347   : > { %1290 = vmax.xlane.f32.xlu0 %v1289_v33  ;;  %v809_v2 = vpop.xlane.xlu0 %808  ;;  %v6751_v12 = vpop.f32.mrb[28].mxu0 }
 0x348   : > { %9169 = vst [vmem:[#allocation13_spill] sm:$0xff] %v6751_v12  ;;  %v6753_v54 = vpop.eup %5379  ;;  %v890_v26 = vmul.f32 1.442695, %v846_v58  ;;  %v892_v16 = vmul.f32 1.442695, %v847_v60  ;;  %v848_v15 = vsub.f32 %v6579_v32, %v809_v2  ;;  %v849_v21 = vsub.f32 %v6583_v34, %v809_v2  ;;  %937 = vadd.xlane.f32.xlu1 %v936_v8  ;;  %v6757_v14 = vpop.f32.mrb[29].mxu0 }
 0x349   : > { %9170 = vst [vmem:[#allocation14_spill] sm:$0xff] %v6753_v54  ;;  %9171 = vst [vmem:[#allocation15_spill] sm:$0xff] %v6757_v14  ;;  %v6759_v30 = vpop.eup %5381  ;;  %v6761_v31 = vpop.f32.mrb[30].mxu0  ;;  %v1304_v33 = vmax.f32 %v6751_v12, %v6757_v14  ;;  %v9173_v8 = vmax.f32 %v6701_v43, %v6703_v51 }
 0x34a   : > { %5391 = vpow2.f32 %v890_v26  ;;  %v894_v36 = vmul.f32 1.442695, %v848_v15  ;;  %v896_v28 = vmul.f32 1.442695, %v849_v21  ;;  %v939_v58 = vadd.f32 %v6759_v30, %v6753_v54  ;;  %v6767_v60 = vpop.f32.mrb[31].mxu0 }
 0x34b   : > { %5393 = vpow2.f32 %v892_v16 }
 0x34c   : > { %v6771_v34 = vpop.eup %5383  ;;  %5395 = vpow2.f32 %v894_v36  ;;  %1293 = vmax.xlane.f32.xlu1 %v9173_v8  ;;  %940 = vadd.xlane.f32.xlu0 %v939_v58 }
 0x34d   : > { %9172 = vst [vmem:[#allocation16_spill] sm:$0xff] %v6771_v34  ;;  %v6776_v26 = vpop.eup %5385  ;;  %5397 = vpow2.f32 %v896_v28  ;;  %v812_v2 = vpop.xlane.xlu1 %811  ;;  %v9174_v28 = vmax.f32 %v6705_v0, %v6711_v18 }
 0x34e   : > { %v6778_v15 = vpop.eup %5387  ;;  %v850_v21 = vsub.f32 %v6587_v38, %v812_v2  ;;  %v851_v16 = vsub.f32 %v6589_v39, %v812_v2  ;;  %v942_v32 = vadd.f32 %v6776_v26, %v6771_v34 }
 0x34f   : > { %v6784_v14 = vpop.eup %5389  ;;  %v815_v36 = vpop.xlane.xlu0 %814 }
 0x350   : > { %v898_v12 = vmul.f32 1.442695, %v850_v21  ;;  %v900_v54 = vmul.f32 1.442695, %v851_v16  ;;  %v852_v58 = vsub.f32 %v6591_v40, %v815_v36  ;;  %v853_v8 = vsub.f32 %v6595_v42, %v815_v36  ;;  %943 = vadd.xlane.f32.xlu1 %v942_v32  ;;  %1296 = vmax.xlane.f32.xlu0 %v9174_v28 }
 0x351   : > { %v945_v2 = vadd.f32 %v6784_v14, %v6778_v15 }
 0x352   : > { %5399 = vpow2.f32 %v898_v12  ;;  %v902_v38 = vmul.f32 1.442695, %v852_v58  ;;  %v904_v39 = vmul.f32 1.442695, %v853_v8 }
 0x353   : > { %5401 = vpow2.f32 %v900_v54 }
 0x354   : > { %v6793_v34 = vpop.eup %5391  ;;  %5403 = vpow2.f32 %v902_v38  ;;  %1299 = vmax.xlane.f32.xlu1 %v1298_v25  ;;  %946 = vadd.xlane.f32.xlu0 %v945_v2  ;;  %v9175_v38 = vmax.f32 %v6735_v24, %v6739_v20 }
 0x355   : > { %v6795_v40 = vpop.eup %5393  ;;  %5405 = vpow2.f32 %v904_v39  ;;  %v818_v42 = vpop.xlane.xlu1 %817 }
 0x356   : > { %v6797_v32 = vpop.eup %5395  ;;  %v854_v21 = vsub.f32 %v6599_v35, %v818_v42  ;;  %v855_v12 = vsub.f32 %v6601_v44, %v818_v42  ;;  %v948_v16 = vadd.f32 %v6795_v40, %v6793_v34 }
 0x357   : > { %v6803_v36 = vpop.eup %5397  ;;  %v821_v54 = vpop.xlane.xlu0 %820 }
 0x358   : > { %v906_v58 = vmul.f32 1.442695, %v854_v21  ;;  %v908_v8 = vmul.f32 1.442695, %v855_v12  ;;  %v856_v25 = vsub.f32 %v6603_v45, %v821_v54  ;;  %v857_v28 = vsub.f32 %v6607_v46, %v821_v54  ;;  %949 = vadd.xlane.f32.xlu1 %v948_v16  ;;  %1302 = vmax.xlane.f32.xlu0 %v9175_v38 }
 0x359   : > { %v951_v39 = vadd.f32 %v6803_v36, %v6797_v32  ;;  %v9176_v38 = vmax.f32 %v6761_v31, %v6767_v60 }
 0x35a   : > { %5407 = vpow2.f32 %v906_v58  ;;  %v910_v35 = vmul.f32 1.442695, %v856_v25  ;;  %v912_v44 = vmul.f32 1.442695, %v857_v28 }
 0x35b   : > { %5409 = vpow2.f32 %v908_v8 }
 0x35c   : > { %v6812_v2 = vpop.eup %5399  ;;  %5411 = vpow2.f32 %v910_v35  ;;  %1305 = vmax.xlane.f32.xlu1 %v1304_v33  ;;  %952 = vadd.xlane.f32.xlu0 %v951_v39 }
 0x35d   : > { %v6814_v45 = vpop.eup %5401  ;;  %5413 = vpow2.f32 %v912_v44  ;;  %v824_v46 = vpop.xlane.xlu1 %823 }
 0x35e   : > { %v6816_v42 = vpop.eup %5403  ;;  %v858_v21 = vsub.f32 %v6611_v48, %v824_v46  ;;  %v859_v12 = vsub.f32 %v6613_v49, %v824_v46  ;;  %v954_v16 = vadd.f32 %v6814_v45, %v6812_v2 }
 0x35f   : > { %v6822_v54 = vpop.eup %5405  ;;  %v827_v58 = vpop.xlane.xlu0 %826 }
 0x360   : > { %v914_v8 = vmul.f32 1.442695, %v858_v21  ;;  %v916_v25 = vmul.f32 1.442695, %v859_v12  ;;  %v860_v33 = vsub.f32 %v6615_v50, %v827_v58  ;;  %v861_v28 = vsub.f32 %v6619_v52, %v827_v58  ;;  %955 = vadd.xlane.f32.xlu1 %v954_v16  ;;  %1308 = vmax.xlane.f32.xlu0 %v9176_v38 }
 0x361   : > { %v957_v35 = vadd.f32 %v6822_v54, %v6816_v42 }
 0x362   : > { %5415 = vpow2.f32 %v914_v8  ;;  %v918_v48 = vmul.f32 1.442695, %v860_v33  ;;  %v920_v49 = vmul.f32 1.442695, %v861_v28 }
 0x363   : > { %5417 = vpow2.f32 %v916_v25 }
 0x364   : > { %v6831_v44 = vpop.eup %5407  ;;  %5419 = vpow2.f32 %v918_v48  ;;  %958 = vadd.xlane.f32.xlu0 %v957_v35 }
 0x365   : > { %v6833_v39 = vpop.eup %5409  ;;  %5421 = vpow2.f32 %v920_v49  ;;  %v830_v50 = vpop.xlane.xlu1 %829 }
 0x366   : > { %v6835_v52 = vpop.eup %5411  ;;  %v862_v46 = vsub.f32 %v6623_v55, %v830_v50  ;;  %v863_v21 = vsub.f32 %v6625_v56, %v830_v50  ;;  %v960_v12 = vadd.f32 %v6833_v39, %v6831_v44 }
 0x367   : > { %v6841_v16 = vpop.eup %5413  ;;  %v833_v58 = vpop.xlane.xlu0 %832 }
 0x368   : > { %v922_v8 = vmul.f32 1.442695, %v862_v46  ;;  %v924_v25 = vmul.f32 1.442695, %v863_v21  ;;  %961 = vadd.xlane.f32.xlu1 %v960_v12  ;;  %v864_v33 = vsub.f32 %v6627_v57, %v833_v58  ;;  %v865_v28 = vsub.f32 %v6631_v59, %v833_v58 }
 0x369   : > { %v963_v38 = vadd.f32 %v6841_v16, %v6835_v52 }
 0x36a   : > { %5423 = vpow2.f32 %v922_v8  ;;  %v926_v55 = vmul.f32 1.442695, %v864_v33  ;;  %v928_v48 = vmul.f32 1.442695, %v865_v28 }
 0x36b   : > { %5425 = vpow2.f32 %v924_v25  ;;  %964 = vadd.xlane.f32.xlu0 %v963_v38 }
 0x36c   : > { %v6847_v56 = vpop.eup %5415  ;;  %5427 = vpow2.f32 %v926_v55 }
 0x36d   : > { %9177 = vst [vmem:[#allocation17_spill] sm:$0xff] %v6847_v56  ;;  %v6849_v49 = vpop.eup %5417  ;;  %5429 = vpow2.f32 %v928_v48 }
 0x36e   : > { %v6851_v35 = vpop.eup %5419  ;;  %v966_v57 = vadd.f32 %v6849_v49, %v6847_v56 }
 0x36f   : > { %v6855_v59 = vpop.eup %5421 }
 0x370   : > { %967 = vadd.xlane.f32.xlu1 %v966_v57  ;;  %v969_v50 = vadd.f32 %v6855_v59, %v6851_v35 }
 0x372   : > { %970 = vadd.xlane.f32.xlu0 %v969_v50 }
 0x374   : > { %v6859_v46 = vpop.eup %5423 }
 0x375   : > { %9178 = vst [vmem:[#allocation18_spill] sm:$0xff] %v6859_v46  ;;  %v6861_v21 = vpop.eup %5425 }
 0x376   : > { %9179 = vst [vmem:[#allocation19_spill] sm:$0xff] %v6861_v21  ;;  %v6863_v12 = vpop.eup %5427  ;;  %v972_v58 = vadd.f32 %v6861_v21, %v6859_v46 }
 0x377   : > { %9180 = vst [vmem:[#allocation20_spill] sm:$0xff] %v6863_v12  ;;  %v6867_v8 = vpop.eup %5429 }
 0x378   : > { %973 = vadd.xlane.f32.xlu1 %v972_v58  ;;  %v975_v25 = vadd.f32 %v6867_v8, %v6863_v12 }
 0x37a   : > { %976 = vadd.xlane.f32.xlu0 %v975_v25 }
 0x3a0   : > { %v1264_v33 = vpop.xlane.xlu1 %1263 }
 0x3a1   : > { %v1310_v28 = vsub.f32 %v6635_v61, %v1264_v33  ;;  %v1311_v38 = vsub.f32 %v6637_v62, %v1264_v33 }
 0x3a2   : > { %v1267_v55 = vpop.xlane.xlu0 %1266 }
 0x3a3   : > { %v1342_v48 = vmul.f32 1.442695, %v1310_v28  ;;  %v1344_v57 = vmul.f32 1.442695, %v1311_v38  ;;  %v1312_v50 = vsub.f32 %v6639_v63, %v1267_v55  ;;  %v1313_v56 = vsub.f32 %v6643_v1, %v1267_v55 }
 0x3a5   : > { %5431 = vpow2.f32 %v1342_v48  ;;  %v1346_v46 = vmul.f32 1.442695, %v1312_v50  ;;  %v1348_v21 = vmul.f32 1.442695, %v1313_v56 }
 0x3a6   : > { %5433 = vpow2.f32 %v1344_v57 }
 0x3a7   : > { %5435 = vpow2.f32 %v1346_v46 }
 0x3a8   : > { %5437 = vpow2.f32 %v1348_v21  ;;  %v1270_v58 = vpop.xlane.xlu1 %1269 }
 0x3a9   : > { %v1314_v25 = vsub.f32 %v6647_v3, %v1270_v58  ;;  %v1315_v61 = vsub.f32 %v6649_v4, %v1270_v58 }
 0x3aa   : > { %v1273_v12 = vpop.xlane.xlu0 %1272 }
 0x3ab   : > { %v1350_v62 = vmul.f32 1.442695, %v1314_v25  ;;  %v1352_v33 = vmul.f32 1.442695, %v1315_v61  ;;  %v1316_v28 = vsub.f32 %v6651_v5, %v1273_v12  ;;  %v1317_v63 = vsub.f32 %v6655_v7, %v1273_v12 }
 0x3ad   : > { %5439 = vpow2.f32 %v1350_v62  ;;  %v1354_v1 = vmul.f32 1.442695, %v1316_v28  ;;  %v1356_v38 = vmul.f32 1.442695, %v1317_v63 }
 0x3ae   : > { %5441 = vpow2.f32 %v1352_v33 }
 0x3af   : > { %v6879_v56 = vpop.eup %5431  ;;  %5443 = vpow2.f32 %v1354_v1 }
 0x3b0   : > { %v6881_v46 = vpop.eup %5433  ;;  %5445 = vpow2.f32 %v1356_v38  ;;  %v1276_v3 = vpop.xlane.xlu1 %1275 }
 0x3b1   : > { %v6883_v21 = vpop.eup %5435  ;;  %v1318_v4 = vsub.f32 %v6659_v9, %v1276_v3  ;;  %v1319_v55 = vsub.f32 %v6661_v10, %v1276_v3  ;;  %v1406_v5 = vadd.f32 %v6881_v46, %v6879_v56 }
 0x3b2   : > { %v6889_v7 = vpop.eup %5437  ;;  %v1279_v12 = vpop.xlane.xlu0 %1278 }
 0x3b3   : > { %v1358_v48 = vmul.f32 1.442695, %v1318_v4  ;;  %v1360_v57 = vmul.f32 1.442695, %v1319_v55  ;;  %1407 = vadd.xlane.f32.xlu1 %v1406_v5  ;;  %v1320_v50 = vsub.f32 %v6663_v11, %v1279_v12  ;;  %v1321_v58 = vsub.f32 %v6667_v17, %v1279_v12 }
 0x3b4   : > { %v1409_v25 = vadd.f32 %v6889_v7, %v6883_v21 }
 0x3b5   : > { %5447 = vpow2.f32 %v1358_v48  ;;  %v1362_v9 = vmul.f32 1.442695, %v1320_v50  ;;  %v1364_v61 = vmul.f32 1.442695, %v1321_v58 }
 0x3b6   : > { %5449 = vpow2.f32 %v1360_v57  ;;  %1410 = vadd.xlane.f32.xlu0 %v1409_v25 }
 0x3b7   : > { %v6895_v10 = vpop.eup %5439  ;;  %5451 = vpow2.f32 %v1362_v9 }
 0x3b8   : > { %v6897_v62 = vpop.eup %5441  ;;  %5453 = vpow2.f32 %v1364_v61  ;;  %v1282_v33 = vpop.xlane.xlu1 %1281 }
 0x3b9   : > { %v6899_v28 = vpop.eup %5443  ;;  %v1322_v11 = vsub.f32 %v6671_v23, %v1282_v33  ;;  %v1323_v17 = vsub.f32 %v6673_v27, %v1282_v33  ;;  %v1412_v63 = vadd.f32 %v6897_v62, %v6895_v10 }
 0x3ba   : > { %v6905_v1 = vpop.eup %5445  ;;  %v1285_v38 = vpop.xlane.xlu0 %1284 }
 0x3bb   : > { %v1366_v3 = vmul.f32 1.442695, %v1322_v11  ;;  %v1368_v4 = vmul.f32 1.442695, %v1323_v17  ;;  %1413 = vadd.xlane.f32.xlu1 %v1412_v63  ;;  %v1324_v55 = vsub.f32 %v6675_v29, %v1285_v38  ;;  %v1325_v5 = vsub.f32 %v6679_v37, %v1285_v38 }
 0x3bc   : > { %v1415_v12 = vadd.f32 %v6905_v1, %v6899_v28 }
 0x3bd   : > { %5455 = vpow2.f32 %v1366_v3  ;;  %v1370_v23 = vmul.f32 1.442695, %v1324_v55  ;;  %v1372_v48 = vmul.f32 1.442695, %v1325_v5 }
 0x3be   : > { %5457 = vpow2.f32 %v1368_v4  ;;  %1416 = vadd.xlane.f32.xlu0 %v1415_v12  ;;  %v640_v4 = vld [vmem:[#allocation4 + $0x8] sm:$0x3] }
 0x3bf   : > { %v6911_v27 = vpop.eup %5447  ;;  %5459 = vpow2.f32 %v1370_v23  ;;  %1074 = vmatprep.mubr.bf16.mxu1 %v640_v4 }
 0x3c0   : > { %v6913_v57 = vpop.eup %5449  ;;  %5461 = vpow2.f32 %v1372_v48 }
 0x3c1   : > { %v6915_v50 = vpop.eup %5451  ;;  %v1418_v29 = vadd.f32 %v6913_v57, %v6911_v27 }
 0x3c2   : > { %v6919_v37 = vpop.eup %5453 }
 0x3c3   : > { %1419 = vadd.xlane.f32.xlu1 %v1418_v29  ;;  %v1421_v58 = vadd.f32 %v6919_v37, %v6915_v50  ;;  %v9184_v29 = vld [vmem:[#allocation8_spill] sm:$0xff] }
 0x3c5   : > { %1422 = vadd.xlane.f32.xlu0 %v1421_v58 }
 0x3c7   : > { %v6923_v25 = vpop.eup %5455 }
 0x3c8   : > { %9181 = vst [vmem:[#allocation21_spill] sm:$0xff] %v6923_v25  ;;  %v6925_v9 = vpop.eup %5457 }
 0x3c9   : > { %v6927_v61 = vpop.eup %5459  ;;  %v1424_v33 = vadd.f32 %v6925_v9, %v6923_v25 }
 0x3ca   : > { %9182 = vst [vmem:[#allocation22_spill] sm:$0xff] %v6927_v61  ;;  %v6931_v11 = vpop.eup %5461 }
 0x3cb   : > { %9183 = vst [vmem:[#allocation23_spill] sm:$0xff] %v6931_v11  ;;  %1425 = vadd.xlane.f32.xlu1 %v1424_v33  ;;  %v1427_v17 = vadd.f32 %v6931_v11, %v6927_v61  ;;  %v9185_v33 = vld [vmem:[#allocation9_spill] sm:$0xff] }
 0x3cd   : > { %v932_v63 = vpop.xlane.xlu1 %931  ;;  %1428 = vadd.xlane.f32.xlu0 %v1427_v17 }
 0x3ce   : > { %5463 = vrcp.f32 %v932_v63 }
 0x3d0   : > { %v935_v38 = vpop.xlane.xlu0 %934 }
 0x3d1   : > { %5465 = vrcp.f32 %v935_v38  ;;  %v1288_v3 = vpop.xlane.xlu1 %1287 }
 0x3d2   : > { %v1326_v55 = vsub.f32 %v6685_v53, %v1288_v3  ;;  %v1327_v5 = vsub.f32 %v6689_v6, %v1288_v3 }
 0x3d4   : > { %v1374_v12 = vmul.f32 1.442695, %v1326_v55  ;;  %v1376_v23 = vmul.f32 1.442695, %v1327_v5  ;;  %v1291_v48 = vpop.xlane.xlu0 %1290 }
 0x3d5   : > { %v1328_v58 = vsub.f32 %v9184_v29, %v1291_v48  ;;  %v1329_v25 = vsub.f32 %v9185_v33, %v1291_v48  ;;  %v938_v61 = vpop.xlane.xlu1 %937  ;;  %v9186_v29 = vld [vmem:[#allocation10_spill] sm:$0xff] }
 0x3d6   : > { %5467 = vpow2.f32 %v1374_v12 }
 0x3d7   : > { %5469 = vpow2.f32 %v1376_v23  ;;  %v1378_v17 = vmul.f32 1.442695, %v1328_v58  ;;  %v1380_v63 = vmul.f32 1.442695, %v1329_v25 }
 0x3d8   : > { %v5464_v38 = vpop.eup %5463  ;;  %5471 = vrcp.f32 %v938_v61 }
 0x3d9   : > { %5473 = vpow2.f32 %v1378_v17  ;;  %v1294_v11 = vpop.xlane.xlu1 %1293  ;;  %v941_v53 = vpop.xlane.xlu0 %940  ;;  %v995_v55 = vmul.f32 %v5464_v38, %v6717_v41  ;;  %v994_v58 = vmul.f32 %v5464_v38, %v9186_v29 }
 0x3da   : > { %5475 = vpow2.f32 %v1380_v63  ;;  %v1330_v6 = vsub.f32 %v6701_v43, %v1294_v11  ;;  %v1331_v3 = vsub.f32 %v6703_v51, %v1294_v11 }
 0x3db   : > { %v5466_v4 = vpop.eup %5465  ;;  %5477 = vrcp.f32 %v941_v53 }
 0x3dc   : > { %v1382_v5 = vmul.f32 1.442695, %v1330_v6  ;;  %v1384_v48 = vmul.f32 1.442695, %v1331_v3  ;;  %v997_v12 = vmul.f32 %v5466_v4, %v6725_v47  ;;  %v996_v25 = vmul.f32 %v5466_v4, %v6719_v13  ;;  %v9187_v6 = vld [vmem:[#allocation11_spill] sm:$0xff] }
 0x3dd   : > { %v944_v23 = vpop.xlane.xlu1 %943  ;;  %v1297_v61 = vpop.xlane.xlu0 %1296 }
 0x3de   : > { %5479 = vpow2.f32 %v1382_v5  ;;  %v1332_v33 = vsub.f32 %v6705_v0, %v1297_v61  ;;  %v1333_v43 = vsub.f32 %v6711_v18, %v1297_v61  ;;  %v1027_v51 = vpack.c.bf16 %v997_v12, %v995_v55 }
 0x3df   : > { %5481 = vpow2.f32 %v1384_v48  ;;  %v1026_v11 = vpack.c.bf16 %v996_v25, %v994_v58 }
 0x3e0   : > { %v6947_v17 = vpop.eup %5467  ;;  %5483 = vrcp.f32 %v944_v23  ;;  %v1386_v41 = vmul.f32 1.442695, %v1332_v33  ;;  %v1388_v63 = vmul.f32 1.442695, %v1333_v43  ;;  %1042 = vmatprep.subr.bf16.mxu1 %v1027_v51  ;;  %v9188_v43 = vld [vmem:[#allocation12_spill] sm:$0xff] }
 0x3e1   : > { %v6949_v47 = vpop.eup %5469  ;;  %1043 = vmatpush1.bf16.xpose.msra.mxu1 %v1026_v11  ;;  %v1300_v13 = vpop.xlane.xlu1 %1299  ;;  %v9189_v11 = vld [vmem:[#allocation14_spill] sm:$0xff] }
 0x3e2   : > { %v947_v53 = vpop.xlane.xlu0 %946  ;;  %v5472_v38 = vpop.eup %5471  ;;  %5485 = vpow2.f32 %v1386_v41  ;;  %v1334_v0 = vsub.f32 %v6727_v19, %v1300_v13  ;;  %v1335_v18 = vsub.f32 %v9187_v6, %v1300_v13  ;;  %v1430_v3 = vadd.f32 %v6949_v47, %v6947_v17 }
 0x3e3   : > { %v6955_v4 = vpop.eup %5473  ;;  %5487 = vpow2.f32 %v1388_v63  ;;  %v999_v61 = vmul.f32 %v5472_v38, %v6745_v22  ;;  %v998_v51 = vmul.f32 %v5472_v38, %v9188_v43 }
 0x3e4   : > { %v6957_v55 = vpop.eup %5475  ;;  %v1390_v5 = vmul.f32 1.442695, %v1334_v0  ;;  %v1392_v48 = vmul.f32 1.442695, %v1335_v18  ;;  %5489 = vrcp.f32 %v947_v53  ;;  %1431 = vadd.xlane.f32.xlu1 %v1430_v3 }
 0x3e5   : > { %v5478_v12 = vpop.eup %5477  ;;  %v950_v25 = vpop.xlane.xlu1 %949  ;;  %v1433_v23 = vadd.f32 %v6957_v55, %v6955_v4 }
 0x3e6   : > { %v1303_v19 = vpop.xlane.xlu0 %1302  ;;  %5491 = vpow2.f32 %v1390_v5  ;;  %v1001_v33 = vmul.f32 %v5478_v12, %v6759_v30  ;;  %v1000_v41 = vmul.f32 %v5478_v12, %v9189_v11  ;;  %v9190_v30 = vld [vmem:[#allocation13_spill] sm:$0xff]  ;;  %v9191_v5 = vld [vmem:[#allocation15_spill] sm:$0xff] }
 0x3e7   : > { %v1336_v29 = vsub.f32 %v6735_v24, %v1303_v19  ;;  %v1337_v58 = vsub.f32 %v6739_v20, %v1303_v19  ;;  %5493 = vpow2.f32 %v1392_v48  ;;  %1434 = vadd.xlane.f32.xlu0 %v1433_v23 }
 0x3e8   : > { %v6967_v63 = vpop.eup %5479  ;;  %v1029_v0 = vpack.c.bf16 %v1001_v33, %v999_v61  ;;  %5495 = vrcp.f32 %v950_v25  ;;  %v1028_v18 = vpack.c.bf16 %v1000_v41, %v998_v51 }
 0x3e9   : > { %v1394_v13 = vmul.f32 1.442695, %v1336_v29  ;;  %v1396_v53 = vmul.f32 1.442695, %v1337_v58  ;;  %v6969_v6 = vpop.eup %5481  ;;  %v1306_v22 = vpop.xlane.xlu1 %1305 }
 0x3ea   : > { %v953_v24 = vpop.xlane.xlu0 %952  ;;  %v5484_v20 = vpop.eup %5483  ;;  %v1338_v3 = vsub.f32 %v9190_v30, %v1306_v22  ;;  %v1339_v48 = vsub.f32 %v9191_v5, %v1306_v22  ;;  %1044 = vmatprep.subr.bf16.mxu1 %v1029_v0  ;;  %v1436_v38 = vadd.f32 %v6969_v6, %v6967_v63 }
 0x3eb   : > { %5497 = vpow2.f32 %v1394_v13  ;;  %1045 = vmatpush1.bf16.xpose.msra.mxu1 %v1028_v18  ;;  %v1003_v29 = vmul.f32 %v5484_v20, %v6776_v26  ;;  %v9192_v13 = vld [vmem:[#allocation16_spill] sm:$0xff] }
 0x3ec   : > { %5499 = vpow2.f32 %v1396_v53  ;;  %v6975_v12 = vpop.eup %5485  ;;  %v1398_v23 = vmul.f32 1.442695, %v1338_v3  ;;  %v1400_v19 = vmul.f32 1.442695, %v1339_v48  ;;  %1437 = vadd.xlane.f32.xlu1 %v1436_v38  ;;  %v1002_v53 = vmul.f32 %v5484_v20, %v9192_v13 }
 0x3ed   : > { %5501 = vrcp.f32 %v953_v24  ;;  %v6977_v25 = vpop.eup %5487  ;;  %v956_v33 = vpop.xlane.xlu1 %955 }
 0x3ee   : > { %v1309_v61 = vpop.xlane.xlu0 %1308  ;;  %v5490_v58 = vpop.eup %5489  ;;  %5503 = vpow2.f32 %v1398_v23  ;;  %v1439_v11 = vadd.f32 %v6977_v25, %v6975_v12 }
 0x3ef   : > { %v1340_v43 = vsub.f32 %v6761_v31, %v1309_v61  ;;  %v1341_v51 = vsub.f32 %v6767_v60, %v1309_v61  ;;  %5505 = vpow2.f32 %v1400_v19  ;;  %v1005_v41 = vmul.f32 %v5490_v58, %v6784_v14 }
 0x3f0   : > { %v1004_v0 = vmul.f32 %v5490_v58, %v6778_v15  ;;  %v6987_v22 = vpop.eup %5491  ;;  %1440 = vadd.xlane.f32.xlu0 %v1439_v11  ;;  %5507 = vrcp.f32 %v956_v33 }
 0x3f1   : > { %v1402_v26 = vmul.f32 1.442695, %v1340_v43  ;;  %v1404_v24 = vmul.f32 1.442695, %v1341_v51  ;;  %v6989_v18 = vpop.eup %5493  ;;  %v1031_v31 = vpack.c.bf16 %v1005_v41, %v1003_v29 }
 0x3f2   : > { %v959_v60 = vpop.xlane.xlu0 %958  ;;  %v1030_v30 = vpack.c.bf16 %v1004_v0, %v1002_v53  ;;  %v1442_v3 = vadd.f32 %v6989_v18, %v6987_v22  ;;  %v5496_v14 = vpop.eup %5495 }
 0x3f3   : > { %5509 = vpow2.f32 %v1402_v26  ;;  %1046 = vmatprep.subr.bf16.mxu1 %v1031_v31  ;;  %v1007_v23 = vmul.f32 %v5496_v14, %v6795_v40  ;;  %v1006_v61 = vmul.f32 %v5496_v14, %v6793_v34 }
 0x3f4   : > { %5511 = vpow2.f32 %v1404_v24  ;;  %1047 = vmatpush1.bf16.xpose.msra.mxu1 %v1030_v30  ;;  %1443 = vadd.xlane.f32.xlu1 %v1442_v3 }
 0x3f5   : > { %v6993_v20 = vpop.eup %5497  ;;  %5513 = vrcp.f32 %v959_v60  ;;  %v962_v5 = vpop.xlane.xlu1 %961 }
 0x3f6   : > { %v6995_v15 = vpop.eup %5499  ;;  %5515 = vrcp.f32 %v962_v5 }
 0x3f7   : > { %v5502_v48 = vpop.eup %5501  ;;  %v1445_v38 = vadd.f32 %v6995_v15, %v6993_v20 }
 0x3f8   : > { %v1009_v19 = vmul.f32 %v5502_v48, %v6803_v36  ;;  %v1008_v29 = vmul.f32 %v5502_v48, %v6797_v32  ;;  %v7003_v58 = vpop.eup %5503  ;;  %v965_v33 = vpop.xlane.xlu0 %964 }
 0x3f9   : > { %1446 = vadd.xlane.f32.xlu0 %v1445_v38  ;;  %v7005_v43 = vpop.eup %5505  ;;  %5517 = vrcp.f32 %v965_v33 }
 0x3fa   : > { %v1033_v51 = vpack.c.bf16 %v1009_v19, %v1007_v23  ;;  %v1032_v11 = vpack.c.bf16 %v1008_v29, %v1006_v61  ;;  %v1448_v41 = vadd.f32 %v7005_v43, %v7003_v58  ;;  %v5508_v40 = vpop.eup %5507 }
 0x3fb   : > { %v1011_v26 = vmul.f32 %v5508_v40, %v6814_v45  ;;  %v1010_v31 = vmul.f32 %v5508_v40, %v6812_v2 }
 0x3fc   : > { %1048 = vmatprep.subr.bf16.mxu1 %v1033_v51  ;;  %1449 = vadd.xlane.f32.xlu1 %v1448_v41  ;;  %v7026_v51 = vld [vmem:[%s6490_s17] sm:$0xff] }
 0x3fd   : > { %v7009_v13 = vpop.eup %5509  ;;  %1049 = vmatpush1.bf16.xpose.msra.mxu1 %v1032_v11  ;;  %v968_v32 = vpop.xlane.xlu1 %967  ;;  %v9193_v11 = vld [vmem:[#allocation17_spill] sm:$0xff] }
 0x3fe   : > { %v7011_v34 = vpop.eup %5511  ;;  %5519 = vrcp.f32 %v968_v32  ;;  %v9194_v32 = vld [vmem:[#allocation19_spill] sm:$0xff] }
 0x3ff   : > { %v5514_v36 = vpop.eup %5513  ;;  %v1451_v53 = vadd.f32 %v7011_v34, %v7009_v13  ;;  %v971_v0 = vpop.xlane.xlu0 %970 }
 0x400   : > { %v1013_v24 = vmul.f32 %v5514_v36, %v6822_v54  ;;  %v1012_v60 = vmul.f32 %v5514_v36, %v6816_v42  ;;  %5521 = vrcp.f32 %v971_v0  ;;  %v5516_v30 = vpop.eup %5515  ;;  %v7040_v0 = vld [vmem:[%s6490_s17 + $0x18] sm:$0xff] }
 0x401   : > { %1452 = vadd.xlane.f32.xlu0 %v1451_v53  ;;  %v1015_v48 = vmul.f32 %v5516_v30, %v6833_v39  ;;  %v1014_v19 = vmul.f32 %v5516_v30, %v6831_v44 }
 0x402   : > { %v1035_v3 = vpack.c.bf16 %v1013_v24, %v1011_v26  ;;  %v1034_v14 = vpack.c.bf16 %v1012_v60, %v1010_v31  ;;  %v9195_v26 = vld [vmem:[#allocation20_spill] sm:$0xff]  ;;  %v7046_v31 = vld [vmem:[%s6490_s17 + $0x8] sm:$0xff]  ;;  %v9196_v60 = vld [vmem:[#allocation18_spill] sm:$0xff] }
 0x403   : > { %v5518_v5 = vpop.eup %5517 }
 0x404   : > { %1050 = vmatprep.subr.bf16.mxu1 %v1035_v3  ;;  %v1017_v38 = vmul.f32 %v5518_v5, %v6841_v16  ;;  %v1016_v2 = vmul.f32 %v5518_v5, %v6835_v52  ;;  %v7062_v5 = vld [vmem:[%s6490_s17 + $0x38] sm:$0xff] }
 0x405   : > { %1051 = vmatpush1.bf16.xpose.msra.mxu1 %v1034_v14  ;;  %v974_v45 = vpop.xlane.xlu1 %973  ;;  %v7057_v14 = vld [vmem:[%s6490_s17 + $0x20] sm:$0xff] }
 0x406   : > { %5523 = vrcp.f32 %v974_v45  ;;  %v1037_v54 = vpack.c.bf16 %v1017_v38, %v1015_v48  ;;  %v1036_v29 = vpack.c.bf16 %v1016_v2, %v1014_v19  ;;  %v7067_v48 = vld [vmem:[%s6490_s17 + $0x30] sm:$0xff]  ;;  %v1090_v38 = vld [vmem:[#allocation4 + $0x8] sm:$0xc]  ;;  %v639_v45 = vld [vmem:[#allocation4] sm:$0x3] }
 0x407   : > { %v977_v23 = vpop.xlane.xlu0 %976 }
 0x408   : > { %v5520_v42 = vpop.eup %5519  ;;  %1052 = vmatprep.subr.bf16.mxu1 %v1037_v54  ;;  %5525 = vrcp.f32 %v977_v23  ;;  %v1521_v54 = vrot.slane %v1090_v38, 2 }
 0x409   : > { %v1019_v33 = vmul.f32 %v5520_v42, %v6849_v49  ;;  %v1018_v41 = vmul.f32 %v5520_v42, %v9193_v11  ;;  %v7033_v49 = vld [vmem:[%s6490_s17 + $0x10] sm:$0xff] }
 0x40a   : > { %v5522_v61 = vpop.eup %5521 }
 0x40b   : > { %v1021_v39 = vmul.f32 %v5522_v61, %v6855_v59  ;;  %v1020_v52 = vmul.f32 %v5522_v61, %v6851_v35 }
 0x40d   : > { %1053 = vmatpush1.bf16.xpose.msra.mxu1 %v1036_v29  ;;  %v1039_v16 = vpack.c.bf16 %v1021_v39, %v1019_v33  ;;  %1699 = vrot.lane.b32.xlu1 %v7026_v51, %s6264_s8  ;;  %v1038_v40 = vpack.c.bf16 %v1020_v52, %v1018_v41 }
 0x40f   : > { %1054 = vmatprep.subr.bf16.mxu1 %v1039_v16 }
 0x410   : > { %v5524_v44 = vpop.eup %5523 }
 0x411   : > { %1703 = vrot.lane.b32.xlu1 %v7033_v49, %s6264_s8  ;;  %v1023_v36 = vmul.f32 %v5524_v44, %v9194_v32  ;;  %v1022_v30 = vmul.f32 %v5524_v44, %v9196_v60 }
 0x412   : > { %v5526_v59 = vpop.eup %5525 }
 0x413   : > { %v1025_v53 = vmul.f32 %v5526_v59, %v6867_v8  ;;  %v1024_v24 = vmul.f32 %v5526_v59, %v9195_v26  ;;  %v7052_v8 = vld [vmem:[%s6490_s17 + $0x28] sm:$0xff] }
 0x415   : > { %1055 = vmatpush1.bf16.xpose.msra.mxu1 %v1038_v40  ;;  %v1041_v35 = vpack.c.bf16 %v1025_v53, %v1023_v36  ;;  %1705 = vrot.lane.b32.xlu1 %v7040_v0, %s6264_s8  ;;  %v1040_v3 = vpack.c.bf16 %v1024_v24, %v1022_v30 }
 0x417   : > { %1701 = vrot.lane.b32.xlu0 %v7046_v31, %s6264_s8  ;;  %1056 = vmatprep.subr.bf16.mxu1 %v1041_v35 }
 0x419   : > { %1709 = vrot.lane.b32.xlu1 %v7052_v8, %s6264_s8 }
 0x41b   : > { %1707 = vrot.lane.b32.xlu0 %v7057_v14, %s6264_s8 }
 0x41d   : > { %1057 = vmatpush1.bf16.xpose.msra.mxu1 %v1040_v3  ;;  %1713 = vrot.lane.b32.xlu1 %v7062_v5, %s6264_s8 }
 0x41f   : > { %1711 = vrot.lane.b32.xlu0 %v7067_v48, %s6264_s8 }
 0x424   : > { %1075 = vmatmul.mubr.bf16.vlgmr.msra.gmra.mrb[32].mxu1 %v639_v45 }
 0x425   : > { %1556 = vmatprep.mubr.bf16.mxu1 %v1521_v54 }
 0x440   : > { %v1408_v2 = vpop.xlane.xlu1 %1407 }
 0x441   : > { %5527 = vrcp.f32 %v1408_v2  ;;  %v9197_v2 = vld [vmem:[#allocation23_spill] sm:$0xff] }
 0x443   : > { %v1411_v23 = vpop.xlane.xlu0 %1410 }
 0x444   : > { %5529 = vrcp.f32 %v1411_v23 }
 0x448   : > { %v1414_v42 = vpop.xlane.xlu1 %1413 }
 0x449   : > { %5531 = vrcp.f32 %v1414_v42  ;;  %v9198_v42 = vld [vmem:[#allocation21_spill] sm:$0xff] }
 0x44b   : > { %v1417_v19 = vpop.xlane.xlu0 %1416  ;;  %v5528_v61 = vpop.eup %5527 }
 0x44c   : > { %5533 = vrcp.f32 %v1417_v19  ;;  %v1471_v33 = vmul.f32 %v5528_v61, %v6881_v46  ;;  %v1470_v16 = vmul.f32 %v5528_v61, %v6879_v56  ;;  %v9199_v61 = vld [vmem:[#allocation22_spill] sm:$0xff] }
 0x44e   : > { %v5530_v29 = vpop.eup %5529 }
 0x44f   : > { %v1473_v39 = vmul.f32 %v5530_v29, %v6889_v7  ;;  %v1472_v52 = vmul.f32 %v5530_v29, %v6883_v21 }
 0x450   : > { %v1420_v44 = vpop.xlane.xlu1 %1419 }
 0x451   : > { %5535 = vrcp.f32 %v1420_v44  ;;  %v1503_v11 = vpack.c.bf16 %v1473_v39, %v1471_v33  ;;  %v1502_v41 = vpack.c.bf16 %v1472_v52, %v1470_v16 }
 0x452   : > { %v1423_v59 = vpop.xlane.xlu0 %1422 }
 0x453   : > { %1524 = vmatprep.subr.bf16.mxu1 %v1503_v11  ;;  %5537 = vrcp.f32 %v1423_v59  ;;  %v5532_v40 = vpop.eup %5531 }
 0x454   : > { %1525 = vmatpush1.bf16.xpose.msra.mxu1 %v1502_v41  ;;  %v1475_v36 = vmul.f32 %v5532_v40, %v6897_v62  ;;  %v1474_v7 = vmul.f32 %v5532_v40, %v6895_v10 }
 0x456   : > { %v5534_v32 = vpop.eup %5533 }
 0x457   : > { %v1477_v46 = vmul.f32 %v5534_v32, %v6905_v1  ;;  %v1476_v56 = vmul.f32 %v5534_v32, %v6899_v28 }
 0x458   : > { %v1426_v53 = vpop.xlane.xlu1 %1425 }
 0x459   : > { %5539 = vrcp.f32 %v1426_v53  ;;  %v1505_v21 = vpack.c.bf16 %v1477_v46, %v1475_v36  ;;  %v1504_v35 = vpack.c.bf16 %v1476_v56, %v1474_v7 }
 0x45a   : > { %v1429_v26 = vpop.xlane.xlu0 %1428 }
 0x45b   : > { %v5536_v24 = vpop.eup %5535  ;;  %1526 = vmatprep.subr.bf16.mxu1 %v1505_v21  ;;  %5541 = vrcp.f32 %v1429_v26 }
 0x45c   : > { %1527 = vmatpush1.bf16.xpose.msra.mxu1 %v1504_v35  ;;  %v1479_v30 = vmul.f32 %v5536_v24, %v6913_v57  ;;  %v1478_v1 = vmul.f32 %v5536_v24, %v6911_v27 }
 0x45d   : > { %v5538_v60 = vpop.eup %5537 }
 0x45e   : > { %v1481_v62 = vmul.f32 %v5538_v60, %v6919_v37  ;;  %v1480_v10 = vmul.f32 %v5538_v60, %v6915_v50 }
 0x460   : > { %v1507_v3 = vpack.c.bf16 %v1481_v62, %v1479_v30  ;;  %v1506_v28 = vpack.c.bf16 %v1480_v10, %v1478_v1  ;;  %v1696_v10 = vld [vmem:[#allocation3 + $0x8] sm:$0x30] }
 0x462   : > { %1528 = vmatprep.subr.bf16.mxu1 %v1507_v3 }
 0x463   : > { %v5540_v38 = vpop.eup %5539 }
 0x464   : > { %1529 = vmatpush1.bf16.xpose.msra.mxu1 %v1506_v28  ;;  %v1483_v54 = vmul.f32 %v5540_v38, %v6925_v9  ;;  %v1482_v19 = vmul.f32 %v5540_v38, %v9198_v42 }
 0x465   : > { %v5542_v45 = vpop.eup %5541 }
 0x466   : > { %v1485_v23 = vmul.f32 %v5542_v45, %v9197_v2  ;;  %v1484_v57 = vmul.f32 %v5542_v45, %v9199_v61 }
 0x468   : > { %v1509_v29 = vpack.c.bf16 %v1485_v23, %v1483_v54  ;;  %v1508_v37 = vpack.c.bf16 %v1484_v57, %v1482_v19  ;;  %v1695_v54 = vld [vmem:[#allocation3] sm:$0x30] }
 0x469   : > { %v1717_v2 = vrot.slane %v1695_v54, 4 }
 0x46a   : > { %1530 = vmatprep.subr.bf16.mxu1 %v1509_v29 }
 0x46b   : > { %v1744_v42 = vsel %vm666_vm1, %v1717_v2, 0 }
 0x46c   : > { %1531 = vmatpush1.bf16.xpose.msra.mxu1 %v1508_v37 }
 0x471   : > { %v1432_v27 = vpop.xlane.xlu1 %1431 }
 0x472   : > { %5543 = vrcp.f32 %v1432_v27 }
 0x474   : > { %v1435_v50 = vpop.xlane.xlu0 %1434 }
 0x475   : > { %5545 = vrcp.f32 %v1435_v50 }
 0x479   : > { %v1438_v33 = vpop.xlane.xlu1 %1437 }
 0x47a   : > { %5547 = vrcp.f32 %v1438_v33 }
 0x47c   : > { %v5544_v39 = vpop.eup %5543 }
 0x47d   : > { %v1441_v16 = vpop.xlane.xlu0 %1440  ;;  %v1487_v52 = vmul.f32 %v5544_v39, %v6949_v47  ;;  %v1486_v11 = vmul.f32 %v5544_v39, %v6947_v17 }
 0x47e   : > { %5549 = vrcp.f32 %v1441_v16 }
 0x47f   : > { %v5546_v9 = vpop.eup %5545 }
 0x480   : > { %v1489_v44 = vmul.f32 %v5546_v9, %v6957_v55  ;;  %v1488_v41 = vmul.f32 %v5546_v9, %v6955_v4 }
 0x481   : > { %v1444_v59 = vpop.xlane.xlu1 %1443 }
 0x482   : > { %v1511_v40 = vpack.c.bf16 %v1489_v44, %v1487_v52  ;;  %v1510_v32 = vpack.c.bf16 %v1488_v41, %v1486_v11  ;;  %5551 = vrcp.f32 %v1444_v59 }
 0x484   : > { %1532 = vmatprep.subr.bf16.mxu1 %v1511_v40  ;;  %v5548_v46 = vpop.eup %5547 }
 0x485   : > { %1533 = vmatpush1.bf16.xpose.msra.mxu1 %v1510_v32  ;;  %v1491_v53 = vmul.f32 %v5548_v46, %v6969_v6  ;;  %v1490_v55 = vmul.f32 %v5548_v46, %v6967_v63 }
 0x486   : > { %v1447_v36 = vpop.xlane.xlu0 %1446 }
 0x487   : > { %5553 = vrcp.f32 %v1447_v36 }
 0x488   : > { %v5550_v7 = vpop.eup %5549 }
 0x489   : > { %v1450_v56 = vpop.xlane.xlu1 %1449  ;;  %v1493_v47 = vmul.f32 %v5550_v7, %v6977_v25  ;;  %v1492_v17 = vmul.f32 %v5550_v7, %v6975_v12 }
 0x48a   : > { %5555 = vrcp.f32 %v1450_v56 }
 0x48b   : > { %v1513_v4 = vpack.c.bf16 %v1493_v47, %v1491_v53  ;;  %v1512_v21 = vpack.c.bf16 %v1492_v17, %v1490_v55 }
 0x48c   : > { %v5552_v26 = vpop.eup %5551 }
 0x48d   : > { %1534 = vmatprep.subr.bf16.mxu1 %v1513_v4  ;;  %v1495_v60 = vmul.f32 %v5552_v26, %v6989_v18  ;;  %v1494_v6 = vmul.f32 %v5552_v26, %v6987_v22  ;;  %v1718_v22 = vrot.slane %v1696_v10, 4 }
 0x48e   : > { %v1453_v35 = vpop.xlane.xlu0 %1452  ;;  %1535 = vmatpush1.bf16.xpose.msra.mxu1 %v1512_v21 }
 0x48f   : > { %5557 = vrcp.f32 %v1453_v35 }
 0x491   : > { %v5554_v24 = vpop.eup %5553 }
 0x492   : > { %v1497_v30 = vmul.f32 %v5554_v24, %v6995_v15  ;;  %v1496_v25 = vmul.f32 %v5554_v24, %v6993_v20  ;;  %v1089_v20 = vld [vmem:[#allocation4] sm:$0xc] }
 0x493   : > { %v1520_v23 = vrot.slane %v1089_v20, 2 }
 0x494   : > { %v1515_v63 = vpack.c.bf16 %v1497_v30, %v1495_v60  ;;  %v1514_v62 = vpack.c.bf16 %v1496_v25, %v1494_v6  ;;  %v5556_v12 = vpop.eup %5555 }
 0x495   : > { %v1499_v3 = vmul.f32 %v5556_v12, %v7005_v43  ;;  %v1498_v38 = vmul.f32 %v5556_v12, %v7003_v58  ;;  %v9200_v43 = vmov 0   ;;  %v1700_v58 = vpop.permute.xlu1 %1699 }
 0x496   : > { %1536 = vmatprep.subr.bf16.mxu1 %v1515_v63 }
 0x497   : > { %1537 = vmatpush1.bf16.xpose.msra.mxu1 %v1514_v62 }
 0x499   : > { %v5558_v1 = vpop.eup %5557 }
 0x49a   : > { %v1501_v28 = vmul.f32 %v5558_v1, %v7011_v34  ;;  %v1500_v18 = vmul.f32 %v5558_v1, %v7009_v13  ;;  %v1702_v13 = vpop.permute.xlu0 %1701  ;;  %v1704_v34 = vpop.permute.xlu1 %1703 }
 0x49c   : > { %v1517_v15 = vpack.c.bf16 %v1501_v28, %v1499_v3  ;;  %v1516_v45 = vpack.c.bf16 %v1500_v18, %v1498_v38 }
 0x49e   : > { %1538 = vmatprep.subr.bf16.mxu1 %v1517_v15  ;;  %v1706_v19 = vpop.permute.xlu1 %1705  ;;  %v1708_v61 = vpop.permute.xlu0 %1707 }
 0x49f   : > { %1539 = vmatpush1.bf16.xpose.msra.mxu1 %v1516_v45 }
 0x4a0   : > { %5086 = vmatprep.subr.msk.bf16.mxu1 %vm666_vm1, %v1718_v22 }
 0x4a2   : > { %v1710_v57 = vpop.permute.xlu1 %1709  ;;  %v1712_v29 = vpop.permute.xlu0 %1711 }
 0x4a6   : > { %1557 = vmatmul.mubr.bf16.vlgmr.msra.gmra.mrb[36].mxu1 %v1520_v23  ;;  %v1714_v37 = vpop.permute.xlu1 %1713 }
 0x4a7   : > { %1750 = vmatpush1.bf16.msra.mxu1 %v1744_v42  ;;  %1781 = vmatprep.mubr.bf16.mxu1 %v9200_v43 }
 0x4ae   : > { %5087 = vmatmul.mubr.msk.bf16.vlgmr.msra.gmra.mrb[40].mxu1 %vm641_vm2, %v1700_v58 }
 0x4af   : > { %1791 = vmatprep.mubr.bf16.mxu1 %v9200_v43 }
 0x4b6   : > { %5088 = vmatmul.mubr.msk.bf16.gmra.mrb[44].mxu1 %vm641_vm2, %v1702_v13 }
 0x4b7   : > { %1801 = vmatprep.mubr.bf16.mxu1 %v9200_v43 }
 0x4be   : > { %5089 = vmatmul.mubr.msk.bf16.gmra.mrb[48].mxu1 %vm641_vm2, %v1704_v34 }
 0x4bf   : > { %1811 = vmatprep.mubr.bf16.mxu1 %v9200_v43 }
 0x4c6   : > { %5090 = vmatmul.mubr.msk.bf16.gmra.mrb[52].mxu1 %vm641_vm2, %v1706_v19 }
 0x4c7   : > { %1821 = vmatprep.mubr.bf16.mxu1 %v9200_v43 }
 0x4ce   : > { %5091 = vmatmul.mubr.msk.bf16.gmra.mrb[56].mxu1 %vm641_vm2, %v1708_v61 }
 0x4cf   : > { %1831 = vmatprep.mubr.bf16.mxu1 %v9200_v43 }
 0x4d6   : > { %5092 = vmatmul.mubr.msk.bf16.gmra.mrb[60].mxu1 %vm641_vm2, %v1710_v57 }
 0x4d7   : > { %1841 = vmatprep.mubr.bf16.mxu1 %v9200_v43 }
 0x4de   : > { %5093 = vmatmul.mubr.msk.bf16.gmra.mrb[64].mxu1 %vm641_vm2, %v1712_v29 }
 0x4df   : > { %1851 = vmatprep.mubr.bf16.mxu1 %v9200_v43 }
 0x4e6   : > { %5094 = vmatmul.mubr.msk.bf16.gmra.mrb[68].mxu1 %vm641_vm2, %v1714_v37 }
 0x4f7   : > { %v1076_v27 = vpop.f32.mrb[32].mxu1 }
 0x4f8   : > { %v1078_v50 = vpop.f32.mrb[33].mxu1  ;;  %v7121_v11 = vpack.c.bf16 %v1076_v27, %v1076_v27 }
 0x4f9   : > { %v1079_v33 = vpop.f32.mrb[34].mxu1 }
 0x4fa   : > { %v1080_v39 = vpop.f32.mrb[35].mxu1 }
 0x579   : > { %v1558_v16 = vpop.f32.mrb[36].mxu1 }
 0x57a   : > { %v1564_v9 = vpack.c.bf16 %v1558_v16, %v1558_v16  ;;  %v1560_v52 = vpop.f32.mrb[37].mxu1 }
 0x57b   : > { %v1561_v44 = vpop.f32.mrb[38].mxu1 }
 0x57c   : > { %v1586_v41 = vsel %vm666_vm1, %v1564_v9, 0  ;;  %v1562_v59 = vpop.f32.mrb[39].mxu1  ;;  %5263 = vmatprep.subr.msk.bf16.mxu0 %vm666_vm1, %v1564_v9 }
 0x57d   : > { %5184 = vmatpush3.bf16.msra.mxu0 %v1586_v41 }
 0x57e   : > { %5264 = vmatprep.subr.msk.bf16.mxu0 %vm666_vm1, %v7121_v11 }
 0x581   : > { %v7127_v40 = vpop.f32.mrb[40].mxu1 }
 0x582   : > { %v7129_v32 = vpop.f32.mrb[41].mxu1 }
 0x583   : > { %v7131_v36 = vpop.f32.mrb[42].mxu1  ;;  %v1862_v46 = vmax.f32 %v7127_v40, %v7129_v32 }
 0x584   : > { %v7135_v7 = vpop.f32.mrb[43].mxu1 }
 0x585   : > { %1863 = vmax.xlane.f32.xlu0 %v1862_v46  ;;  %v1865_v56 = vmax.f32 %v7131_v36, %v7135_v7 }
 0x587   : > { %1866 = vmax.xlane.f32.xlu1 %v1865_v56 }
 0x589   : > { %v7139_v53 = vpop.f32.mrb[44].mxu1 }
 0x58a   : > { %v7141_v47 = vpop.f32.mrb[45].mxu1 }
 0x58b   : > { %v7143_v55 = vpop.f32.mrb[46].mxu1  ;;  %v1868_v17 = vmax.f32 %v7139_v53, %v7141_v47 }
 0x58c   : > { %v7147_v4 = vpop.f32.mrb[47].mxu1 }
 0x58d   : > { %1869 = vmax.xlane.f32.xlu0 %v1868_v17  ;;  %v1871_v21 = vmax.f32 %v7143_v55, %v7147_v4 }
 0x591   : > { %1872 = vmax.xlane.f32.xlu0 %v1871_v21  ;;  %v7151_v35 = vpop.f32.mrb[48].mxu1 }
 0x592   : > { %v7153_v26 = vpop.f32.mrb[49].mxu1 }
 0x593   : > { %v7155_v24 = vpop.f32.mrb[50].mxu1  ;;  %v1874_v60 = vmax.f32 %v7151_v35, %v7153_v26 }
 0x594   : > { %v7159_v30 = vpop.f32.mrb[51].mxu1 }
 0x595   : > { %1875 = vmax.xlane.f32.xlu1 %v1874_v60  ;;  %v1877_v6 = vmax.f32 %v7155_v24, %v7159_v30 }
 0x597   : > { %1878 = vmax.xlane.f32.xlu0 %v1877_v6 }
 0x599   : > { %v7163_v25 = vpop.f32.mrb[52].mxu1 }
 0x59a   : > { %v7165_v63 = vpop.f32.mrb[53].mxu1 }
 0x59b   : > { %v7167_v62 = vpop.f32.mrb[54].mxu1  ;;  %v1880_v12 = vmax.f32 %v7163_v25, %v7165_v63 }
 0x59c   : > { %v7171_v1 = vpop.f32.mrb[55].mxu1 }
 0x59d   : > { %1881 = vmax.xlane.f32.xlu1 %v1880_v12  ;;  %v1883_v10 = vmax.f32 %v7167_v62, %v7171_v1 }
 0x59f   : > { %1884 = vmax.xlane.f32.xlu0 %v1883_v10 }
 0x5a1   : > { %v7175_v3 = vpop.f32.mrb[56].mxu1 }
 0x5a2   : > { %v7177_v28 = vpop.f32.mrb[57].mxu1 }
 0x5a3   : > { %v7179_v38 = vpop.f32.mrb[58].mxu1  ;;  %v1886_v18 = vmax.f32 %v7175_v3, %v7177_v28 }
 0x5a4   : > { %v7183_v15 = vpop.f32.mrb[59].mxu1 }
 0x5a5   : > { %1887 = vmax.xlane.f32.xlu1 %v1886_v18  ;;  %v1889_v45 = vmax.f32 %v7179_v38, %v7183_v15 }
 0x5a7   : > { %1890 = vmax.xlane.f32.xlu0 %v1889_v45 }
 0x5a9   : > { %v7187_v22 = vpop.f32.mrb[60].mxu1 }
 0x5aa   : > { %v7189_v54 = vpop.f32.mrb[61].mxu1 }
 0x5ab   : > { %v7191_v20 = vpop.f32.mrb[62].mxu1  ;;  %v1892_v2 = vmax.f32 %v7187_v22, %v7189_v54 }
 0x5ac   : > { %v7195_v23 = vpop.f32.mrb[63].mxu1 }
 0x5ad   : > { %1893 = vmax.xlane.f32.xlu1 %v1892_v2  ;;  %v1895_v42 = vmax.f32 %v7191_v20, %v7195_v23 }
 0x5af   : > { %1896 = vmax.xlane.f32.xlu0 %v1895_v42 }
 0x5b1   : > { %v7199_v58 = vpop.f32.mrb[64].mxu1 }
 0x5b2   : > { %v7201_v13 = vpop.f32.mrb[65].mxu1 }
 0x5b3   : > { %v7203_v34 = vpop.f32.mrb[66].mxu1  ;;  %v1898_v19 = vmax.f32 %v7199_v58, %v7201_v13 }
 0x5b4   : > { %v7207_v61 = vpop.f32.mrb[67].mxu1 }
 0x5b5   : > { %1899 = vmax.xlane.f32.xlu1 %v1898_v19  ;;  %v1901_v57 = vmax.f32 %v7203_v34, %v7207_v61 }
 0x5b7   : > { %1902 = vmax.xlane.f32.xlu0 %v1901_v57 }
 0x5b9   : > { %v7211_v29 = vpop.f32.mrb[68].mxu1 }
 0x5ba   : > { %v7213_v37 = vpop.f32.mrb[69].mxu1 }
 0x5bb   : > { %v7215_v27 = vpop.f32.mrb[70].mxu1  ;;  %v1904_v50 = vmax.f32 %v7211_v29, %v7213_v37 }
 0x5bc   : > { %v7219_v33 = vpop.f32.mrb[71].mxu1 }
 0x5bd   : > { %1905 = vmax.xlane.f32.xlu1 %v1904_v50  ;;  %v1907_v39 = vmax.f32 %v7215_v27, %v7219_v33 }
 0x5bf   : > { %1908 = vmax.xlane.f32.xlu0 %v1907_v39 }
 0x612   : > { %v1864_v16 = vpop.xlane.xlu0 %1863 }
 0x613   : > { %v1910_v9 = vsub.f32 %v7127_v40, %v1864_v16  ;;  %v1911_v52 = vsub.f32 %v7129_v32, %v1864_v16 }
 0x614   : > { %v1867_v44 = vpop.xlane.xlu1 %1866 }
 0x615   : > { %v1942_v41 = vmul.f32 1.442695, %v1910_v9  ;;  %v1944_v59 = vmul.f32 1.442695, %v1911_v52  ;;  %v1912_v46 = vsub.f32 %v7131_v36, %v1867_v44  ;;  %v1913_v56 = vsub.f32 %v7135_v7, %v1867_v44 }
 0x617   : > { %5559 = vpow2.f32 %v1942_v41  ;;  %v1946_v17 = vmul.f32 1.442695, %v1912_v46  ;;  %v1948_v21 = vmul.f32 1.442695, %v1913_v56 }
 0x618   : > { %5561 = vpow2.f32 %v1944_v59 }
 0x619   : > { %5563 = vpow2.f32 %v1946_v17 }
 0x61a   : > { %5565 = vpow2.f32 %v1948_v21  ;;  %v1870_v60 = vpop.xlane.xlu0 %1869 }
 0x61b   : > { %v1914_v6 = vsub.f32 %v7139_v53, %v1870_v60  ;;  %v1915_v40 = vsub.f32 %v7141_v47, %v1870_v60 }
 0x61d   : > { %v1950_v12 = vmul.f32 1.442695, %v1914_v6  ;;  %v1952_v32 = vmul.f32 1.442695, %v1915_v40 }
 0x61e   : > { %v1873_v10 = vpop.xlane.xlu0 %1872 }
 0x61f   : > { %5567 = vpow2.f32 %v1950_v12  ;;  %v1916_v18 = vsub.f32 %v7143_v55, %v1873_v10  ;;  %v1917_v36 = vsub.f32 %v7147_v4, %v1873_v10 }
 0x620   : > { %5569 = vpow2.f32 %v1952_v32 }
 0x621   : > { %v7231_v7 = vpop.eup %5559  ;;  %v1954_v45 = vmul.f32 1.442695, %v1916_v18  ;;  %v1956_v2 = vmul.f32 1.442695, %v1917_v36 }
 0x622   : > { %v7233_v42 = vpop.eup %5561  ;;  %v1876_v19 = vpop.xlane.xlu1 %1875 }
 0x623   : > { %v7235_v57 = vpop.eup %5563  ;;  %5571 = vpow2.f32 %v1954_v45  ;;  %v1918_v53 = vsub.f32 %v7151_v35, %v1876_v19  ;;  %v1919_v47 = vsub.f32 %v7153_v26, %v1876_v19  ;;  %v2006_v55 = vadd.f32 %v7233_v42, %v7231_v7 }
 0x624   : > { %v7241_v50 = vpop.eup %5565  ;;  %5573 = vpow2.f32 %v1956_v2  ;;  %v1879_v4 = vpop.xlane.xlu0 %1878 }
 0x625   : > { %v1958_v39 = vmul.f32 1.442695, %v1918_v53  ;;  %v1960_v16 = vmul.f32 1.442695, %v1919_v47  ;;  %2007 = vadd.xlane.f32.xlu1 %v2006_v55  ;;  %v1920_v9 = vsub.f32 %v7155_v24, %v1879_v4  ;;  %v1921_v52 = vsub.f32 %v7159_v30, %v1879_v4 }
 0x626   : > { %v2009_v44 = vadd.f32 %v7241_v50, %v7235_v57 }
 0x627   : > { %5575 = vpow2.f32 %v1958_v39  ;;  %v1962_v35 = vmul.f32 1.442695, %v1920_v9  ;;  %v1964_v26 = vmul.f32 1.442695, %v1921_v52 }
 0x628   : > { %5577 = vpow2.f32 %v1960_v16  ;;  %2010 = vadd.xlane.f32.xlu0 %v2009_v44 }
 0x629   : > { %v7247_v41 = vpop.eup %5567  ;;  %5579 = vpow2.f32 %v1962_v35 }
 0x62a   : > { %v7249_v59 = vpop.eup %5569  ;;  %5581 = vpow2.f32 %v1964_v26  ;;  %v1882_v46 = vpop.xlane.xlu1 %1881 }
 0x62b   : > { %v1922_v56 = vsub.f32 %v7163_v25, %v1882_v46  ;;  %v1923_v24 = vsub.f32 %v7165_v63, %v1882_v46  ;;  %v2012_v30 = vadd.f32 %v7249_v59, %v7247_v41 }
 0x62c   : > { %v1885_v17 = vpop.xlane.xlu0 %1884 }
 0x62d   : > { %v7255_v21 = vpop.eup %5571  ;;  %v1966_v60 = vmul.f32 1.442695, %v1922_v56  ;;  %v1968_v6 = vmul.f32 1.442695, %v1923_v24  ;;  %2013 = vadd.xlane.f32.xlu1 %v2012_v30  ;;  %v1924_v40 = vsub.f32 %v7167_v62, %v1885_v17  ;;  %v1925_v12 = vsub.f32 %v7171_v1, %v1885_v17 }
 0x62e   : > { %v7259_v32 = vpop.eup %5573 }
 0x62f   : > { %5583 = vpow2.f32 %v1966_v60  ;;  %v1970_v10 = vmul.f32 1.442695, %v1924_v40  ;;  %v1972_v25 = vmul.f32 1.442695, %v1925_v12  ;;  %v2015_v63 = vadd.f32 %v7259_v32, %v7255_v21 }
 0x630   : > { %5585 = vpow2.f32 %v1968_v6 }
 0x631   : > { %v7263_v18 = vpop.eup %5575  ;;  %5587 = vpow2.f32 %v1970_v10  ;;  %2016 = vadd.xlane.f32.xlu0 %v2015_v63 }
 0x632   : > { %v7265_v36 = vpop.eup %5577  ;;  %5589 = vpow2.f32 %v1972_v25  ;;  %v1888_v45 = vpop.xlane.xlu1 %1887 }
 0x633   : > { %v7267_v62 = vpop.eup %5579  ;;  %v1926_v1 = vsub.f32 %v7175_v3, %v1888_v45  ;;  %v1927_v2 = vsub.f32 %v7177_v28, %v1888_v45  ;;  %v2018_v19 = vadd.f32 %v7265_v36, %v7263_v18 }
 0x634   : > { %v7273_v53 = vpop.eup %5581  ;;  %v1891_v47 = vpop.xlane.xlu0 %1890 }
 0x635   : > { %v1974_v55 = vmul.f32 1.442695, %v1926_v1  ;;  %v1976_v4 = vmul.f32 1.442695, %v1927_v2  ;;  %2019 = vadd.xlane.f32.xlu1 %v2018_v19  ;;  %v1928_v39 = vsub.f32 %v7179_v38, %v1891_v47  ;;  %v1929_v16 = vsub.f32 %v7183_v15, %v1891_v47 }
 0x636   : > { %v2021_v9 = vadd.f32 %v7273_v53, %v7267_v62 }
 0x637   : > { %5591 = vpow2.f32 %v1974_v55  ;;  %v1978_v3 = vmul.f32 1.442695, %v1928_v39  ;;  %v1980_v52 = vmul.f32 1.442695, %v1929_v16 }
 0x638   : > { %5593 = vpow2.f32 %v1976_v4  ;;  %2022 = vadd.xlane.f32.xlu0 %v2021_v9 }
 0x639   : > { %v7279_v28 = vpop.eup %5583  ;;  %5595 = vpow2.f32 %v1978_v3 }
 0x63a   : > { %v7281_v44 = vpop.eup %5585  ;;  %5597 = vpow2.f32 %v1980_v52  ;;  %v1894_v35 = vpop.xlane.xlu1 %1893 }
 0x63b   : > { %v7283_v26 = vpop.eup %5587  ;;  %v1930_v38 = vsub.f32 %v7187_v22, %v1894_v35  ;;  %v1931_v15 = vsub.f32 %v7189_v54, %v1894_v35  ;;  %v2024_v46 = vadd.f32 %v7281_v44, %v7279_v28 }
 0x63c   : > { %v7289_v56 = vpop.eup %5589  ;;  %v1897_v24 = vpop.xlane.xlu0 %1896 }
 0x63d   : > { %v1982_v30 = vmul.f32 1.442695, %v1930_v38  ;;  %v1984_v17 = vmul.f32 1.442695, %v1931_v15  ;;  %2025 = vadd.xlane.f32.xlu1 %v2024_v46  ;;  %v1932_v60 = vsub.f32 %v7191_v20, %v1897_v24  ;;  %v1933_v6 = vsub.f32 %v7195_v23, %v1897_v24 }
 0x63e   : > { %v2027_v40 = vadd.f32 %v7289_v56, %v7283_v26 }
 0x63f   : > { %5599 = vpow2.f32 %v1982_v30  ;;  %v1986_v22 = vmul.f32 1.442695, %v1932_v60  ;;  %v1988_v12 = vmul.f32 1.442695, %v1933_v6 }
 0x640   : > { %5601 = vpow2.f32 %v1984_v17  ;;  %2028 = vadd.xlane.f32.xlu0 %v2027_v40 }
 0x641   : > { %v7295_v54 = vpop.eup %5591  ;;  %5603 = vpow2.f32 %v1986_v22 }
 0x642   : > { %v7297_v10 = vpop.eup %5593  ;;  %5605 = vpow2.f32 %v1988_v12  ;;  %v1900_v25 = vpop.xlane.xlu1 %1899 }
 0x643   : > { %v7299_v63 = vpop.eup %5595  ;;  %v1934_v20 = vsub.f32 %v7199_v58, %v1900_v25  ;;  %v1935_v23 = vsub.f32 %v7201_v13, %v1900_v25  ;;  %v2030_v45 = vadd.f32 %v7297_v10, %v7295_v54 }
 0x644   : > { %v7305_v1 = vpop.eup %5597  ;;  %v1903_v2 = vpop.xlane.xlu0 %1902 }
 0x645   : > { %v1990_v19 = vmul.f32 1.442695, %v1934_v20  ;;  %v1992_v47 = vmul.f32 1.442695, %v1935_v23  ;;  %2031 = vadd.xlane.f32.xlu1 %v2030_v45  ;;  %v1936_v55 = vsub.f32 %v7203_v34, %v1903_v2  ;;  %v1937_v4 = vsub.f32 %v7207_v61, %v1903_v2 }
 0x646   : > { %v2033_v39 = vadd.f32 %v7305_v1, %v7299_v63 }
 0x647   : > { %5607 = vpow2.f32 %v1990_v19  ;;  %v1994_v58 = vmul.f32 1.442695, %v1936_v55  ;;  %v1996_v16 = vmul.f32 1.442695, %v1937_v4  ;;  %v7361_v55 = vld [vmem:[%s9082_s3 + $0x8] sm:$0xff]  }
 0x648   : > { %5609 = vpow2.f32 %v1992_v47  ;;  %2034 = vadd.xlane.f32.xlu0 %v2033_v39  ;;  %v7354_v47 = vld [vmem:[%s9082_s3] sm:$0xff]   ;;  %v1698_v4 = vld [vmem:[#allocation4 + $0x8] sm:$0x30] }
 0x649   : > { %v7311_v13 = vpop.eup %5599  ;;  %5611 = vpow2.f32 %v1994_v58  ;;  %v2121_v39 = vrot.slane %v1698_v4, 4 }
 0x64a   : > { %v7313_v9 = vpop.eup %5601  ;;  %5613 = vpow2.f32 %v1996_v16  ;;  %v1906_v3 = vpop.xlane.xlu1 %1905 }
 0x64b   : > { %v7315_v52 = vpop.eup %5603  ;;  %v1938_v34 = vsub.f32 %v7211_v29, %v1906_v3  ;;  %v1939_v61 = vsub.f32 %v7213_v37, %v1906_v3  ;;  %v2036_v35 = vadd.f32 %v7313_v9, %v7311_v13  ;;  %2156 = vmatprep.mubr.bf16.mxu1 %v2121_v39 }
 0x64c   : > { %v7321_v38 = vpop.eup %5605  ;;  %v1909_v15 = vpop.xlane.xlu0 %1908 }
 0x64d   : > { %v1998_v46 = vmul.f32 1.442695, %v1938_v34  ;;  %v2000_v24 = vmul.f32 1.442695, %v1939_v61  ;;  %2037 = vadd.xlane.f32.xlu1 %v2036_v35  ;;  %v1940_v30 = vsub.f32 %v7215_v27, %v1909_v15  ;;  %v1941_v17 = vsub.f32 %v7219_v33, %v1909_v15 }
 0x64e   : > { %v2039_v60 = vadd.f32 %v7321_v38, %v7315_v52 }
 0x64f   : > { %5615 = vpow2.f32 %v1998_v46  ;;  %v2002_v29 = vmul.f32 1.442695, %v1940_v30  ;;  %v2004_v6 = vmul.f32 1.442695, %v1941_v17 }
 0x650   : > { %5617 = vpow2.f32 %v2000_v24  ;;  %2040 = vadd.xlane.f32.xlu0 %v2039_v60 }
 0x651   : > { %v7327_v37 = vpop.eup %5607  ;;  %5619 = vpow2.f32 %v2002_v29 }
 0x652   : > { %v7329_v40 = vpop.eup %5609  ;;  %5621 = vpow2.f32 %v2004_v6 }
 0x653   : > { %v7331_v22 = vpop.eup %5611  ;;  %v2042_v27 = vadd.f32 %v7329_v40, %v7327_v37 }
 0x654   : > { %v7335_v33 = vpop.eup %5613 }
 0x655   : > { %2043 = vadd.xlane.f32.xlu1 %v2042_v27  ;;  %v2045_v12 = vadd.f32 %v7335_v33, %v7331_v22 }
 0x657   : > { %2046 = vadd.xlane.f32.xlu0 %v2045_v12 }
 0x659   : > { %v7339_v25 = vpop.eup %5615 }
 0x65a   : > { %v7341_v20 = vpop.eup %5617 }
 0x65b   : > { %v7343_v23 = vpop.eup %5619  ;;  %v2048_v45 = vadd.f32 %v7341_v20, %v7339_v25 }
 0x65c   : > { %v7347_v2 = vpop.eup %5621 }
 0x65d   : > { %2049 = vadd.xlane.f32.xlu1 %v2048_v45  ;;  %v2051_v19 = vadd.f32 %v7347_v2, %v7343_v23 }
 0x65f   : > { %2052 = vadd.xlane.f32.xlu0 %v2051_v19 }
 0x66e   : > { %1575 = vrot.lane.b32.xlu1 %v7354_v47, %s6263_s30 }
 0x672   : > { %2165 = vrot.lane.b32.xlu1 %v7354_v47, %s6264_s8 }
 0x675   : > { %1577 = vrot.lane.b32.xlu0 %v7361_v55, %s6263_s30 }
 0x676   : > { %2167 = vrot.lane.b32.xlu1 %v7361_v55, %s6264_s8 }
 0x679   : > { %2235 = vrot.lane.b32.xlu0 %v7026_v51, %s6265_s15 }
 0x67a   : > { %2237 = vrot.lane.b32.xlu1 %v7046_v31, %s6265_s15 }
 0x67d   : > { %2771 = vrot.lane.b32.xlu0 %v7026_v51, %s6266_s16 }
 0x67e   : > { %2239 = vrot.lane.b32.xlu1 %v7033_v49, %s6265_s15 }
 0x681   : > { %2773 = vrot.lane.b32.xlu0 %v7046_v31, %s6266_s16 }
 0x682   : > { %2241 = vrot.lane.b32.xlu1 %v7040_v0, %s6265_s15 }
 0x685   : > { %2775 = vrot.lane.b32.xlu0 %v7033_v49, %s6266_s16 }
 0x686   : > { %2243 = vrot.lane.b32.xlu1 %v7057_v14, %s6265_s15 }
 0x689   : > { %2777 = vrot.lane.b32.xlu0 %v7040_v0, %s6266_s16 }
 0x68a   : > { %2245 = vrot.lane.b32.xlu1 %v7052_v8, %s6265_s15 }
 0x68d   : > { %2779 = vrot.lane.b32.xlu0 %v7057_v14, %s6266_s16 }
 0x68e   : > { %2247 = vrot.lane.b32.xlu1 %v7067_v48, %s6265_s15 }
 0x691   : > { %2781 = vrot.lane.b32.xlu0 %v7052_v8, %s6266_s16 }
 0x692   : > { %2249 = vrot.lane.b32.xlu1 %v7062_v5, %s6265_s15 }
 0x695   : > { %2783 = vrot.lane.b32.xlu0 %v7067_v48, %s6266_s16 }
 0x696   : > { %2785 = vrot.lane.b32.xlu1 %v7062_v5, %s6266_s16 }
 0x6b2   : > { %v2008_v51 = vpop.xlane.xlu1 %2007 }
 0x6b3   : > { %5623 = vrcp.f32 %v2008_v51 }
 0x6b5   : > { %v2011_v49 = vpop.xlane.xlu0 %2010 }
 0x6b6   : > { %5625 = vrcp.f32 %v2011_v49 }
 0x6ba   : > { %v2014_v0 = vpop.xlane.xlu1 %2013 }
 0x6bb   : > { %5627 = vrcp.f32 %v2014_v0 }
 0x6bd   : > { %v5624_v31 = vpop.eup %5623 }
 0x6be   : > { %v2017_v14 = vpop.xlane.xlu0 %2016  ;;  %v2071_v8 = vmul.f32 %v5624_v31, %v7233_v42  ;;  %v2070_v3 = vmul.f32 %v5624_v31, %v7231_v7 }
 0x6bf   : > { %5629 = vrcp.f32 %v2017_v14 }
 0x6c0   : > { %v5626_v58 = vpop.eup %5625 }
 0x6c1   : > { %v2073_v16 = vmul.f32 %v5626_v58, %v7241_v50  ;;  %v2072_v48 = vmul.f32 %v5626_v58, %v7235_v57 }
 0x6c2   : > { %v2020_v34 = vpop.xlane.xlu1 %2019 }
 0x6c3   : > { %v2103_v5 = vpack.c.bf16 %v2073_v16, %v2071_v8  ;;  %v2102_v61 = vpack.c.bf16 %v2072_v48, %v2070_v3  ;;  %5631 = vrcp.f32 %v2020_v34 }
 0x6c5   : > { %2124 = vmatprep.subr.bf16.mxu1 %v2103_v5  ;;  %v2023_v35 = vpop.xlane.xlu0 %2022  ;;  %v5628_v15 = vpop.eup %5627 }
 0x6c6   : > { %5633 = vrcp.f32 %v2023_v35  ;;  %2125 = vmatpush1.bf16.xpose.msra.mxu1 %v2102_v61  ;;  %v2075_v30 = vmul.f32 %v5628_v15, %v7249_v59  ;;  %v2074_v50 = vmul.f32 %v5628_v15, %v7247_v41 }
 0x6c9   : > { %v5630_v46 = vpop.eup %5629 }
 0x6ca   : > { %v2026_v24 = vpop.xlane.xlu1 %2025  ;;  %v2077_v42 = vmul.f32 %v5630_v46, %v7259_v32  ;;  %v2076_v7 = vmul.f32 %v5630_v46, %v7255_v21 }
 0x6cb   : > { %5635 = vrcp.f32 %v2026_v24 }
 0x6cc   : > { %v2105_v57 = vpack.c.bf16 %v2077_v42, %v2075_v30  ;;  %v2104_v17 = vpack.c.bf16 %v2076_v7, %v2074_v50  ;;  %v1644_v50 = vsel %vm666_vm1, %v7121_v11, 0 }
 0x6cd   : > { %v2029_v60 = vpop.xlane.xlu0 %2028  ;;  %v5632_v29 = vpop.eup %5631 }
 0x6ce   : > { %5637 = vrcp.f32 %v2029_v60  ;;  %2126 = vmatprep.subr.bf16.mxu1 %v2105_v57  ;;  %v2079_v27 = vmul.f32 %v5632_v29, %v7265_v36  ;;  %v2078_v41 = vmul.f32 %v5632_v29, %v7263_v18 }
 0x6cf   : > { %2127 = vmatpush1.bf16.xpose.msra.mxu1 %v2104_v17 }
 0x6d0   : > { %v5634_v6 = vpop.eup %5633 }
 0x6d1   : > { %v2081_v12 = vmul.f32 %v5634_v6, %v7273_v53  ;;  %v2080_v59 = vmul.f32 %v5634_v6, %v7267_v62 }
 0x6d2   : > { %v2032_v32 = vpop.xlane.xlu1 %2031 }
 0x6d3   : > { %v2107_v45 = vpack.c.bf16 %v2081_v12, %v2079_v27  ;;  %5639 = vrcp.f32 %v2032_v32  ;;  %v2106_v19 = vpack.c.bf16 %v2080_v59, %v2078_v41 }
 0x6d5   : > { %2128 = vmatprep.subr.bf16.mxu1 %v2107_v45  ;;  %v2035_v21 = vpop.xlane.xlu0 %2034  ;;  %v5636_v4 = vpop.eup %5635 }
 0x6d6   : > { %5641 = vrcp.f32 %v2035_v21  ;;  %v2083_v51 = vmul.f32 %v5636_v4, %v7281_v44  ;;  %v2082_v0 = vmul.f32 %v5636_v4, %v7279_v28 }
 0x6d7   : > { %2129 = vmatpush1.bf16.xpose.msra.mxu1 %v2106_v19 }
 0x6d8   : > { %v5638_v39 = vpop.eup %5637 }
 0x6d9   : > { %v2085_v36 = vmul.f32 %v5638_v39, %v7289_v56  ;;  %v2084_v53 = vmul.f32 %v5638_v39, %v7283_v26 }
 0x6da   : > { %v2038_v49 = vpop.xlane.xlu1 %2037 }
 0x6db   : > { %v2109_v62 = vpack.c.bf16 %v2085_v36, %v2083_v51  ;;  %5643 = vrcp.f32 %v2038_v49  ;;  %v2108_v31 = vpack.c.bf16 %v2084_v53, %v2082_v0 }
 0x6dd   : > { %2130 = vmatprep.subr.bf16.mxu1 %v2109_v62  ;;  %v2041_v18 = vpop.xlane.xlu0 %2040  ;;  %v5640_v14 = vpop.eup %5639 }
 0x6de   : > { %5645 = vrcp.f32 %v2041_v18  ;;  %v2087_v8 = vmul.f32 %v5640_v14, %v7297_v10  ;;  %v2086_v3 = vmul.f32 %v5640_v14, %v7295_v54  ;;  %v2231_v14 = vld [vmem:[#allocation3] sm:$0xc0] }
 0x6df   : > { %2131 = vmatpush1.bf16.xpose.msra.mxu1 %v2108_v31  ;;  %v2232_v31 = vld [vmem:[#allocation3 + $0x8] sm:$0xc0] }
 0x6e0   : > { %v5642_v58 = vpop.eup %5641 }
 0x6e1   : > { %v2089_v44 = vmul.f32 %v5642_v58, %v7305_v1  ;;  %v2088_v56 = vmul.f32 %v5642_v58, %v7299_v63 }
 0x6e2   : > { %v2044_v16 = vpop.xlane.xlu1 %2043 }
 0x6e3   : > { %5647 = vrcp.f32 %v2044_v16  ;;  %v2111_v26 = vpack.c.bf16 %v2089_v44, %v2087_v8  ;;  %v2110_v48 = vpack.c.bf16 %v2088_v56, %v2086_v3  ;;  %v2254_v56 = vrot.slane %v2232_v31, 6 }
 0x6e4   : > { %v2047_v28 = vpop.xlane.xlu0 %2046  ;;  %v2253_v16 = vrot.slane %v2231_v14, 6 }
 0x6e5   : > { %2132 = vmatprep.subr.bf16.mxu1 %v2111_v26  ;;  %5649 = vrcp.f32 %v2047_v28  ;;  %v5644_v34 = vpop.eup %5643 }
 0x6e6   : > { %v2091_v61 = vmul.f32 %v5644_v34, %v7313_v9  ;;  %v2090_v15 = vmul.f32 %v5644_v34, %v7311_v13 }
 0x6e7   : > { %2133 = vmatpush1.bf16.xpose.msra.mxu1 %v2110_v48  ;;  %v2280_v48 = vsel %vm666_vm1, %v2253_v16, 0 }
 0x6e8   : > { %v5646_v5 = vpop.eup %5645 }
 0x6e9   : > { %v2093_v10 = vmul.f32 %v5646_v5, %v7321_v38  ;;  %v2092_v1 = vmul.f32 %v5646_v5, %v7315_v52 }
 0x6ea   : > { %v2050_v35 = vpop.xlane.xlu1 %2049 }
 0x6eb   : > { %5651 = vrcp.f32 %v2050_v35  ;;  %v2113_v63 = vpack.c.bf16 %v2093_v10, %v2091_v61  ;;  %v2112_v24 = vpack.c.bf16 %v2092_v1, %v2090_v15 }
 0x6ec   : > { %v2053_v46 = vpop.xlane.xlu0 %2052 }
 0x6ed   : > { %v5648_v54 = vpop.eup %5647  ;;  %2134 = vmatprep.subr.bf16.mxu1 %v2113_v63  ;;  %5653 = vrcp.f32 %v2053_v46 }
 0x6ee   : > { %v1576_v30 = vpop.permute.xlu1 %1575  ;;  %v2095_v38 = vmul.f32 %v5648_v54, %v7329_v40  ;;  %v2094_v57 = vmul.f32 %v5648_v54, %v7327_v37  ;;  %v1697_v37 = vld [vmem:[#allocation4] sm:$0x30] }
 0x6ef   : > { %v5650_v42 = vpop.eup %5649  ;;  %2135 = vmatpush1.bf16.xpose.msra.mxu1 %v2112_v24  ;;  %5185 = vmatprep.mubr.msk.bf16.mxu0 %vm641_vm2, %v1576_v30 }
 0x6f0   : > { %v1578_v9 = vpop.permute.xlu0 %1577  ;;  %v2097_v52 = vmul.f32 %v5650_v42, %v7335_v33  ;;  %v2096_v13 = vmul.f32 %v5650_v42, %v7331_v22 }
 0x6f1   : > { %5186 = vmatmul.mubr.msk.bf16.vlgmr.msra.gmra.mrb[32].mxu0 %vm641_vm2, %v1578_v9 }
 0x6f2   : > { %5190 = vmatpush3.bf16.msra.mxu0 %v1644_v50  ;;  %v2115_v7 = vpack.c.bf16 %v2097_v52, %v2095_v38  ;;  %5191 = vmatprep.mubr.msk.bf16.mxu0 %vm641_vm2, %v7354_v47  ;;  %v2114_v60 = vpack.c.bf16 %v2096_v13, %v2094_v57  ;;  %v2120_v47 = vrot.slane %v1697_v37, 4  ;;  %v2166_v12 = vpop.permute.xlu1 %2165 }
 0x6f4   : > { %2136 = vmatprep.subr.bf16.mxu1 %v2115_v7 }
 0x6f5   : > { %v5652_v17 = vpop.eup %5651 }
 0x6f6   : > { %v2099_v33 = vmul.f32 %v5652_v17, %v7341_v20  ;;  %v2098_v22 = vmul.f32 %v5652_v17, %v7339_v25  ;;  %v2236_v20 = vpop.permute.xlu0 %2235  ;;  %v2168_v45 = vpop.permute.xlu1 %2167 }
 0x6f7   : > { %v5654_v40 = vpop.eup %5653  ;;  %2137 = vmatpush1.bf16.xpose.msra.mxu1 %v2114_v60 }
 0x6f8   : > { %v2101_v11 = vmul.f32 %v5654_v40, %v7347_v2  ;;  %v2100_v29 = vmul.f32 %v5654_v40, %v7343_v23  ;;  %v2768_v2 = vld [vmem:[#allocation3 + $0x18] sm:$0x3]  ;;  %v2767_v23 = vld [vmem:[#allocation3 + $0x10] sm:$0x3] }
 0x6f9   : > { %v2812_v25 = vsel %vm666_vm1, %v2767_v23, 0 }
 0x6fa   : > { %v2117_v6 = vpack.c.bf16 %v2101_v11, %v2099_v33  ;;  %v2116_v27 = vpack.c.bf16 %v2100_v29, %v2098_v22  ;;  %v2772_v59 = vpop.permute.xlu0 %2771  ;;  %v2238_v21 = vpop.permute.xlu1 %2237 }
 0x6fc   : > { %2138 = vmatprep.subr.bf16.mxu1 %v2117_v6 }
 0x6fd   : > { %5192 = vmatmul.mubr.msk.bf16.vlgmr.msra.gmra.mrb[32].mxu0 %vm641_vm2, %v7361_v55 }
 0x6fe   : > { %5197 = vmatprep.mubr.msk.bf16.mxu0 %vm641_vm2, %v2166_v12  ;;  %v2774_v55 = vpop.permute.xlu0 %2773  ;;  %v2240_v19 = vpop.permute.xlu1 %2239 }
 0x6ff   : > { %2139 = vmatpush1.bf16.xpose.msra.mxu1 %v2116_v27 }
 0x700   : > { %5108 = vmatprep.subr.msk.bf16.mxu1 %vm666_vm1, %v2768_v2 }
 0x702   : > { %v2776_v32 = vpop.permute.xlu0 %2775  ;;  %v2242_v39 = vpop.permute.xlu1 %2241 }
 0x706   : > { %2157 = vmatmul.mubr.bf16.vlgmr.msra.gmra.mrb[72].mxu1 %v2120_v47  ;;  %v2778_v41 = vpop.permute.xlu0 %2777  ;;  %v2244_v51 = vpop.permute.xlu1 %2243 }
 0x707   : > { %2849 = vmatprep.mubr.bf16.mxu1 %v9200_v43  ;;  %2818 = vmatpush1.bf16.msra.mxu1 %v2812_v25 }
 0x70a   : > { %v2780_v4 = vpop.permute.xlu0 %2779  ;;  %v2246_v53 = vpop.permute.xlu1 %2245 }
 0x70e   : > { %5109 = vmatmul.mubr.msk.bf16.vlgmr.msra.gmra.mrb[76].mxu1 %vm641_vm2, %v2772_v59  ;;  %v2782_v36 = vpop.permute.xlu0 %2781  ;;  %v2248_v49 = vpop.permute.xlu1 %2247 }
 0x70f   : > { %2859 = vmatprep.mubr.bf16.mxu1 %v9200_v43 }
 0x712   : > { %v2784_v62 = vpop.permute.xlu0 %2783  ;;  %v2250_v0 = vpop.permute.xlu1 %2249 }
 0x716   : > { %5110 = vmatmul.mubr.msk.bf16.gmra.mrb[80].mxu1 %vm641_vm2, %v2774_v55  ;;  %v2786_v18 = vpop.permute.xlu1 %2785 }
 0x717   : > { %2869 = vmatprep.mubr.bf16.mxu1 %v9200_v43 }
 0x71e   : > { %5111 = vmatmul.mubr.msk.bf16.gmra.mrb[84].mxu1 %vm641_vm2, %v2776_v32 }
 0x71f   : > { %2879 = vmatprep.mubr.bf16.mxu1 %v9200_v43 }
 0x726   : > { %5112 = vmatmul.mubr.msk.bf16.gmra.mrb[88].mxu1 %vm641_vm2, %v2778_v41 }
 0x727   : > { %2889 = vmatprep.mubr.bf16.mxu1 %v9200_v43 }
 0x72e   : > { %5113 = vmatmul.mubr.msk.bf16.gmra.mrb[92].mxu1 %vm641_vm2, %v2780_v4 }
 0x72f   : > { %2899 = vmatprep.mubr.bf16.mxu1 %v9200_v43 }
 0x736   : > { %5114 = vmatmul.mubr.msk.bf16.gmra.mrb[96].mxu1 %vm641_vm2, %v2782_v36 }
 0x737   : > { %2909 = vmatprep.mubr.bf16.mxu1 %v9200_v43 }
 0x73e   : > { %5115 = vmatmul.mubr.msk.bf16.gmra.mrb[100].mxu1 %vm641_vm2, %v2784_v62 }
 0x73f   : > { %2919 = vmatprep.mubr.bf16.mxu1 %v9200_v43 }
 0x746   : > { %5116 = vmatmul.mubr.msk.bf16.gmra.mrb[104].mxu1 %vm641_vm2, %v2786_v18 }
 0x7d9   : > { %v2158_v58 = vpop.f32.mrb[72].mxu1 }
 0x7da   : > { %v2164_v8 = vpack.c.bf16 %v2158_v58, %v2158_v58  ;;  %v2160_v44 = vpop.f32.mrb[73].mxu1 }
 0x7db   : > { %v2161_v26 = vpop.f32.mrb[74].mxu1 }
 0x7dc   : > { %v2176_v3 = vsel %vm666_vm1, %v2164_v8, 0  ;;  %v2162_v28 = vpop.f32.mrb[75].mxu1  ;;  %5265 = vmatprep.subr.msk.bf16.mxu0 %vm666_vm1, %v2164_v8 }
 0x7dd   : > { %5196 = vmatpush3.bf16.msra.mxu0 %v2176_v3 }
 0x7de   : > { %5097 = vmatprep.subr.msk.bf16.mxu0 %vm666_vm1, %v2254_v56 }
 0x7e0   : > { %5198 = vmatmul.mubr.msk.bf16.vlgmr.msra.gmra.mrb[32].mxu0 %vm641_vm2, %v2168_v45 }
 0x7e1   : > { %2286 = vmatpush1.bf16.msra.mxu0 %v2280_v48  ;;  %2317 = vmatprep.mubr.bf16.mxu0 %v9200_v43  ;;  %v7481_v34 = vpop.f32.mrb[76].mxu1 }
 0x7e2   : > { %v7483_v5 = vpop.f32.mrb[77].mxu1 }
 0x7e3   : > { %v2930_v61 = vmax.f32 %v7481_v34, %v7483_v5  ;;  %v7487_v10 = vpop.f32.mrb[78].mxu1 }
 0x7e4   : > { %v7489_v1 = vpop.f32.mrb[79].mxu1 }
 0x7e5   : > { %v2933_v35 = vmax.f32 %v7487_v10, %v7489_v1 }
 0x7e8   : > { %5098 = vmatmul.mubr.msk.bf16.vlgmr.msra.gmra.mrb[36].mxu0 %vm641_vm2, %v2236_v20 }
 0x7e9   : > { %2327 = vmatprep.mubr.bf16.mxu0 %v9200_v43  ;;  %v7493_v63 = vpop.f32.mrb[80].mxu1 }
 0x7ea   : > { %v7495_v15 = vpop.f32.mrb[81].mxu1 }
 0x7eb   : > { %v2936_v46 = vmax.f32 %v7493_v63, %v7495_v15  ;;  %v7499_v54 = vpop.f32.mrb[82].mxu1 }
 0x7ec   : > { %v7501_v24 = vpop.f32.mrb[83].mxu1 }
 0x7ed   : > { %v2939_v30 = vmax.f32 %v7499_v54, %v7501_v24 }
 0x7f0   : > { %5099 = vmatmul.mubr.msk.bf16.gmra.mrb[40].mxu0 %vm641_vm2, %v2238_v21 }
 0x7f1   : > { %2337 = vmatprep.mubr.bf16.mxu0 %v9200_v43  ;;  %v7505_v42 = vpop.f32.mrb[84].mxu1 }
 0x7f2   : > { %v7507_v9 = vpop.f32.mrb[85].mxu1 }
 0x7f3   : > { %v2942_v38 = vmax.f32 %v7505_v42, %v7507_v9  ;;  %v7511_v52 = vpop.f32.mrb[86].mxu1 }
 0x7f4   : > { %v7513_v50 = vpop.f32.mrb[87].mxu1 }
 0x7f5   : > { %v2945_v13 = vmax.f32 %v7511_v52, %v7513_v50 }
 0x7f8   : > { %5100 = vmatmul.mubr.msk.bf16.gmra.mrb[44].mxu0 %vm641_vm2, %v2240_v19 }
 0x7f9   : > { %2347 = vmatprep.mubr.bf16.mxu0 %v9200_v43  ;;  %v7517_v7 = vpop.f32.mrb[88].mxu1 }
 0x7fa   : > { %v7519_v57 = vpop.f32.mrb[89].mxu1 }
 0x7fb   : > { %v2948_v17 = vmax.f32 %v7517_v7, %v7519_v57  ;;  %v7523_v60 = vpop.f32.mrb[90].mxu1 }
 0x7fc   : > { %v7525_v40 = vpop.f32.mrb[91].mxu1 }
 0x7fd   : > { %v2951_v33 = vmax.f32 %v7523_v60, %v7525_v40 }
 0x800   : > { %5101 = vmatmul.mubr.msk.bf16.gmra.mrb[48].mxu0 %vm641_vm2, %v2242_v39 }
 0x801   : > { %2357 = vmatprep.mubr.bf16.mxu0 %v9200_v43  ;;  %v7529_v11 = vpop.f32.mrb[92].mxu1 }
 0x802   : > { %v7531_v29 = vpop.f32.mrb[93].mxu1 }
 0x803   : > { %v2954_v6 = vmax.f32 %v7529_v11, %v7531_v29  ;;  %v7535_v22 = vpop.f32.mrb[94].mxu1 }
 0x804   : > { %v7537_v27 = vpop.f32.mrb[95].mxu1 }
 0x808   : > { %5102 = vmatmul.mubr.msk.bf16.gmra.mrb[52].mxu0 %vm641_vm2, %v2244_v51 }
 0x809   : > { %2367 = vmatprep.mubr.bf16.mxu0 %v9200_v43  ;;  %v7541_v47 = vpop.f32.mrb[96].mxu1 }
 0x80a   : > { %v7543_v12 = vpop.f32.mrb[97].mxu1 }
 0x80b   : > { %v7547_v2 = vpop.f32.mrb[98].mxu1 }
 0x80c   : > { %v7549_v23 = vpop.f32.mrb[99].mxu1 }
 0x810   : > { %5103 = vmatmul.mubr.msk.bf16.gmra.mrb[56].mxu0 %vm641_vm2, %v2246_v53 }
 0x811   : > { %2377 = vmatprep.mubr.bf16.mxu0 %v9200_v43  ;;  %v7553_v59 = vpop.f32.mrb[100].mxu1 }
 0x812   : > { %9201 = vst [vmem:[#allocation8_spill] sm:$0xff] %v7553_v59  ;;  %v7555_v55 = vpop.f32.mrb[101].mxu1 }
 0x813   : > { %9202 = vst [vmem:[#allocation9_spill] sm:$0xff] %v7555_v55  ;;  %v7559_v45 = vpop.f32.mrb[102].mxu1 }
 0x814   : > { %9203 = vst [vmem:[#allocation10_spill] sm:$0xff] %v7559_v45  ;;  %v7561_v41 = vpop.f32.mrb[103].mxu1 }
 0x815   : > { %9204 = vst [vmem:[#allocation11_spill] sm:$0xff] %v7561_v41 }
 0x818   : > { %5104 = vmatmul.mubr.msk.bf16.gmra.mrb[60].mxu0 %vm641_vm2, %v2248_v49 }
 0x819   : > { %2387 = vmatprep.mubr.bf16.mxu0 %v9200_v43  ;;  %v7565_v19 = vpop.f32.mrb[104].mxu1 }
 0x81a   : > { %v7567_v4 = vpop.f32.mrb[105].mxu1 }
 0x81b   : > { %v7571_v51 = vpop.f32.mrb[106].mxu1 }
 0x81c   : > { %v7573_v36 = vpop.f32.mrb[107].mxu1 }
 0x81d   : > { %9205 = vst [vmem:[#allocation12_spill] sm:$0xff] %v7573_v36 }
 0x820   : > { %5105 = vmatmul.mubr.msk.bf16.gmra.mrb[64].mxu0 %vm641_vm2, %v2250_v0 }
 0x8bb   : > { %v7577_v49 = vpop.f32.mrb[36].mxu0 }
 0x8bc   : > { %v7579_v62 = vpop.f32.mrb[37].mxu0 }
 0x8bd   : > { %v2398_v0 = vmax.f32 %v7577_v49, %v7579_v62  ;;  %v7583_v18 = vpop.f32.mrb[38].mxu0 }
 0x8be   : > { %v7585_v31 = vpop.f32.mrb[39].mxu0 }
 0x8bf   : > { %v2401_v14 = vmax.f32 %v7583_v18, %v7585_v31  ;;  %2399 = vmax.xlane.f32.xlu0 %v2398_v0 }
 0x8c1   : > { %2402 = vmax.xlane.f32.xlu1 %v2401_v14 }
 0x8c3   : > { %v7589_v58 = vpop.f32.mrb[40].mxu0 }
 0x8c4   : > { %v7591_v8 = vpop.f32.mrb[41].mxu0 }
 0x8c5   : > { %v2404_v44 = vmax.f32 %v7589_v58, %v7591_v8  ;;  %v7595_v56 = vpop.f32.mrb[42].mxu0  ;;  %2931 = vmax.xlane.f32.xlu1 %v2930_v61 }
 0x8c6   : > { %v7597_v16 = vpop.f32.mrb[43].mxu0 }
 0x8c7   : > { %v2407_v26 = vmax.f32 %v7595_v56, %v7597_v16  ;;  %2405 = vmax.xlane.f32.xlu0 %v2404_v44 }
 0x8cb   : > { %2408 = vmax.xlane.f32.xlu0 %v2407_v26  ;;  %v7601_v3 = vpop.f32.mrb[44].mxu0 }
 0x8cc   : > { %v7603_v28 = vpop.f32.mrb[45].mxu0 }
 0x8cd   : > { %v2410_v48 = vmax.f32 %v7601_v3, %v7603_v28  ;;  %v7607_v0 = vpop.f32.mrb[46].mxu0 }
 0x8ce   : > { %v7609_v14 = vpop.f32.mrb[47].mxu0 }
 0x8cf   : > { %v2413_v61 = vmax.f32 %v7607_v0, %v7609_v14  ;;  %2411 = vmax.xlane.f32.xlu1 %v2410_v48  ;;  %2934 = vmax.xlane.f32.xlu0 %v2933_v35 }
 0x8d3   : > { %v7616_v44 = vpop.f32.mrb[48].mxu0  ;;  %2414 = vmax.xlane.f32.xlu0 %v2413_v61  ;;  %2937 = vmax.xlane.f32.xlu1 %v2936_v46 }
 0x8d4   : > { %v7621_v26 = vpop.f32.mrb[49].mxu0 }
 0x8d5   : > { %v2416_v53 = vmax.f32 %v7616_v44, %v7621_v26  ;;  %v7625_v39 = vpop.f32.mrb[50].mxu0 }
 0x8d6   : > { %v7627_v21 = vpop.f32.mrb[51].mxu0 }
 0x8d7   : > { %v2419_v48 = vmax.f32 %v7625_v39, %v7627_v21  ;;  %2417 = vmax.xlane.f32.xlu1 %v2416_v53  ;;  %2940 = vmax.xlane.f32.xlu0 %v2939_v30 }
 0x8db   : > { %v7634_v35 = vpop.f32.mrb[52].mxu0  ;;  %2420 = vmax.xlane.f32.xlu0 %v2419_v48  ;;  %2943 = vmax.xlane.f32.xlu1 %v2942_v38 }
 0x8dc   : > { %v7639_v46 = vpop.f32.mrb[53].mxu0 }
 0x8dd   : > { %v2422_v61 = vmax.f32 %v7634_v35, %v7639_v46  ;;  %v7643_v32 = vpop.f32.mrb[54].mxu0 }
 0x8de   : > { %v7645_v25 = vpop.f32.mrb[55].mxu0 }
 0x8df   : > { %v2425_v53 = vmax.f32 %v7643_v32, %v7645_v25  ;;  %2423 = vmax.xlane.f32.xlu1 %v2422_v61  ;;  %2946 = vmax.xlane.f32.xlu0 %v2945_v13 }
 0x8e3   : > { %v7652_v30 = vpop.f32.mrb[56].mxu0  ;;  %2426 = vmax.xlane.f32.xlu0 %v2425_v53  ;;  %2949 = vmax.xlane.f32.xlu1 %v2948_v17 }
 0x8e4   : > { %v7657_v38 = vpop.f32.mrb[57].mxu0 }
 0x8e5   : > { %v2428_v48 = vmax.f32 %v7652_v30, %v7657_v38  ;;  %v7661_v20 = vpop.f32.mrb[58].mxu0 }
 0x8e6   : > { %9206 = vst [vmem:[#allocation14_spill] sm:$0xff] %v7661_v20  ;;  %v7663_v37 = vpop.f32.mrb[59].mxu0 }
 0x8e7   : > { %9207 = vst [vmem:[#allocation13_spill] sm:$0xff] %v7663_v37  ;;  %v2431_v61 = vmax.f32 %v7661_v20, %v7663_v37  ;;  %2429 = vmax.xlane.f32.xlu1 %v2428_v48  ;;  %2952 = vmax.xlane.f32.xlu0 %v2951_v33  ;;  %v9211_v33 = vmax.f32 %v7535_v22, %v7537_v27 }
 0x8eb   : > { %v7670_v13 = vpop.f32.mrb[60].mxu0  ;;  %2432 = vmax.xlane.f32.xlu0 %v2431_v61  ;;  %2955 = vmax.xlane.f32.xlu1 %v2954_v6  ;;  %v9212_v6 = vmax.f32 %v7541_v47, %v7543_v12 }
 0x8ec   : > { %9208 = vst [vmem:[#allocation15_spill] sm:$0xff] %v7670_v13  ;;  %v7675_v17 = vpop.f32.mrb[61].mxu0 }
 0x8ed   : > { %9209 = vst [vmem:[#allocation16_spill] sm:$0xff] %v7675_v17  ;;  %v2434_v53 = vmax.f32 %v7670_v13, %v7675_v17  ;;  %v7679_v43 = vpop.f32.mrb[62].mxu0 }
 0x8ee   : > { %v7681_v37 = vpop.f32.mrb[63].mxu0 }
 0x8ef   : > { %9210 = vst [vmem:[#allocation17_spill] sm:$0xff] %v7681_v37  ;;  %v2437_v48 = vmax.f32 %v7679_v43, %v7681_v37  ;;  %2435 = vmax.xlane.f32.xlu1 %v2434_v53  ;;  %2958 = vmax.xlane.f32.xlu0 %v9211_v33  ;;  %v9217_v33 = vmax.f32 %v7553_v59, %v7555_v55 }
 0x8f3   : > { %v7688_v61 = vpop.f32.mrb[64].mxu0  ;;  %2438 = vmax.xlane.f32.xlu0 %v2437_v48  ;;  %2961 = vmax.xlane.f32.xlu1 %v9212_v6  ;;  %v9216_v48 = vmax.f32 %v7547_v2, %v7549_v23  ;;  %v9218_v6 = vmax.f32 %v7559_v45, %v7561_v41 }
 0x8f4   : > { %v7693_v17 = vpop.f32.mrb[65].mxu0 }
 0x8f5   : > { %9213 = vst [vmem:[#allocation19_spill] sm:$0xff] %v7693_v17  ;;  %v2440_v13 = vmax.f32 %v7688_v61, %v7693_v17  ;;  %v7697_v20 = vpop.f32.mrb[66].mxu0  ;;  %v9219_v17 = vmax.f32 %v7565_v19, %v7567_v4 }
 0x8f6   : > { %9214 = vst [vmem:[#allocation20_spill] sm:$0xff] %v7697_v20  ;;  %v7699_v37 = vpop.f32.mrb[67].mxu0 }
 0x8f7   : > { %9215 = vst [vmem:[#allocation18_spill] sm:$0xff] %v7699_v37  ;;  %v2443_v53 = vmax.f32 %v7697_v20, %v7699_v37  ;;  %2441 = vmax.xlane.f32.xlu1 %v2440_v13  ;;  %2964 = vmax.xlane.f32.xlu0 %v9216_v48  ;;  %v9220_v13 = vmax.f32 %v7571_v51, %v7573_v36 }
 0x8fb   : > { %2444 = vmax.xlane.f32.xlu0 %v2443_v53  ;;  %2967 = vmax.xlane.f32.xlu1 %v9217_v33 }
 0x8ff   : > { %2970 = vmax.xlane.f32.xlu0 %v9218_v6  ;;  %2973 = vmax.xlane.f32.xlu1 %v9219_v17 }
 0x903   : > { %2976 = vmax.xlane.f32.xlu0 %v9220_v13 }
 0x94c   : > { %v2400_v37 = vpop.xlane.xlu0 %2399 }
 0x94d   : > { %v2446_v48 = vsub.f32 %v7577_v49, %v2400_v37  ;;  %v2447_v53 = vsub.f32 %v7579_v62, %v2400_v37 }
 0x94e   : > { %v2403_v20 = vpop.xlane.xlu1 %2402 }
 0x94f   : > { %v2478_v55 = vmul.f32 1.442695, %v2446_v48  ;;  %v2480_v33 = vmul.f32 1.442695, %v2447_v53  ;;  %v2448_v59 = vsub.f32 %v7583_v18, %v2403_v20  ;;  %v2449_v6 = vsub.f32 %v7585_v31, %v2403_v20 }
 0x951   : > { %5655 = vpow2.f32 %v2478_v55  ;;  %v2482_v41 = vmul.f32 1.442695, %v2448_v59  ;;  %v2484_v45 = vmul.f32 1.442695, %v2449_v6 }
 0x952   : > { %5657 = vpow2.f32 %v2480_v33  ;;  %v2932_v17 = vpop.xlane.xlu1 %2931 }
 0x953   : > { %5659 = vpow2.f32 %v2482_v41  ;;  %v2978_v13 = vsub.f32 %v7481_v34, %v2932_v17  ;;  %v2979_v49 = vsub.f32 %v7483_v5, %v2932_v17 }
 0x954   : > { %5661 = vpow2.f32 %v2484_v45  ;;  %v2406_v36 = vpop.xlane.xlu0 %2405 }
 0x955   : > { %v2450_v37 = vsub.f32 %v7589_v58, %v2406_v36  ;;  %v2451_v62 = vsub.f32 %v7591_v8, %v2406_v36  ;;  %v3010_v48 = vmul.f32 1.442695, %v2978_v13  ;;  %v3012_v20 = vmul.f32 1.442695, %v2979_v49 }
 0x957   : > { %v2486_v18 = vmul.f32 1.442695, %v2450_v37  ;;  %v2488_v53 = vmul.f32 1.442695, %v2451_v62 }
 0x958   : > { %v2409_v55 = vpop.xlane.xlu0 %2408 }
 0x959   : > { %5663 = vpow2.f32 %v2486_v18  ;;  %v2452_v59 = vsub.f32 %v7595_v56, %v2409_v55  ;;  %v2453_v41 = vsub.f32 %v7597_v16, %v2409_v55 }
 0x95a   : > { %5665 = vpow2.f32 %v2488_v53 }
 0x95b   : > { %v7728_v34 = vpop.eup %5655  ;;  %5667 = vpow2.f32 %v3010_v48  ;;  %v2490_v5 = vmul.f32 1.442695, %v2452_v59  ;;  %v2492_v45 = vmul.f32 1.442695, %v2453_v41 }
 0x95c   : > { %v7730_v31 = vpop.eup %5657  ;;  %5669 = vpow2.f32 %v3012_v20  ;;  %v2412_v36 = vpop.xlane.xlu1 %2411 }
 0x95d   : > { %v2935_v58 = vpop.xlane.xlu0 %2934  ;;  %v7732_v8 = vpop.eup %5659  ;;  %5671 = vpow2.f32 %v2490_v5  ;;  %v2454_v33 = vsub.f32 %v7601_v3, %v2412_v36  ;;  %v2455_v56 = vsub.f32 %v7603_v28, %v2412_v36  ;;  %v2542_v13 = vadd.f32 %v7730_v31, %v7728_v34 }
 0x95e   : > { %v2980_v16 = vsub.f32 %v7487_v10, %v2935_v58  ;;  %v7737_v6 = vpop.eup %5661  ;;  %5673 = vpow2.f32 %v2492_v45  ;;  %v2981_v17 = vsub.f32 %v7489_v1, %v2935_v58 }
 0x95f   : > { %v2494_v49 = vmul.f32 1.442695, %v2454_v33  ;;  %v2496_v37 = vmul.f32 1.442695, %v2455_v56  ;;  %v2545_v48 = vadd.f32 %v7737_v6, %v7732_v8  ;;  %2543 = vadd.xlane.f32.xlu1 %v2542_v13 }
 0x960   : > { %v3014_v62 = vmul.f32 1.442695, %v2980_v16  ;;  %v3016_v18 = vmul.f32 1.442695, %v2981_v17  ;;  %v2938_v3 = vpop.xlane.xlu1 %2937 }
 0x961   : > { %v2415_v28 = vpop.xlane.xlu0 %2414  ;;  %5675 = vpow2.f32 %v2494_v49  ;;  %v2982_v10 = vsub.f32 %v7493_v63, %v2938_v3  ;;  %v2983_v53 = vsub.f32 %v7495_v15, %v2938_v3  ;;  %2546 = vadd.xlane.f32.xlu0 %v2545_v48 }
 0x962   : > { %v2456_v1 = vsub.f32 %v7607_v0, %v2415_v28  ;;  %5677 = vpow2.f32 %v2496_v37  ;;  %v2457_v20 = vsub.f32 %v7609_v14, %v2415_v28 }
 0x963   : > { %v7748_v55 = vpop.eup %5663  ;;  %5679 = vpow2.f32 %v3014_v62  ;;  %v3018_v59 = vmul.f32 1.442695, %v2982_v10  ;;  %v3020_v41 = vmul.f32 1.442695, %v2983_v53 }
 0x964   : > { %v2498_v5 = vmul.f32 1.442695, %v2456_v1  ;;  %v7750_v45 = vpop.eup %5665  ;;  %5681 = vpow2.f32 %v3016_v18  ;;  %v2500_v36 = vmul.f32 1.442695, %v2457_v20  ;;  %v2418_v58 = vpop.xlane.xlu1 %2417 }
 0x965   : > { %v2941_v63 = vpop.xlane.xlu0 %2940  ;;  %v7752_v33 = vpop.eup %5667  ;;  %5683 = vpow2.f32 %v3018_v59  ;;  %v2458_v15 = vsub.f32 %v7616_v44, %v2418_v58  ;;  %v2459_v0 = vsub.f32 %v7621_v26, %v2418_v58  ;;  %v2548_v17 = vadd.f32 %v7750_v45, %v7748_v55 }
 0x966   : > { %v2984_v14 = vsub.f32 %v7499_v54, %v2941_v63  ;;  %v7757_v56 = vpop.eup %5669  ;;  %5685 = vpow2.f32 %v3020_v41  ;;  %v2985_v16 = vsub.f32 %v7501_v24, %v2941_v63 }
 0x967   : > { %v7762_v13 = vpop.eup %5671  ;;  %5687 = vpow2.f32 %v2498_v5  ;;  %v2502_v49 = vmul.f32 1.442695, %v2458_v15  ;;  %v2504_v37 = vmul.f32 1.442695, %v2459_v0  ;;  %2549 = vadd.xlane.f32.xlu1 %v2548_v17  ;;  %v3074_v10 = vadd.f32 %v7757_v56, %v7752_v33 }
 0x968   : > { %v3022_v62 = vmul.f32 1.442695, %v2984_v14  ;;  %v7764_v48 = vpop.eup %5673  ;;  %5689 = vpow2.f32 %v2500_v36  ;;  %v3024_v44 = vmul.f32 1.442695, %v2985_v16  ;;  %v2944_v54 = vpop.xlane.xlu1 %2943 }
 0x969   : > { %v2421_v26 = vpop.xlane.xlu0 %2420  ;;  %5691 = vpow2.f32 %v2502_v49  ;;  %v2986_v18 = vsub.f32 %v7505_v42, %v2944_v54  ;;  %v2987_v24 = vsub.f32 %v7507_v9, %v2944_v54  ;;  %v2551_v53 = vadd.f32 %v7764_v48, %v7762_v13 }
 0x96a   : > { %v2460_v3 = vsub.f32 %v7625_v39, %v2421_v26  ;;  %5693 = vpow2.f32 %v2504_v37  ;;  %v2461_v28 = vsub.f32 %v7627_v21, %v2421_v26 }
 0x96b   : > { %v7774_v1 = vpop.eup %5675  ;;  %5695 = vpow2.f32 %v3022_v62  ;;  %v3026_v20 = vmul.f32 1.442695, %v2986_v18  ;;  %v3028_v59 = vmul.f32 1.442695, %v2987_v24  ;;  %3075 = vadd.xlane.f32.xlu1 %v3074_v10  ;;  %2552 = vadd.xlane.f32.xlu0 %v2551_v53 }
 0x96c   : > { %v2506_v41 = vmul.f32 1.442695, %v2460_v3  ;;  %v7776_v42 = vpop.eup %5677  ;;  %5697 = vpow2.f32 %v3024_v44  ;;  %v2508_v9 = vmul.f32 1.442695, %v2461_v28  ;;  %v2424_v39 = vpop.xlane.xlu1 %2423 }
 0x96d   : > { %v2947_v21 = vpop.xlane.xlu0 %2946  ;;  %v7778_v5 = vpop.eup %5679  ;;  %5699 = vpow2.f32 %v3026_v20  ;;  %v2462_v36 = vsub.f32 %v7634_v35, %v2424_v39  ;;  %v2463_v58 = vsub.f32 %v7639_v46, %v2424_v39  ;;  %v2554_v14 = vadd.f32 %v7776_v42, %v7774_v1 }
 0x96e   : > { %v2988_v63 = vsub.f32 %v7511_v52, %v2947_v21  ;;  %v7783_v15 = vpop.eup %5681  ;;  %5701 = vpow2.f32 %v3028_v59  ;;  %v2989_v0 = vsub.f32 %v7513_v50, %v2947_v21 }
 0x96f   : > { %v7788_v16 = vpop.eup %5683  ;;  %5703 = vpow2.f32 %v2506_v41  ;;  %v2510_v17 = vmul.f32 1.442695, %v2462_v36  ;;  %v2512_v49 = vmul.f32 1.442695, %v2463_v58  ;;  %2555 = vadd.xlane.f32.xlu1 %v2554_v14  ;;  %v3077_v52 = vadd.f32 %v7783_v15, %v7778_v5 }
 0x970   : > { %v3030_v37 = vmul.f32 1.442695, %v2988_v63  ;;  %v7790_v62 = vpop.eup %5685  ;;  %5705 = vpow2.f32 %v2508_v9  ;;  %v3032_v35 = vmul.f32 1.442695, %v2989_v0  ;;  %v2950_v46 = vpop.xlane.xlu1 %2949 }
 0x971   : > { %v2427_v44 = vpop.xlane.xlu0 %2426  ;;  %v7794_v50 = vpop.eup %5687  ;;  %5707 = vpow2.f32 %v2510_v17  ;;  %v2990_v54 = vsub.f32 %v7517_v7, %v2950_v46  ;;  %v2991_v26 = vsub.f32 %v7519_v57, %v2950_v46  ;;  %3078 = vadd.xlane.f32.xlu0 %v3077_v52  ;;  %v3080_v28 = vadd.f32 %v7790_v62, %v7788_v16 }
 0x972   : > { %v2464_v18 = vsub.f32 %v7643_v32, %v2427_v44  ;;  %v7799_v24 = vpop.eup %5689  ;;  %5709 = vpow2.f32 %v2512_v49  ;;  %v2465_v3 = vsub.f32 %v7645_v25, %v2427_v44 }
 0x973   : > { %v7804_v10 = vpop.eup %5691  ;;  %5711 = vpow2.f32 %v3030_v37  ;;  %v3034_v53 = vmul.f32 1.442695, %v2990_v54  ;;  %v3036_v20 = vmul.f32 1.442695, %v2991_v26  ;;  %3081 = vadd.xlane.f32.xlu1 %v3080_v28  ;;  %v2557_v32 = vadd.f32 %v7799_v24, %v7794_v50  ;;  %v9221_v54 = vld [vmem:[#allocation14_spill] sm:$0xff] }
 0x974   : > { %v2514_v59 = vmul.f32 1.442695, %v2464_v18  ;;  %v7806_v7 = vpop.eup %5693  ;;  %5713 = vpow2.f32 %v3032_v35  ;;  %v2516_v57 = vmul.f32 1.442695, %v2465_v3  ;;  %v2430_v41 = vpop.xlane.xlu1 %2429  ;;  %v9222_v3 = vld [vmem:[#allocation13_spill] sm:$0xff] }
 0x975   : > { %v2953_v9 = vpop.xlane.xlu0 %2952  ;;  %v7810_v25 = vpop.eup %5695  ;;  %5715 = vpow2.f32 %v3034_v53  ;;  %v2466_v39 = vsub.f32 %v7652_v30, %v2430_v41  ;;  %v2467_v21 = vsub.f32 %v7657_v38, %v2430_v41  ;;  %2558 = vadd.xlane.f32.xlu0 %v2557_v32  ;;  %v2560_v0 = vadd.f32 %v7806_v7, %v7804_v10 }
 0x976   : > { %v2992_v36 = vsub.f32 %v7523_v60, %v2953_v9  ;;  %v7815_v58 = vpop.eup %5697  ;;  %5717 = vpow2.f32 %v3036_v20  ;;  %v2993_v63 = vsub.f32 %v7525_v40, %v2953_v9 }
 0x977   : > { %v7820_v14 = vpop.eup %5699  ;;  %5719 = vpow2.f32 %v2514_v59  ;;  %v2518_v17 = vmul.f32 1.442695, %v2466_v39  ;;  %v2520_v49 = vmul.f32 1.442695, %v2467_v21  ;;  %2561 = vadd.xlane.f32.xlu1 %v2560_v0  ;;  %v3083_v60 = vadd.f32 %v7815_v58, %v7810_v25  ;;  %v9224_v0 = vld [vmem:[#allocation16_spill] sm:$0xff] }
 0x978   : > { %v3038_v37 = vmul.f32 1.442695, %v2992_v36  ;;  %v7822_v30 = vpop.eup %5701  ;;  %5721 = vpow2.f32 %v2516_v57  ;;  %v3040_v38 = vmul.f32 1.442695, %v2993_v63  ;;  %v2956_v35 = vpop.xlane.xlu1 %2955  ;;  %v9223_v36 = vld [vmem:[#allocation15_spill] sm:$0xff] }
 0x979   : > { %v2433_v52 = vpop.xlane.xlu0 %2432  ;;  %v7826_v40 = vpop.eup %5703  ;;  %5723 = vpow2.f32 %v2518_v17  ;;  %v2994_v46 = vsub.f32 %v7529_v11, %v2956_v35  ;;  %v2995_v44 = vsub.f32 %v7531_v29, %v2956_v35  ;;  %3084 = vadd.xlane.f32.xlu0 %v3083_v60  ;;  %v3086_v53 = vadd.f32 %v7822_v30, %v7820_v14 }
 0x97a   : > { %v2468_v26 = vsub.f32 %v9221_v54, %v2433_v52  ;;  %v7831_v18 = vpop.eup %5705  ;;  %5725 = vpow2.f32 %v2520_v49  ;;  %v2469_v28 = vsub.f32 %v9222_v3, %v2433_v52 }
 0x97b   : > { %v7836_v20 = vpop.eup %5707  ;;  %5727 = vpow2.f32 %v3038_v37  ;;  %v3042_v59 = vmul.f32 1.442695, %v2994_v46  ;;  %v3044_v57 = vmul.f32 1.442695, %v2995_v44  ;;  %3087 = vadd.xlane.f32.xlu1 %v3086_v53  ;;  %v2563_v41 = vadd.f32 %v7831_v18, %v7826_v40 }
 0x97c   : > { %v2522_v32 = vmul.f32 1.442695, %v2468_v26  ;;  %v7838_v11 = vpop.eup %5709  ;;  %5729 = vpow2.f32 %v3040_v38  ;;  %v2524_v29 = vmul.f32 1.442695, %v2469_v28  ;;  %v2436_v9 = vpop.xlane.xlu1 %2435 }
 0x97d   : > { %v2959_v39 = vpop.xlane.xlu0 %2958  ;;  %v7842_v21 = vpop.eup %5711  ;;  %5731 = vpow2.f32 %v3042_v59  ;;  %v2470_v63 = vsub.f32 %v9223_v36, %v2436_v9  ;;  %v2471_v17 = vsub.f32 %v9224_v0, %v2436_v9  ;;  %2564 = vadd.xlane.f32.xlu0 %v2563_v41  ;;  %v2566_v60 = vadd.f32 %v7838_v11, %v7836_v20 }
 0x97e   : > { %v2996_v49 = vsub.f32 %v7535_v22, %v2959_v39  ;;  %v7847_v37 = vpop.eup %5713  ;;  %5733 = vpow2.f32 %v3044_v57  ;;  %v2997_v38 = vsub.f32 %v7537_v27, %v2959_v39 }
 0x97f   : > { %v7852_v35 = vpop.eup %5715  ;;  %5735 = vpow2.f32 %v2522_v32  ;;  %v2526_v52 = vmul.f32 1.442695, %v2470_v63  ;;  %v2528_v46 = vmul.f32 1.442695, %v2471_v17  ;;  %2567 = vadd.xlane.f32.xlu1 %v2566_v60  ;;  %v3089_v22 = vadd.f32 %v7847_v37, %v7842_v21 }
 0x980   : > { %v3046_v44 = vmul.f32 1.442695, %v2996_v49  ;;  %v7854_v54 = vpop.eup %5717  ;;  %5737 = vpow2.f32 %v2524_v29  ;;  %v3048_v26 = vmul.f32 1.442695, %v2997_v38  ;;  %v2962_v3 = vpop.xlane.xlu1 %2961  ;;  %v9225_v29 = vld [vmem:[#allocation17_spill] sm:$0xff] }
 0x981   : > { %v2439_v28 = vpop.xlane.xlu0 %2438  ;;  %v7858_v27 = vpop.eup %5719  ;;  %5739 = vpow2.f32 %v2526_v52  ;;  %v2998_v53 = vsub.f32 %v7541_v47, %v2962_v3  ;;  %v2999_v59 = vsub.f32 %v7543_v12, %v2962_v3  ;;  %3090 = vadd.xlane.f32.xlu0 %v3089_v22  ;;  %v3092_v9 = vadd.f32 %v7854_v54, %v7852_v35  ;;  %v9226_v52 = vld [vmem:[#allocation19_spill] sm:$0xff] }
 0x982   : > { %v2472_v57 = vsub.f32 %v7679_v43, %v2439_v28  ;;  %v7863_v32 = vpop.eup %5721  ;;  %5741 = vpow2.f32 %v2528_v46  ;;  %v2473_v41 = vsub.f32 %v9225_v29, %v2439_v28 }
 0x983   : > { %v7868_v39 = vpop.eup %5723  ;;  %5743 = vpow2.f32 %v3046_v44  ;;  %v3050_v36 = vmul.f32 1.442695, %v2998_v53  ;;  %v3052_v63 = vmul.f32 1.442695, %v2999_v59  ;;  %3093 = vadd.xlane.f32.xlu1 %v3092_v9  ;;  %v2569_v43 = vadd.f32 %v7863_v32, %v7858_v27 }
 0x984   : > { %v2530_v0 = vmul.f32 1.442695, %v2472_v57  ;;  %v7870_v47 = vpop.eup %5725  ;;  %5745 = vpow2.f32 %v3048_v26  ;;  %v2532_v12 = vmul.f32 1.442695, %v2473_v41  ;;  %v2442_v17 = vpop.xlane.xlu1 %2441 }
 0x985   : > { %v2965_v49 = vpop.xlane.xlu0 %2964  ;;  %v7874_v38 = vpop.eup %5727  ;;  %5747 = vpow2.f32 %v3050_v36  ;;  %v2474_v60 = vsub.f32 %v7688_v61, %v2442_v17  ;;  %v2475_v46 = vsub.f32 %v9226_v52, %v2442_v17  ;;  %2570 = vadd.xlane.f32.xlu0 %v2569_v43  ;;  %v2572_v3 = vadd.f32 %v7870_v47, %v7868_v39  ;;  %v9229_v36 = vld [vmem:[#allocation8_spill] sm:$0xff]  ;;  %v9230_v43 = vld [vmem:[#allocation9_spill] sm:$0xff] }
 0x986   : > { %v3000_v44 = vsub.f32 %v7547_v2, %v2965_v49  ;;  %v7879_v22 = vpop.eup %5729  ;;  %5749 = vpow2.f32 %v3052_v63  ;;  %v3001_v26 = vsub.f32 %v7549_v23, %v2965_v49  ;;  %v9231_v17 = vld [vmem:[#allocation20_spill] sm:$0xff] }
 0x987   : > { %v7884_v28 = vpop.eup %5731  ;;  %5751 = vpow2.f32 %v2530_v0  ;;  %v2534_v53 = vmul.f32 1.442695, %v2474_v60  ;;  %v2536_v59 = vmul.f32 1.442695, %v2475_v46  ;;  %2573 = vadd.xlane.f32.xlu1 %v2572_v3  ;;  %v3095_v2 = vadd.f32 %v7879_v22, %v7874_v38 }
 0x988   : > { %9227 = vst [vmem:[#allocation23_spill] sm:$0xff] %v7884_v28  ;;  %v3054_v57 = vmul.f32 1.442695, %v3000_v44  ;;  %v7886_v61 = vpop.eup %5733  ;;  %5753 = vpow2.f32 %v2532_v12  ;;  %v3056_v29 = vmul.f32 1.442695, %v3001_v26  ;;  %v2968_v41 = vpop.xlane.xlu1 %2967  ;;  %v9232_v12 = vld [vmem:[#allocation18_spill] sm:$0xff] }
 0x989   : > { %9228 = vst [vmem:[#allocation21_spill] sm:$0xff] %v7886_v61  ;;  %v2445_v9 = vpop.xlane.xlu0 %2444  ;;  %v7890_v23 = vpop.eup %5735  ;;  %5755 = vpow2.f32 %v2534_v53  ;;  %v3002_v63 = vsub.f32 %v9229_v36, %v2968_v41  ;;  %v3003_v0 = vsub.f32 %v9230_v43, %v2968_v41  ;;  %3096 = vadd.xlane.f32.xlu0 %v3095_v2  ;;  %v3098_v46 = vadd.f32 %v7886_v61, %v7884_v28 }
 0x98a   : > { %v2476_v49 = vsub.f32 %v9231_v17, %v2445_v9  ;;  %v7895_v60 = vpop.eup %5737  ;;  %5757 = vpow2.f32 %v2536_v59  ;;  %v2477_v52 = vsub.f32 %v9232_v12, %v2445_v9 }
 0x98b   : > { %v7900_v44 = vpop.eup %5739  ;;  %5759 = vpow2.f32 %v3054_v57  ;;  %v3058_v26 = vmul.f32 1.442695, %v3002_v63  ;;  %v3060_v3 = vmul.f32 1.442695, %v3003_v0  ;;  %3099 = vadd.xlane.f32.xlu1 %v3098_v46  ;;  %v2575_v59 = vadd.f32 %v7895_v60, %v7890_v23  ;;  %v9233_v63 = vld [vmem:[#allocation10_spill] sm:$0xff] }
 0x98c   : > { %v2538_v53 = vmul.f32 1.442695, %v2476_v49  ;;  %v7902_v36 = vpop.eup %5741  ;;  %5761 = vpow2.f32 %v3056_v29  ;;  %v2540_v41 = vmul.f32 1.442695, %v2477_v52  ;;  %v2974_v2 = vpop.xlane.xlu1 %2973  ;;  %v9234_v29 = vld [vmem:[#allocation11_spill] sm:$0xff] }
 0x98d   : > { %v2971_v43 = vpop.xlane.xlu0 %2970  ;;  %v7906_v9 = vpop.eup %5743  ;;  %5763 = vpow2.f32 %v3058_v26  ;;  %v3006_v17 = vsub.f32 %v7565_v19, %v2974_v2  ;;  %v3007_v57 = vsub.f32 %v7567_v4, %v2974_v2  ;;  %2576 = vadd.xlane.f32.xlu0 %v2575_v59  ;;  %v2578_v52 = vadd.f32 %v7902_v36, %v7900_v44 }
 0x98e   : > { %v3004_v0 = vsub.f32 %v9233_v63, %v2971_v43  ;;  %v7911_v49 = vpop.eup %5745  ;;  %5765 = vpow2.f32 %v3060_v3  ;;  %v3005_v12 = vsub.f32 %v9234_v29, %v2971_v43  ;;  %v9235_v63 = vld [vmem:[#allocation12_spill] sm:$0xff] }
 0x98f   : > { %v7916_v46 = vpop.eup %5747  ;;  %5767 = vpow2.f32 %v2538_v53  ;;  %v3066_v28 = vmul.f32 1.442695, %v3006_v17  ;;  %v3068_v26 = vmul.f32 1.442695, %v3007_v57  ;;  %2579 = vadd.xlane.f32.xlu1 %v2578_v52  ;;  %v3101_v3 = vadd.f32 %v7911_v49, %v7906_v9 }
 0x990   : > { %v3062_v61 = vmul.f32 1.442695, %v3004_v0  ;;  %v7918_v19 = vpop.eup %5749  ;;  %5769 = vpow2.f32 %v2540_v41  ;;  %v3064_v4 = vmul.f32 1.442695, %v3005_v12 }
 0x991   : > { %v2977_v59 = vpop.xlane.xlu0 %2976  ;;  %v7922_v2 = vpop.eup %5751  ;;  %5771 = vpow2.f32 %v3066_v28  ;;  %v3104_v53 = vadd.f32 %v7918_v19, %v7916_v46  ;;  %3102 = vadd.xlane.f32.xlu0 %v3101_v3 }
 0x992   : > { %v3008_v43 = vsub.f32 %v7571_v51, %v2977_v59  ;;  %v3009_v29 = vsub.f32 %v9235_v63, %v2977_v59  ;;  %v7928_v17 = vpop.eup %5753  ;;  %5773 = vpow2.f32 %v3068_v26 }
 0x993   : > { %v7930_v41 = vpop.eup %5755  ;;  %5775 = vpow2.f32 %v3062_v61  ;;  %v2581_v12 = vadd.f32 %v7928_v17, %v7922_v2  ;;  %3105 = vadd.xlane.f32.xlu1 %v3104_v53 }
 0x994   : > { %9236 = vst [vmem:[#allocation22_spill] sm:$0xff] %v7930_v41  ;;  %v3070_v57 = vmul.f32 1.442695, %v3008_v43  ;;  %v3072_v0 = vmul.f32 1.442695, %v3009_v29  ;;  %v7934_v28 = vpop.eup %5757  ;;  %5777 = vpow2.f32 %v3064_v4 }
 0x995   : > { %9237 = vst [vmem:[#allocation14_spill] sm:$0xff] %v7934_v28  ;;  %v7936_v51 = vpop.eup %5759  ;;  %v2584_v52 = vadd.f32 %v7934_v28, %v7930_v41  ;;  %2582 = vadd.xlane.f32.xlu0 %v2581_v12 }
 0x996   : > { %9238 = vst [vmem:[#allocation13_spill] sm:$0xff] %v7936_v51  ;;  %5779 = vpow2.f32 %v3070_v57  ;;  %v7940_v26 = vpop.eup %5761 }
 0x997   : > { %5781 = vpow2.f32 %v3072_v0  ;;  %v7942_v61 = vpop.eup %5763  ;;  %v3107_v3 = vadd.f32 %v7940_v26, %v7936_v51  ;;  %2585 = vadd.xlane.f32.xlu1 %v2584_v52 }
 0x998   : > { %9239 = vst [vmem:[#allocation15_spill] sm:$0xff] %v7942_v61  ;;  %v7946_v59 = vpop.eup %5765 }
 0x999   : > { %9240 = vst [vmem:[#allocation16_spill] sm:$0xff] %v7946_v59  ;;  %v7948_v4 = vpop.eup %5767  ;;  %v3110_v43 = vadd.f32 %v7946_v59, %v7942_v61  ;;  %3108 = vadd.xlane.f32.xlu0 %v3107_v3 }
 0x99a   : > { %9241 = vst [vmem:[#allocation17_spill] sm:$0xff] %v7948_v4  ;;  %v7952_v63 = vpop.eup %5769 }
 0x99b   : > { %9242 = vst [vmem:[#allocation19_spill] sm:$0xff] %v7952_v63  ;;  %v7954_v29 = vpop.eup %5771  ;;  %v2587_v53 = vadd.f32 %v7952_v63, %v7948_v4  ;;  %3111 = vadd.xlane.f32.xlu1 %v3110_v43 }
 0x99c   : > { %9243 = vst [vmem:[#allocation8_spill] sm:$0xff] %v7954_v29  ;;  %v7958_v57 = vpop.eup %5773 }
 0x99d   : > { %9244 = vst [vmem:[#allocation9_spill] sm:$0xff] %v7958_v57  ;;  %v7960_v0 = vpop.eup %5775  ;;  %v3116_v12 = vadd.f32 %v7958_v57, %v7954_v29  ;;  %2588 = vadd.xlane.f32.xlu0 %v2587_v53  ;;  %v6143_v29 = vld [vmem:[%s9082_s3] sm:$0xff]   ;;  %v6144_v53 = vld [vmem:[%s9082_s3 + $0x8] sm:$0xff]  }
 0x99e   : > { %9245 = vst [vmem:[#allocation20_spill] sm:$0xff] %v7960_v0  ;;  %v7964_v52 = vpop.eup %5777 }
 0x99f   : > { %9246 = vst [vmem:[#allocation18_spill] sm:$0xff] %v7964_v52  ;;  %v3113_v3 = vadd.f32 %v7964_v52, %v7960_v0  ;;  %3117 = vadd.xlane.f32.xlu1 %v3116_v12  ;;  %v2234_v12 = vld [vmem:[#allocation4 + $0x8] sm:$0xc0] }
 0x9a0   : > { %v7966_v61 = vpop.eup %5779 }
 0x9a1   : > { %9247 = vst [vmem:[#allocation10_spill] sm:$0xff] %v7966_v61  ;;  %v7970_v59 = vpop.eup %5781  ;;  %3114 = vadd.xlane.f32.xlu0 %v3113_v3  ;;  %v2657_v3 = vrot.slane %v2234_v12, 6  ;;  %v6148_v12 = vld [vmem:[%s6490_s17 + $0x18] sm:$0xff] }
 0x9a2   : > { %9248 = vst [vmem:[#allocation11_spill] sm:$0xff] %v7970_v59  ;;  %v3119_v43 = vadd.f32 %v7970_v59, %v7966_v61  ;;  %v6145_v61 = vld [vmem:[%s6490_s17] sm:$0xff] }
 0x9a3   : > { %2692 = vmatprep.mubr.bf16.mxu0 %v2657_v3  ;;  %v6149_v3 = vld [vmem:[%s6490_s17 + $0x20] sm:$0xff] }
 0x9a5   : > { %3120 = vadd.xlane.f32.xlu0 %v3119_v43  ;;  %v2770_v43 = vld [vmem:[#allocation4 + $0x18] sm:$0x3] }
 0x9a6   : > { %3218 = vmatprep.mubr.bf16.mxu1 %v2770_v43  ;;  %v6150_v43 = vld [vmem:[%s6490_s17 + $0x28] sm:$0xff] }
 0x9b0   : > { %2701 = vrot.lane.b32.xlu1 %v6143_v29, %s6265_s15 }
 0x9b4   : > { %3227 = vrot.lane.b32.xlu1 %v6143_v29, %s6266_s16  ;;  %v6146_v29 = vld [vmem:[%s6490_s17 + $0x8] sm:$0xff] }
 0x9b8   : > { %3229 = vrot.lane.b32.xlu1 %v6144_v53, %s6266_s16  ;;  %s5154_s16 = sshll.u32 %s6247_s22, 3  ;;  %s4960_s22 = sshll.u32 %s6385_s27, 4  ;;  %s9020_s22 = int_to_ptr.vmem [resolvable:$true] %s4960_s22 }
 0x9b9   : > { %s4957_s8 = sadd.s32 %s6243_s21, %s5154_s16 }
 0x9bb   : > { %2703 = vrot.lane.b32.xlu0 %v6144_v53, %s6265_s15  ;;  %v6147_v53 = vld [vmem:[%s6490_s17 + $0x10] sm:$0xff] }
 0x9bc   : > { %3299 = vrot.lane.b32.xlu1 %v6146_v29, %s6267_s13 }
 0x9bf   : > { %3297 = vrot.lane.b32.xlu0 %v6145_v61, %s6267_s13 }
 0x9c0   : > { %3301 = vrot.lane.b32.xlu1 %v6147_v53, %s6267_s13 }
 0x9c3   : > { %3833 = vrot.lane.b32.xlu0 %v6145_v61, %s6268_s12  ;;  %v6151_v61 = vld [vmem:[%s6490_s17 + $0x30] sm:$0xff] }
 0x9c4   : > { %3303 = vrot.lane.b32.xlu1 %v6148_v12, %s6267_s13 }
 0x9c7   : > { %3835 = vrot.lane.b32.xlu0 %v6146_v29, %s6268_s12  ;;  %v6152_v29 = vld [vmem:[%s6490_s17 + $0x38] sm:$0xff] }
 0x9c8   : > { %3305 = vrot.lane.b32.xlu1 %v6149_v3, %s6267_s13 }
 0x9cb   : > { %3837 = vrot.lane.b32.xlu0 %v6147_v53, %s6268_s12 }
 0x9cc   : > { %3307 = vrot.lane.b32.xlu1 %v6150_v43, %s6267_s13 }
 0x9cf   : > { %3839 = vrot.lane.b32.xlu0 %v6148_v12, %s6268_s12 }
 0x9d0   : > { %3309 = vrot.lane.b32.xlu1 %v6151_v61, %s6267_s13 }
 0x9d3   : > { %3841 = vrot.lane.b32.xlu0 %v6149_v3, %s6268_s12 }
 0x9d4   : > { %3311 = vrot.lane.b32.xlu1 %v6152_v29, %s6267_s13 }
 0x9d7   : > { %3843 = vrot.lane.b32.xlu0 %v6150_v43, %s6268_s12 }
 0x9d8   : > { %3847 = vrot.lane.b32.xlu1 %v6152_v29, %s6268_s12 }
 0x9db   : > { %3845 = vrot.lane.b32.xlu0 %v6151_v61, %s6268_s12 }
 0x9ec   : > { %v2544_v53 = vpop.xlane.xlu1 %2543 }
 0x9ed   : > { %5783 = vrcp.f32 %v2544_v53 }
 0x9ee   : > { %v2547_v12 = vpop.xlane.xlu0 %2546 }
 0x9ef   : > { %5785 = vrcp.f32 %v2547_v12 }
 0x9f4   : > { %v2550_v59 = vpop.xlane.xlu1 %2549 }
 0x9f5   : > { %5787 = vrcp.f32 %v2550_v59 }
 0x9f7   : > { %v5784_v57 = vpop.eup %5783 }
 0x9f8   : > { %v3076_v0 = vpop.xlane.xlu1 %3075  ;;  %v2553_v52 = vpop.xlane.xlu0 %2552  ;;  %v2607_v4 = vmul.f32 %v5784_v57, %v7730_v31  ;;  %v2606_v41 = vmul.f32 %v5784_v57, %v7728_v34 }
 0x9f9   : > { %v5786_v3 = vpop.eup %5785  ;;  %5789 = vrcp.f32 %v2553_v52 }
 0x9fa   : > { %v2609_v43 = vmul.f32 %v5786_v3, %v7737_v6  ;;  %v2608_v61 = vmul.f32 %v5786_v3, %v7732_v8  ;;  %5791 = vrcp.f32 %v3076_v0 }
 0x9fc   : > { %v2639_v29 = vpack.c.bf16 %v2609_v43, %v2607_v4  ;;  %v2638_v63 = vpack.c.bf16 %v2608_v61, %v2606_v41  ;;  %v2556_v53 = vpop.xlane.xlu1 %2555 }
 0x9fe   : > { %2660 = vmatprep.subr.bf16.mxu0 %v2639_v29  ;;  %v3079_v12 = vpop.xlane.xlu0 %3078 }
 0x9ff   : > { %2661 = vmatpush1.bf16.xpose.msra.mxu0 %v2638_v63  ;;  %5793 = vrcp.f32 %v3079_v12  ;;  %v5788_v28 = vpop.eup %5787 }
 0xa00   : > { %v3082_v59 = vpop.xlane.xlu1 %3081  ;;  %5795 = vrcp.f32 %v2556_v53  ;;  %v2611_v34 = vmul.f32 %v5788_v28, %v7750_v45  ;;  %v2610_v41 = vmul.f32 %v5788_v28, %v7748_v55 }
 0xa02   : > { %v2559_v51 = vpop.xlane.xlu0 %2558 }
 0xa03   : > { %5797 = vrcp.f32 %v2559_v51  ;;  %v5790_v31 = vpop.eup %5789 }
 0xa04   : > { %v2562_v6 = vpop.xlane.xlu1 %2561  ;;  %5799 = vrcp.f32 %v3082_v59  ;;  %v2613_v8 = vmul.f32 %v5790_v31, %v7764_v48  ;;  %v2612_v4 = vmul.f32 %v5790_v31, %v7762_v13  ;;  %v5792_v0 = vpop.eup %5791 }
 0xa05   : > { %v3139_v45 = vmul.f32 %v5792_v0, %v7757_v56  ;;  %v3138_v48 = vmul.f32 %v5792_v0, %v7752_v33 }
 0xa06   : > { %v3085_v57 = vpop.xlane.xlu0 %3084  ;;  %v2641_v63 = vpack.c.bf16 %v2613_v8, %v2611_v34  ;;  %v2640_v52 = vpack.c.bf16 %v2612_v4, %v2610_v41 }
 0xa07   : > { %5801 = vrcp.f32 %v3085_v57 }
 0xa08   : > { %v3088_v3 = vpop.xlane.xlu1 %3087  ;;  %5803 = vrcp.f32 %v2562_v6  ;;  %2662 = vmatprep.subr.bf16.mxu0 %v2641_v63 }
 0xa09   : > { %v5794_v43 = vpop.eup %5793  ;;  %2663 = vmatpush1.bf16.xpose.msra.mxu0 %v2640_v52 }
 0xa0a   : > { %v2565_v51 = vpop.xlane.xlu0 %2564  ;;  %v3141_v61 = vmul.f32 %v5794_v43, %v7783_v15  ;;  %v3140_v55 = vmul.f32 %v5794_v43, %v7778_v5  ;;  %v5796_v13 = vpop.eup %5795 }
 0xa0b   : > { %5805 = vrcp.f32 %v2565_v51  ;;  %v2615_v31 = vmul.f32 %v5796_v13, %v7776_v42  ;;  %v2614_v56 = vmul.f32 %v5796_v13, %v7774_v1 }
 0xa0c   : > { %v2568_v28 = vpop.xlane.xlu1 %2567  ;;  %v3171_v29 = vpack.c.bf16 %v3141_v61, %v3139_v45  ;;  %v3170_v53 = vpack.c.bf16 %v3140_v55, %v3138_v48  ;;  %5807 = vrcp.f32 %v3088_v3 }
 0xa0d   : > { %v5798_v12 = vpop.eup %5797 }
 0xa0e   : > { %3186 = vmatprep.subr.bf16.mxu1 %v3171_v29  ;;  %v3091_v59 = vpop.xlane.xlu0 %3090  ;;  %v2617_v6 = vmul.f32 %v5798_v12, %v7799_v24  ;;  %v2616_v15 = vmul.f32 %v5798_v12, %v7794_v50  ;;  %v5800_v33 = vpop.eup %5799 }
 0xa0f   : > { %5809 = vrcp.f32 %v3091_v59  ;;  %3187 = vmatpush1.bf16.xpose.msra.mxu1 %v3170_v53  ;;  %v3143_v57 = vmul.f32 %v5800_v33, %v7790_v62  ;;  %v3142_v24 = vmul.f32 %v5800_v33, %v7788_v16 }
 0xa10   : > { %v3094_v5 = vpop.xlane.xlu1 %3093  ;;  %v2643_v34 = vpack.c.bf16 %v2617_v6, %v2615_v31  ;;  %v2642_v8 = vpack.c.bf16 %v2616_v15, %v2614_v56  ;;  %5811 = vrcp.f32 %v2568_v28 }
 0xa11   : > { %v5802_v41 = vpop.eup %5801 }
 0xa12   : > { %2664 = vmatprep.subr.bf16.mxu0 %v2643_v34  ;;  %v2571_v4 = vpop.xlane.xlu0 %2570  ;;  %v3145_v42 = vmul.f32 %v5802_v41, %v7815_v58  ;;  %v3144_v1 = vmul.f32 %v5802_v41, %v7810_v25  ;;  %v5804_v0 = vpop.eup %5803 }
 0xa13   : > { %5813 = vrcp.f32 %v2571_v4  ;;  %2665 = vmatpush1.bf16.xpose.msra.mxu0 %v2642_v8  ;;  %v2619_v51 = vmul.f32 %v5804_v0, %v7806_v7  ;;  %v2618_v58 = vmul.f32 %v5804_v0, %v7804_v10 }
 0xa14   : > { %v2574_v50 = vpop.xlane.xlu1 %2573  ;;  %v3173_v63 = vpack.c.bf16 %v3145_v42, %v3143_v57  ;;  %v3172_v52 = vpack.c.bf16 %v3144_v1, %v3142_v24  ;;  %5815 = vrcp.f32 %v3094_v5 }
 0xa15   : > { %v5806_v3 = vpop.eup %5805 }
 0xa16   : > { %3188 = vmatprep.subr.bf16.mxu1 %v3173_v63  ;;  %v3097_v43 = vpop.xlane.xlu0 %3096  ;;  %v2621_v62 = vmul.f32 %v5806_v3, %v7831_v18  ;;  %v2620_v16 = vmul.f32 %v5806_v3, %v7826_v40  ;;  %v5808_v45 = vpop.eup %5807 }
 0xa17   : > { %5817 = vrcp.f32 %v3097_v43  ;;  %3189 = vmatpush1.bf16.xpose.msra.mxu1 %v3172_v52  ;;  %v3147_v28 = vmul.f32 %v5808_v45, %v7822_v30  ;;  %v3146_v18 = vmul.f32 %v5808_v45, %v7820_v14  ;;  %v9249_v43 = vld [vmem:[#allocation21_spill] sm:$0xff] }
 0xa18   : > { %v3100_v25 = vpop.xlane.xlu1 %3099  ;;  %v2645_v61 = vpack.c.bf16 %v2621_v62, %v2619_v51  ;;  %v2644_v48 = vpack.c.bf16 %v2620_v16, %v2618_v58  ;;  %5819 = vrcp.f32 %v2574_v50  ;;  %v9250_v62 = vld [vmem:[#allocation23_spill] sm:$0xff] }
 0xa19   : > { %v5810_v55 = vpop.eup %5809 }
 0xa1a   : > { %2666 = vmatprep.subr.bf16.mxu0 %v2645_v61  ;;  %v2577_v13 = vpop.xlane.xlu0 %2576  ;;  %v3149_v7 = vmul.f32 %v5810_v55, %v7847_v37  ;;  %v3148_v10 = vmul.f32 %v5810_v55, %v7842_v21  ;;  %v5812_v29 = vpop.eup %5811 }
 0xa1b   : > { %5821 = vrcp.f32 %v2577_v13  ;;  %2667 = vmatpush1.bf16.xpose.msra.mxu0 %v2644_v48  ;;  %v2623_v6 = vmul.f32 %v5812_v29, %v7838_v11  ;;  %v2622_v37 = vmul.f32 %v5812_v29, %v7836_v20 }
 0xa1c   : > { %v2580_v40 = vpop.xlane.xlu1 %2579  ;;  %v3175_v53 = vpack.c.bf16 %v3149_v7, %v3147_v28  ;;  %v3174_v12 = vpack.c.bf16 %v3148_v10, %v3146_v18  ;;  %5823 = vrcp.f32 %v3100_v25 }
 0xa1d   : > { %v5814_v59 = vpop.eup %5813 }
 0xa1e   : > { %3190 = vmatprep.subr.bf16.mxu1 %v3175_v53  ;;  %v3103_v31 = vpop.xlane.xlu0 %3102  ;;  %v2625_v30 = vmul.f32 %v5814_v59, %v7863_v32  ;;  %v2624_v14 = vmul.f32 %v5814_v59, %v7858_v27  ;;  %v5816_v56 = vpop.eup %5815 }
 0xa1f   : > { %5825 = vrcp.f32 %v3103_v31  ;;  %3191 = vmatpush1.bf16.xpose.msra.mxu1 %v3174_v12  ;;  %v3151_v8 = vmul.f32 %v5816_v56, %v7854_v54  ;;  %v3150_v32 = vmul.f32 %v5816_v56, %v7852_v35  ;;  %v9252_v31 = vld [vmem:[#allocation14_spill] sm:$0xff] }
 0xa20   : > { %v3106_v21 = vpop.xlane.xlu1 %3105  ;;  %v2647_v15 = vpack.c.bf16 %v2625_v30, %v2623_v6  ;;  %v2646_v33 = vpack.c.bf16 %v2624_v14, %v2622_v37  ;;  %5827 = vrcp.f32 %v2580_v40  ;;  %v9253_v30 = vld [vmem:[#allocation19_spill] sm:$0xff]  ;;  %v9254_v14 = vld [vmem:[#allocation22_spill] sm:$0xff] }
 0xa21   : > { %v5818_v5 = vpop.eup %5817 }
 0xa22   : > { %2668 = vmatprep.subr.bf16.mxu0 %v2647_v15  ;;  %v2583_v34 = vpop.xlane.xlu0 %2582  ;;  %v3153_v11 = vmul.f32 %v5818_v5, %v7879_v22  ;;  %v3152_v20 = vmul.f32 %v5818_v5, %v7874_v38  ;;  %v5820_v41 = vpop.eup %5819  ;;  %v9256_v5 = vld [vmem:[#allocation16_spill] sm:$0xff] }
 0xa23   : > { %5829 = vrcp.f32 %v2583_v34  ;;  %2669 = vmatpush1.bf16.xpose.msra.mxu0 %v2646_v33  ;;  %v2627_v1 = vmul.f32 %v5820_v41, %v7870_v47  ;;  %v2626_v22 = vmul.f32 %v5820_v41, %v7868_v39  ;;  %v9259_v41 = vld [vmem:[#allocation20_spill] sm:$0xff] }
 0xa24   : > { %v2586_v27 = vpop.xlane.xlu1 %2585  ;;  %v3177_v4 = vpack.c.bf16 %v3153_v11, %v3151_v8  ;;  %v3176_v57 = vpack.c.bf16 %v3152_v20, %v3150_v32  ;;  %5831 = vrcp.f32 %v3106_v21  ;;  %v9257_v8 = vld [vmem:[#allocation18_spill] sm:$0xff]  ;;  %v9258_v32 = vld [vmem:[#allocation15_spill] sm:$0xff] }
 0xa25   : > { %v5822_v42 = vpop.eup %5821 }
 0xa26   : > { %3192 = vmatprep.subr.bf16.mxu1 %v3177_v4  ;;  %v3109_v24 = vpop.xlane.xlu0 %3108  ;;  %v2629_v54 = vmul.f32 %v5822_v42, %v7895_v60  ;;  %v2628_v35 = vmul.f32 %v5822_v42, %v7890_v23  ;;  %v5824_v0 = vpop.eup %5823 }
 0xa27   : > { %5833 = vrcp.f32 %v3109_v24  ;;  %3193 = vmatpush1.bf16.xpose.msra.mxu1 %v3176_v57  ;;  %v3155_v51 = vmul.f32 %v5824_v0, %v9249_v43  ;;  %v3154_v60 = vmul.f32 %v5824_v0, %v9250_v62  ;;  %v2233_v57 = vld [vmem:[#allocation4] sm:$0xc0]  ;;  %v9261_v0 = vld [vmem:[#allocation11_spill] sm:$0xff]  ;;  %v9264_v62 = vmov 0  }
 0xa28   : > { %v3112_v38 = vpop.xlane.xlu1 %3111  ;;  %v2649_v50 = vpack.c.bf16 %v2629_v54, %v2627_v1  ;;  %v2648_v63 = vpack.c.bf16 %v2628_v35, %v2626_v22  ;;  %5835 = vrcp.f32 %v2586_v27  ;;  %v2656_v54 = vrot.slane %v2233_v57, 6  ;;  %v9260_v22 = vld [vmem:[#allocation9_spill] sm:$0xff] }
 0xa29   : > { %v5826_v52 = vpop.eup %5825 }
 0xa2a   : > { %2670 = vmatprep.subr.bf16.mxu0 %v2649_v50  ;;  %v2589_v3 = vpop.xlane.xlu0 %2588  ;;  %v3157_v47 = vmul.f32 %v5826_v52, %v7911_v49  ;;  %v3156_v39 = vmul.f32 %v5826_v52, %v7906_v9  ;;  %v5828_v58 = vpop.eup %5827 }
 0xa2b   : > { %5837 = vrcp.f32 %v2589_v3  ;;  %2671 = vmatpush1.bf16.xpose.msra.mxu0 %v2648_v63  ;;  %v2631_v48 = vmul.f32 %v5828_v58, %v7902_v36  ;;  %v2630_v49 = vmul.f32 %v5828_v58, %v7900_v44  ;;  %v9262_v63 = vld [vmem:[#allocation10_spill] sm:$0xff]  ;;  %v9263_v3 = vld [vmem:[#allocation8_spill] sm:$0xff] }
 0xa2c   : > { %v3179_v23 = vpack.c.bf16 %v3157_v47, %v3155_v51  ;;  %v3178_v16 = vpack.c.bf16 %v3156_v39, %v3154_v60  ;;  %5839 = vrcp.f32 %v3112_v38  ;;  %v3118_v25 = vpop.xlane.xlu1 %3117  ;;  %v2769_v47 = vld [vmem:[#allocation4 + $0x10] sm:$0x3] }
 0xa2d   : > { %v5830_v45 = vpop.eup %5829 }
 0xa2e   : > { %3194 = vmatprep.subr.bf16.mxu1 %v3179_v23  ;;  %v3115_v61 = vpop.xlane.xlu0 %3114  ;;  %v2633_v55 = vmul.f32 %v5830_v45, %v7928_v17  ;;  %v2632_v13 = vmul.f32 %v5830_v45, %v7922_v2  ;;  %v5832_v28 = vpop.eup %5831  ;;  %v9251_v17 = vld [vmem:[#allocation13_spill] sm:$0xff]  ;;  %v3830_v23 = vld [vmem:[#allocation3 + $0x18] sm:$0x30] }
 0xa2f   : > { %5841 = vrcp.f32 %v3115_v61  ;;  %3195 = vmatpush1.bf16.xpose.msra.mxu1 %v3178_v16  ;;  %v3159_v29 = vmul.f32 %v5832_v28, %v7918_v19  ;;  %v3158_v36 = vmul.f32 %v5832_v28, %v7916_v46  ;;  %v9255_v19 = vld [vmem:[#allocation17_spill] sm:$0xff]  ;;  %v3829_v16 = vld [vmem:[#allocation3 + $0x10] sm:$0x30]  ;;  %v3852_v45 = vrot.slane %v3830_v23, 4 }
 0xa30   : > { %v2651_v9 = vpack.c.bf16 %v2633_v55, %v2631_v48  ;;  %v2650_v7 = vpack.c.bf16 %v2632_v13, %v2630_v49  ;;  %5843 = vrcp.f32 %v3118_v25  ;;  %v2702_v60 = vpop.permute.xlu1 %2701  ;;  %v3851_v25 = vrot.slane %v3829_v16, 4 }
 0xa31   : > { %v5834_v18 = vpop.eup %5833 }
 0xa32   : > { %2672 = vmatprep.subr.bf16.mxu0 %v2651_v9  ;;  %v3121_v10 = vpop.xlane.xlu0 %3120  ;;  %v3161_v40 = vmul.f32 %v5834_v18, %v7940_v26  ;;  %v3160_v53 = vmul.f32 %v5834_v18, %v9251_v17  ;;  %v5836_v44 = vpop.eup %5835  ;;  %v3878_v61 = vsel %vm666_vm1, %v3851_v25, 0 }
 0xa33   : > { %5845 = vrcp.f32 %v3121_v10  ;;  %2673 = vmatpush1.bf16.xpose.msra.mxu0 %v2650_v7  ;;  %v2635_v6 = vmul.f32 %v5836_v44, %v9252_v31  ;;  %v2634_v56 = vmul.f32 %v5836_v44, %v9254_v14 }
 0xa34   : > { %v3181_v2 = vpack.c.bf16 %v3161_v40, %v3159_v29  ;;  %v3180_v12 = vpack.c.bf16 %v3160_v53, %v3158_v36  ;;  %v3228_v13 = vpop.permute.xlu1 %3227 }
 0xa35   : > { %v5838_v59 = vpop.eup %5837 }
 0xa36   : > { %3196 = vmatprep.subr.bf16.mxu1 %v3181_v2  ;;  %v2637_v37 = vmul.f32 %v5838_v59, %v9253_v30  ;;  %v2636_v21 = vmul.f32 %v5838_v59, %v9255_v19  ;;  %v5840_v26 = vpop.eup %5839  ;;  %v2704_v39 = vpop.permute.xlu0 %2703  ;;  %v3293_v19 = vld [vmem:[#allocation3 + $0x10] sm:$0xc] }
 0xa37   : > { %3197 = vmatpush1.bf16.xpose.msra.mxu1 %v3180_v12  ;;  %v3163_v34 = vmul.f32 %v5840_v26, %v9256_v5  ;;  %v3162_v20 = vmul.f32 %v5840_v26, %v9258_v32 }
 0xa38   : > { %v2653_v46 = vpack.c.bf16 %v2637_v37, %v2635_v6  ;;  %v2652_v15 = vpack.c.bf16 %v2636_v21, %v2634_v56  ;;  %v3230_v28 = vpop.permute.xlu1 %3229  ;;  %v3294_v56 = vld [vmem:[#allocation3 + $0x18] sm:$0xc] }
 0xa39   : > { %v5842_v33 = vpop.eup %5841 }
 0xa3a   : > { %2674 = vmatprep.subr.bf16.mxu0 %v2653_v46  ;;  %v3165_v11 = vmul.f32 %v5842_v33, %v9257_v8  ;;  %v3164_v27 = vmul.f32 %v5842_v33, %v9259_v41  ;;  %v5844_v4 = vpop.eup %5843  ;;  %v8074_v58 = vpop.permute.xlu0 %3297  ;;  %v3315_v33 = vrot.slane %v3293_v19, 2 }
 0xa3b   : > { %2675 = vmatpush1.bf16.xpose.msra.mxu0 %v2652_v15  ;;  %v3167_v35 = vmul.f32 %v5844_v4, %v9260_v22  ;;  %v3166_v43 = vmul.f32 %v5844_v4, %v9263_v3  ;;  %v3316_v15 = vrot.slane %v3294_v56, 2 }
 0xa3c   : > { %v3183_v42 = vpack.c.bf16 %v3165_v11, %v3163_v34  ;;  %v3182_v24 = vpack.c.bf16 %v3164_v27, %v3162_v20  ;;  %v3300_v7 = vpop.permute.xlu1 %3299  ;;  %v3342_v11 = vsel %vm666_vm1, %v3315_v33, 0 }
 0xa3d   : > { %v5846_v1 = vpop.eup %5845 }
 0xa3e   : > { %3198 = vmatprep.subr.bf16.mxu1 %v3183_v42  ;;  %v3169_v38 = vmul.f32 %v5846_v1, %v9261_v0  ;;  %v3168_v52 = vmul.f32 %v5846_v1, %v9262_v63  ;;  %v3834_v48 = vpop.permute.xlu0 %3833 }
 0xa3f   : > { %3199 = vmatpush1.bf16.xpose.msra.mxu1 %v3182_v24 }
 0xa40   : > { %v3185_v50 = vpack.c.bf16 %v3169_v38, %v3167_v35  ;;  %v3184_v51 = vpack.c.bf16 %v3168_v52, %v3166_v43  ;;  %v3302_v18 = vpop.permute.xlu1 %3301 }
 0xa42   : > { %2693 = vmatmul.mubr.bf16.vlgmr.msra.gmra.mrb[68].mxu0 %v2656_v54  ;;  %3200 = vmatprep.subr.bf16.mxu1 %v3185_v50  ;;  %v3836_v55 = vpop.permute.xlu0 %3835 }
 0xa43   : > { %5203 = vmatprep.mubr.msk.bf16.mxu0 %vm641_vm2, %v2702_v60 }
 0xa44   : > { %v3304_v29 = vpop.permute.xlu1 %3303 }
 0xa46   : > { %v3838_v49 = vpop.permute.xlu0 %3837 }
 0xa47   : > { %3201 = vmatpush1.bf16.xpose.msra.mxu1 %v3184_v51 }
 0xa48   : > { %5130 = vmatprep.subr.msk.bf16.mxu1 %vm666_vm1, %v3852_v45  ;;  %v3306_v40 = vpop.permute.xlu1 %3305 }
 0xa4a   : > { %v3840_v9 = vpop.permute.xlu0 %3839 }
 0xa4c   : > { %v3308_v17 = vpop.permute.xlu1 %3307 }
 0xa4e   : > { %3219 = vmatmul.mubr.bf16.vlgmr.msra.gmra.mrb[108].mxu1 %v2769_v47  ;;  %v3842_v10 = vpop.permute.xlu0 %3841 }
 0xa4f   : > { %3915 = vmatprep.mubr.bf16.mxu1 %v9264_v62  ;;  %3884 = vmatpush1.bf16.msra.mxu1 %v3878_v61 }
 0xa50   : > { %v3310_v53 = vpop.permute.xlu1 %3309 }
 0xa52   : > { %v3844_v36 = vpop.permute.xlu0 %3843 }
 0xa54   : > { %v3312_v2 = vpop.permute.xlu1 %3311 }
 0xa56   : > { %5131 = vmatmul.mubr.msk.bf16.vlgmr.msra.gmra.mrb[112].mxu1 %vm641_vm2, %v3834_v48  ;;  %v3846_v44 = vpop.permute.xlu0 %3845 }
 0xa57   : > { %3925 = vmatprep.mubr.bf16.mxu1 %v9264_v62 }
 0xa58   : > { %v3848_v12 = vpop.permute.xlu1 %3847 }
 0xa5e   : > { %5132 = vmatmul.mubr.msk.bf16.gmra.mrb[116].mxu1 %vm641_vm2, %v3836_v55 }
 0xa5f   : > { %3935 = vmatprep.mubr.bf16.mxu1 %v9264_v62 }
 0xa66   : > { %5133 = vmatmul.mubr.msk.bf16.gmra.mrb[120].mxu1 %vm641_vm2, %v3838_v49 }
 0xa67   : > { %3945 = vmatprep.mubr.bf16.mxu1 %v9264_v62 }
 0xa6e   : > { %5134 = vmatmul.mubr.msk.bf16.gmra.mrb[124].mxu1 %vm641_vm2, %v3840_v9 }
 0xa6f   : > { %3955 = vmatprep.mubr.bf16.mxu1 %v9264_v62 }
 0xa76   : > { %5135 = vmatmul.mubr.msk.bf16.gmra.mrb[128].mxu1 %vm641_vm2, %v3842_v10 }
 0xa77   : > { %3965 = vmatprep.mubr.bf16.mxu1 %v9264_v62 }
 0xa7e   : > { %5136 = vmatmul.mubr.msk.bf16.gmra.mrb[132].mxu1 %vm641_vm2, %v3844_v36 }
 0xa7f   : > { %3975 = vmatprep.mubr.bf16.mxu1 %v9264_v62 }
 0xa86   : > { %5137 = vmatmul.mubr.msk.bf16.gmra.mrb[136].mxu1 %vm641_vm2, %v3846_v44 }
 0xa87   : > { %3985 = vmatprep.mubr.bf16.mxu1 %v9264_v62 }
 0xa8e   : > { %5138 = vmatmul.mubr.msk.bf16.gmra.mrb[140].mxu1 %vm641_vm2, %v3848_v12 }
 0xb15   : > { %v2694_v59 = vpop.f32.mrb[68].mxu0 }
 0xb16   : > { %v2700_v31 = vpack.c.bf16 %v2694_v59, %v2694_v59  ;;  %v2696_v6 = vpop.f32.mrb[69].mxu0 }
 0xb17   : > { %v2697_v30 = vpop.f32.mrb[70].mxu0 }
 0xb18   : > { %v2712_v37 = vsel %vm666_vm1, %v2700_v31, 0  ;;  %v2698_v14 = vpop.f32.mrb[71].mxu0  ;;  %5266 = vmatprep.subr.msk.bf16.mxu0 %vm666_vm1, %v2700_v31 }
 0xb19   : > { %5202 = vmatpush3.bf16.msra.mxu0 %v2712_v37 }
 0xb1c   : > { %5204 = vmatmul.mubr.msk.bf16.vlgmr.msra.gmra.mrb[32].mxu0 %vm641_vm2, %v2704_v39 }
 0xb1d   : > { %5209 = vmatprep.mubr.msk.bf16.mxu0 %vm641_vm2, %v3228_v13 }
 0xb21   : > { %v3220_v21 = vpop.f32.mrb[108].mxu1 }
 0xb22   : > { %v3226_v26 = vpack.c.bf16 %v3220_v21, %v3220_v21  ;;  %v3222_v46 = vpop.f32.mrb[109].mxu1 }
 0xb23   : > { %v3223_v5 = vpop.f32.mrb[110].mxu1 }
 0xb24   : > { %v3238_v34 = vsel %vm666_vm1, %v3226_v26, 0  ;;  %v3224_v8 = vpop.f32.mrb[111].mxu1  ;;  %5267 = vmatprep.subr.msk.bf16.mxu0 %vm666_vm1, %v3226_v26 }
 0xb25   : > { %5208 = vmatpush3.bf16.msra.mxu0 %v3238_v34 }
 0xb26   : > { %5119 = vmatprep.subr.msk.bf16.mxu0 %vm666_vm1, %v3316_v15 }
 0xb28   : > { %5210 = vmatmul.mubr.msk.bf16.vlgmr.msra.gmra.mrb[32].mxu0 %vm641_vm2, %v3230_v28 }
 0xb29   : > { %3348 = vmatpush1.bf16.msra.mxu0 %v3342_v11  ;;  %3379 = vmatprep.mubr.bf16.mxu0 %v9264_v62  ;;  %v8119_v32 = vpop.f32.mrb[112].mxu1 }
 0xb2a   : > { %v8121_v20 = vpop.f32.mrb[113].mxu1 }
 0xb2b   : > { %v3996_v41 = vmax.f32 %v8119_v32, %v8121_v20  ;;  %v8125_v27 = vpop.f32.mrb[114].mxu1 }
 0xb2c   : > { %v8127_v4 = vpop.f32.mrb[115].mxu1 }
 0xb2d   : > { %v3999_v57 = vmax.f32 %v8125_v27, %v8127_v4 }
 0xb30   : > { %5120 = vmatmul.mubr.msk.bf16.vlgmr.msra.gmra.mrb[72].mxu0 %vm641_vm2, %v8074_v58 }
 0xb31   : > { %3389 = vmatprep.mubr.bf16.mxu0 %v9264_v62  ;;  %v8131_v42 = vpop.f32.mrb[116].mxu1 }
 0xb32   : > { %v8133_v24 = vpop.f32.mrb[117].mxu1 }
 0xb33   : > { %v4002_v1 = vmax.f32 %v8131_v42, %v8133_v24  ;;  %v8137_v54 = vpop.f32.mrb[118].mxu1 }
 0xb34   : > { %v8139_v22 = vpop.f32.mrb[119].mxu1 }
 0xb35   : > { %v4005_v35 = vmax.f32 %v8137_v54, %v8139_v22 }
 0xb38   : > { %5121 = vmatmul.mubr.msk.bf16.gmra.mrb[76].mxu0 %vm641_vm2, %v3300_v7 }
 0xb39   : > { %3399 = vmatprep.mubr.bf16.mxu0 %v9264_v62  ;;  %v8143_v0 = vpop.f32.mrb[120].mxu1 }
 0xb3a   : > { %v8145_v38 = vpop.f32.mrb[121].mxu1 }
 0xb3b   : > { %v4008_v50 = vmax.f32 %v8143_v0, %v8145_v38  ;;  %v8149_v63 = vpop.f32.mrb[122].mxu1 }
 0xb3c   : > { %v8151_v52 = vpop.f32.mrb[123].mxu1 }
 0xb3d   : > { %v4011_v3 = vmax.f32 %v8149_v63, %v8151_v52 }
 0xb40   : > { %5122 = vmatmul.mubr.msk.bf16.gmra.mrb[80].mxu0 %vm641_vm2, %v3302_v18 }
 0xb41   : > { %3409 = vmatprep.mubr.bf16.mxu0 %v9264_v62  ;;  %v8155_v43 = vpop.f32.mrb[124].mxu1 }
 0xb42   : > { %v8157_v51 = vpop.f32.mrb[125].mxu1 }
 0xb43   : > { %v4014_v47 = vmax.f32 %v8155_v43, %v8157_v51  ;;  %v8161_v60 = vpop.f32.mrb[126].mxu1 }
 0xb44   : > { %v8163_v39 = vpop.f32.mrb[127].mxu1 }
 0xb45   : > { %v4017_v58 = vmax.f32 %v8161_v60, %v8163_v39 }
 0xb48   : > { %5123 = vmatmul.mubr.msk.bf16.gmra.mrb[84].mxu0 %vm641_vm2, %v3304_v29 }
 0xb49   : > { %3419 = vmatprep.mubr.bf16.mxu0 %v9264_v62  ;;  %v8167_v23 = vpop.f32.mrb[128].mxu1 }
 0xb4a   : > { %v8169_v16 = vpop.f32.mrb[129].mxu1 }
 0xb4b   : > { %v4020_v45 = vmax.f32 %v8167_v23, %v8169_v16  ;;  %v8173_v25 = vpop.f32.mrb[130].mxu1 }
 0xb4c   : > { %v8175_v61 = vpop.f32.mrb[131].mxu1 }
 0xb50   : > { %5124 = vmatmul.mubr.msk.bf16.gmra.mrb[88].mxu0 %vm641_vm2, %v3306_v40 }
 0xb51   : > { %3429 = vmatprep.mubr.bf16.mxu0 %v9264_v62  ;;  %v8179_v55 = vpop.f32.mrb[132].mxu1 }
 0xb52   : > { %v8181_v49 = vpop.f32.mrb[133].mxu1 }
 0xb53   : > { %v8185_v28 = vpop.f32.mrb[134].mxu1 }
 0xb54   : > { %v8187_v9 = vpop.f32.mrb[135].mxu1 }
 0xb58   : > { %5125 = vmatmul.mubr.msk.bf16.gmra.mrb[92].mxu0 %vm641_vm2, %v3308_v17 }
 0xb59   : > { %3439 = vmatprep.mubr.bf16.mxu0 %v9264_v62  ;;  %v8191_v18 = vpop.f32.mrb[136].mxu1 }
 0xb5a   : > { %9265 = vst [vmem:[#allocation12_spill] sm:$0xff] %v8191_v18  ;;  %v8193_v10 = vpop.f32.mrb[137].mxu1 }
 0xb5b   : > { %9266 = vst [vmem:[#allocation21_spill] sm:$0xff] %v8193_v10  ;;  %v8197_v40 = vpop.f32.mrb[138].mxu1 }
 0xb5c   : > { %9267 = vst [vmem:[#allocation23_spill] sm:$0xff] %v8197_v40  ;;  %v8199_v36 = vpop.f32.mrb[139].mxu1 }
 0xb5d   : > { %9268 = vst [vmem:[#allocation13_spill] sm:$0xff] %v8199_v36 }
 0xb60   : > { %5126 = vmatmul.mubr.msk.bf16.gmra.mrb[96].mxu0 %vm641_vm2, %v3310_v53 }
 0xb61   : > { %3449 = vmatprep.mubr.bf16.mxu0 %v9264_v62  ;;  %v8203_v53 = vpop.f32.mrb[140].mxu1 }
 0xb62   : > { %v8205_v44 = vpop.f32.mrb[141].mxu1 }
 0xb63   : > { %v8209_v12 = vpop.f32.mrb[142].mxu1 }
 0xb64   : > { %v8211_v59 = vpop.f32.mrb[143].mxu1 }
 0xb65   : > { %9269 = vst [vmem:[#allocation14_spill] sm:$0xff] %v8211_v59 }
 0xb68   : > { %5127 = vmatmul.mubr.msk.bf16.gmra.mrb[100].mxu0 %vm641_vm2, %v3312_v2 }
 0xc03   : > { %v8215_v6 = vpop.f32.mrb[72].mxu0 }
 0xc04   : > { %v8217_v30 = vpop.f32.mrb[73].mxu0 }
 0xc05   : > { %v3460_v37 = vmax.f32 %v8215_v6, %v8217_v30  ;;  %v8221_v14 = vpop.f32.mrb[74].mxu0 }
 0xc06   : > { %v8223_v56 = vpop.f32.mrb[75].mxu0 }
 0xc07   : > { %v3463_v19 = vmax.f32 %v8221_v14, %v8223_v56  ;;  %3461 = vmax.xlane.f32.xlu0 %v3460_v37 }
 0xc09   : > { %3464 = vmax.xlane.f32.xlu1 %v3463_v19 }
 0xc0b   : > { %v8227_v21 = vpop.f32.mrb[76].mxu0 }
 0xc0c   : > { %v8229_v26 = vpop.f32.mrb[77].mxu0 }
 0xc0d   : > { %v3466_v46 = vmax.f32 %v8227_v21, %v8229_v26  ;;  %v8233_v15 = vpop.f32.mrb[78].mxu0  ;;  %3997 = vmax.xlane.f32.xlu1 %v3996_v41 }
 0xc0e   : > { %v8235_v33 = vpop.f32.mrb[79].mxu0 }
 0xc0f   : > { %v3469_v5 = vmax.f32 %v8233_v15, %v8235_v33  ;;  %3467 = vmax.xlane.f32.xlu0 %v3466_v46 }
 0xc13   : > { %3470 = vmax.xlane.f32.xlu0 %v3469_v5  ;;  %v8239_v34 = vpop.f32.mrb[80].mxu0 }
 0xc14   : > { %v8241_v8 = vpop.f32.mrb[81].mxu0 }
 0xc15   : > { %v3472_v11 = vmax.f32 %v8239_v34, %v8241_v8  ;;  %v8245_v37 = vpop.f32.mrb[82].mxu0 }
 0xc16   : > { %v8247_v19 = vpop.f32.mrb[83].mxu0 }
 0xc17   : > { %v3475_v41 = vmax.f32 %v8245_v37, %v8247_v19  ;;  %3473 = vmax.xlane.f32.xlu1 %v3472_v11  ;;  %4000 = vmax.xlane.f32.xlu0 %v3999_v57 }
 0xc1b   : > { %v8254_v46 = vpop.f32.mrb[84].mxu0  ;;  %3476 = vmax.xlane.f32.xlu0 %v3475_v41  ;;  %4003 = vmax.xlane.f32.xlu1 %v4002_v1 }
 0xc1c   : > { %v8259_v5 = vpop.f32.mrb[85].mxu0 }
 0xc1d   : > { %v3478_v31 = vmax.f32 %v8254_v46, %v8259_v5  ;;  %v8263_v2 = vpop.f32.mrb[86].mxu0 }
 0xc1e   : > { %v8265_v17 = vpop.f32.mrb[87].mxu0 }
 0xc1f   : > { %v3481_v11 = vmax.f32 %v8263_v2, %v8265_v17  ;;  %3479 = vmax.xlane.f32.xlu1 %v3478_v31  ;;  %4006 = vmax.xlane.f32.xlu0 %v4005_v35 }
 0xc23   : > { %v8272_v57 = vpop.f32.mrb[88].mxu0  ;;  %3482 = vmax.xlane.f32.xlu0 %v3481_v11  ;;  %4009 = vmax.xlane.f32.xlu1 %v4008_v50 }
 0xc24   : > { %v8277_v1 = vpop.f32.mrb[89].mxu0 }
 0xc25   : > { %v3484_v41 = vmax.f32 %v8272_v57, %v8277_v1  ;;  %v8281_v29 = vpop.f32.mrb[90].mxu0 }
 0xc26   : > { %v8283_v7 = vpop.f32.mrb[91].mxu0 }
 0xc27   : > { %v3487_v31 = vmax.f32 %v8281_v29, %v8283_v7  ;;  %3485 = vmax.xlane.f32.xlu1 %v3484_v41  ;;  %4012 = vmax.xlane.f32.xlu0 %v4011_v3 }
 0xc2b   : > { %v8290_v35 = vpop.f32.mrb[92].mxu0  ;;  %3488 = vmax.xlane.f32.xlu0 %v3487_v31  ;;  %4015 = vmax.xlane.f32.xlu1 %v4014_v47 }
 0xc2c   : > { %v8295_v50 = vpop.f32.mrb[93].mxu0 }
 0xc2d   : > { %v3490_v11 = vmax.f32 %v8290_v35, %v8295_v50  ;;  %v8299_v13 = vpop.f32.mrb[94].mxu0 }
 0xc2e   : > { %9270 = vst [vmem:[#allocation19_spill] sm:$0xff] %v8299_v13  ;;  %v8301_v48 = vpop.f32.mrb[95].mxu0 }
 0xc2f   : > { %9271 = vst [vmem:[#allocation22_spill] sm:$0xff] %v8301_v48  ;;  %v3493_v41 = vmax.f32 %v8299_v13, %v8301_v48  ;;  %3491 = vmax.xlane.f32.xlu1 %v3490_v11  ;;  %4018 = vmax.xlane.f32.xlu0 %v4017_v58  ;;  %v9275_v58 = vmax.f32 %v8173_v25, %v8175_v61 }
 0xc33   : > { %v8308_v3 = vpop.f32.mrb[96].mxu0  ;;  %3494 = vmax.xlane.f32.xlu0 %v3493_v41  ;;  %4021 = vmax.xlane.f32.xlu1 %v4020_v45  ;;  %v9276_v45 = vmax.f32 %v8179_v55, %v8181_v49 }
 0xc34   : > { %9272 = vst [vmem:[#allocation17_spill] sm:$0xff] %v8308_v3  ;;  %v8313_v47 = vpop.f32.mrb[97].mxu0 }
 0xc35   : > { %9273 = vst [vmem:[#allocation16_spill] sm:$0xff] %v8313_v47  ;;  %v3496_v31 = vmax.f32 %v8308_v3, %v8313_v47  ;;  %v8317_v62 = vpop.f32.mrb[98].mxu0 }
 0xc36   : > { %v8319_v48 = vpop.f32.mrb[99].mxu0 }
 0xc37   : > { %9274 = vst [vmem:[#allocation18_spill] sm:$0xff] %v8319_v48  ;;  %v3499_v11 = vmax.f32 %v8317_v62, %v8319_v48  ;;  %3497 = vmax.xlane.f32.xlu1 %v3496_v31  ;;  %4024 = vmax.xlane.f32.xlu0 %v9275_v58  ;;  %v9281_v58 = vmax.f32 %v8191_v18, %v8193_v10 }
 0xc3b   : > { %v8326_v41 = vpop.f32.mrb[100].mxu0  ;;  %3500 = vmax.xlane.f32.xlu0 %v3499_v11  ;;  %4027 = vmax.xlane.f32.xlu1 %v9276_v45  ;;  %v9280_v11 = vmax.f32 %v8185_v28, %v8187_v9  ;;  %v9282_v45 = vmax.f32 %v8197_v40, %v8199_v36 }
 0xc3c   : > { %v8331_v47 = vpop.f32.mrb[101].mxu0 }
 0xc3d   : > { %9277 = vst [vmem:[#allocation15_spill] sm:$0xff] %v8331_v47  ;;  %v3502_v3 = vmax.f32 %v8326_v41, %v8331_v47  ;;  %v8335_v13 = vpop.f32.mrb[102].mxu0  ;;  %v9283_v47 = vmax.f32 %v8203_v53, %v8205_v44 }
 0xc3e   : > { %9278 = vst [vmem:[#allocation20_spill] sm:$0xff] %v8335_v13  ;;  %v8337_v48 = vpop.f32.mrb[103].mxu0 }
 0xc3f   : > { %9279 = vst [vmem:[#allocation9_spill] sm:$0xff] %v8337_v48  ;;  %v3505_v31 = vmax.f32 %v8335_v13, %v8337_v48  ;;  %3503 = vmax.xlane.f32.xlu1 %v3502_v3  ;;  %4030 = vmax.xlane.f32.xlu0 %v9280_v11  ;;  %v9284_v3 = vmax.f32 %v8209_v12, %v8211_v59 }
 0xc43   : > { %3506 = vmax.xlane.f32.xlu0 %v3505_v31  ;;  %4033 = vmax.xlane.f32.xlu1 %v9281_v58 }
 0xc47   : > { %4036 = vmax.xlane.f32.xlu0 %v9282_v45  ;;  %4039 = vmax.xlane.f32.xlu1 %v9283_v47 }
 0xc4b   : > { %4042 = vmax.xlane.f32.xlu0 %v9284_v3 }
 0xc94   : > { %v3462_v48 = vpop.xlane.xlu0 %3461 }
 0xc95   : > { %v3508_v11 = vsub.f32 %v8215_v6, %v3462_v48  ;;  %v3509_v31 = vsub.f32 %v8217_v30, %v3462_v48 }
 0xc96   : > { %v3465_v13 = vpop.xlane.xlu1 %3464 }
 0xc97   : > { %v3540_v10 = vmul.f32 1.442695, %v3508_v11  ;;  %v3542_v58 = vmul.f32 1.442695, %v3509_v31  ;;  %v3510_v18 = vsub.f32 %v8221_v14, %v3465_v13  ;;  %v3511_v45 = vsub.f32 %v8223_v56, %v3465_v13 }
 0xc99   : > { %5847 = vpow2.f32 %v3540_v10  ;;  %v3544_v36 = vmul.f32 1.442695, %v3510_v18  ;;  %v3546_v40 = vmul.f32 1.442695, %v3511_v45 }
 0xc9a   : > { %5849 = vpow2.f32 %v3542_v58  ;;  %v3998_v47 = vpop.xlane.xlu1 %3997 }
 0xc9b   : > { %5851 = vpow2.f32 %v3544_v36  ;;  %v4044_v3 = vsub.f32 %v8119_v32, %v3998_v47  ;;  %v4045_v6 = vsub.f32 %v8121_v20, %v3998_v47 }
 0xc9c   : > { %5853 = vpow2.f32 %v3546_v40  ;;  %v3468_v59 = vpop.xlane.xlu0 %3467 }
 0xc9d   : > { %v3512_v48 = vsub.f32 %v8227_v21, %v3468_v59  ;;  %v3513_v30 = vsub.f32 %v8229_v26, %v3468_v59  ;;  %v4076_v11 = vmul.f32 1.442695, %v4044_v3  ;;  %v4078_v13 = vmul.f32 1.442695, %v4045_v6 }
 0xc9f   : > { %v3548_v14 = vmul.f32 1.442695, %v3512_v48  ;;  %v3550_v31 = vmul.f32 1.442695, %v3513_v30 }
 0xca0   : > { %v3471_v10 = vpop.xlane.xlu0 %3470 }
 0xca1   : > { %5855 = vpow2.f32 %v3548_v14  ;;  %v3514_v18 = vsub.f32 %v8233_v15, %v3471_v10  ;;  %v3515_v36 = vsub.f32 %v8235_v33, %v3471_v10 }
 0xca2   : > { %5857 = vpow2.f32 %v3550_v31 }
 0xca3   : > { %v8366_v32 = vpop.eup %5847  ;;  %5859 = vpow2.f32 %v4076_v11  ;;  %v3552_v20 = vmul.f32 1.442695, %v3514_v18  ;;  %v3554_v40 = vmul.f32 1.442695, %v3515_v36 }
 0xca4   : > { %v8368_v56 = vpop.eup %5849  ;;  %5861 = vpow2.f32 %v4078_v13  ;;  %v3474_v59 = vpop.xlane.xlu1 %3473 }
 0xca5   : > { %v4001_v21 = vpop.xlane.xlu0 %4000  ;;  %v8370_v26 = vpop.eup %5851  ;;  %5863 = vpow2.f32 %v3552_v20  ;;  %v3516_v58 = vsub.f32 %v8239_v34, %v3474_v59  ;;  %v3517_v15 = vsub.f32 %v8241_v8, %v3474_v59  ;;  %v3604_v3 = vadd.f32 %v8368_v56, %v8366_v32 }
 0xca6   : > { %v4046_v33 = vsub.f32 %v8125_v27, %v4001_v21  ;;  %v8375_v45 = vpop.eup %5853  ;;  %5865 = vpow2.f32 %v3554_v40  ;;  %v4047_v47 = vsub.f32 %v8127_v4, %v4001_v21 }
 0xca7   : > { %v3556_v6 = vmul.f32 1.442695, %v3516_v58  ;;  %v3558_v48 = vmul.f32 1.442695, %v3517_v15  ;;  %v3607_v11 = vadd.f32 %v8375_v45, %v8370_v26  ;;  %3605 = vadd.xlane.f32.xlu1 %v3604_v3 }
 0xca8   : > { %v4080_v30 = vmul.f32 1.442695, %v4046_v33  ;;  %v4082_v14 = vmul.f32 1.442695, %v4047_v47  ;;  %v4004_v34 = vpop.xlane.xlu1 %4003 }
 0xca9   : > { %v3477_v8 = vpop.xlane.xlu0 %3476  ;;  %5867 = vpow2.f32 %v3556_v6  ;;  %v4048_v27 = vsub.f32 %v8131_v42, %v4004_v34  ;;  %v4049_v31 = vsub.f32 %v8133_v24, %v4004_v34  ;;  %3608 = vadd.xlane.f32.xlu0 %v3607_v11 }
 0xcaa   : > { %v3518_v4 = vsub.f32 %v8245_v37, %v3477_v8  ;;  %5869 = vpow2.f32 %v3558_v48  ;;  %v3519_v13 = vsub.f32 %v8247_v19, %v3477_v8 }
 0xcab   : > { %v8386_v10 = vpop.eup %5855  ;;  %5871 = vpow2.f32 %v4080_v30  ;;  %v4084_v18 = vmul.f32 1.442695, %v4048_v27  ;;  %v4086_v36 = vmul.f32 1.442695, %v4049_v31 }
 0xcac   : > { %v3560_v20 = vmul.f32 1.442695, %v3518_v4  ;;  %v8388_v40 = vpop.eup %5857  ;;  %5873 = vpow2.f32 %v4082_v14  ;;  %v3562_v59 = vmul.f32 1.442695, %v3519_v13  ;;  %v3480_v21 = vpop.xlane.xlu1 %3479 }
 0xcad   : > { %v4007_v42 = vpop.xlane.xlu0 %4006  ;;  %v8390_v58 = vpop.eup %5859  ;;  %5875 = vpow2.f32 %v4084_v18  ;;  %v3520_v24 = vsub.f32 %v8254_v46, %v3480_v21  ;;  %v3521_v37 = vsub.f32 %v8259_v5, %v3480_v21  ;;  %v3610_v47 = vadd.f32 %v8388_v40, %v8386_v10 }
 0xcae   : > { %v4050_v19 = vsub.f32 %v8137_v54, %v4007_v42  ;;  %v8395_v15 = vpop.eup %5861  ;;  %5877 = vpow2.f32 %v4086_v36  ;;  %v4051_v33 = vsub.f32 %v8139_v22, %v4007_v42 }
 0xcaf   : > { %v8400_v3 = vpop.eup %5863  ;;  %5879 = vpow2.f32 %v3560_v20  ;;  %v3564_v6 = vmul.f32 1.442695, %v3520_v24  ;;  %v3566_v48 = vmul.f32 1.442695, %v3521_v37  ;;  %3611 = vadd.xlane.f32.xlu1 %v3610_v47  ;;  %v4140_v27 = vadd.f32 %v8395_v15, %v8390_v58 }
 0xcb0   : > { %v4088_v30 = vmul.f32 1.442695, %v4050_v19  ;;  %v8402_v11 = vpop.eup %5865  ;;  %5881 = vpow2.f32 %v3562_v59  ;;  %v4090_v46 = vmul.f32 1.442695, %v4051_v33  ;;  %v4010_v54 = vpop.xlane.xlu1 %4009 }
 0xcb1   : > { %v3483_v5 = vpop.xlane.xlu0 %3482  ;;  %5883 = vpow2.f32 %v3564_v6  ;;  %v4052_v14 = vsub.f32 %v8143_v0, %v4010_v54  ;;  %v4053_v22 = vsub.f32 %v8145_v38, %v4010_v54  ;;  %v3613_v31 = vadd.f32 %v8402_v11, %v8400_v3 }
 0xcb2   : > { %v3522_v34 = vsub.f32 %v8263_v2, %v3483_v5  ;;  %5885 = vpow2.f32 %v3566_v48  ;;  %v3523_v8 = vsub.f32 %v8265_v17, %v3483_v5 }
 0xcb3   : > { %v8412_v4 = vpop.eup %5867  ;;  %5887 = vpow2.f32 %v4088_v30  ;;  %v4092_v13 = vmul.f32 1.442695, %v4052_v14  ;;  %v4094_v18 = vmul.f32 1.442695, %v4053_v22  ;;  %4141 = vadd.xlane.f32.xlu1 %v4140_v27  ;;  %3614 = vadd.xlane.f32.xlu0 %v3613_v31 }
 0xcb4   : > { %v3568_v36 = vmul.f32 1.442695, %v3522_v34  ;;  %v8414_v0 = vpop.eup %5869  ;;  %5889 = vpow2.f32 %v4090_v46  ;;  %v3570_v38 = vmul.f32 1.442695, %v3523_v8  ;;  %v3486_v2 = vpop.xlane.xlu1 %3485 }
 0xcb5   : > { %v4013_v17 = vpop.xlane.xlu0 %4012  ;;  %v8416_v20 = vpop.eup %5871  ;;  %5891 = vpow2.f32 %v4092_v13  ;;  %v3524_v59 = vsub.f32 %v8272_v57, %v3486_v2  ;;  %v3525_v21 = vsub.f32 %v8277_v1, %v3486_v2  ;;  %v3616_v19 = vadd.f32 %v8414_v0, %v8412_v4 }
 0xcb6   : > { %v4054_v42 = vsub.f32 %v8149_v63, %v4013_v17  ;;  %v8421_v24 = vpop.eup %5873  ;;  %5893 = vpow2.f32 %v4094_v18  ;;  %v4055_v37 = vsub.f32 %v8151_v52, %v4013_v17 }
 0xcb7   : > { %v8426_v33 = vpop.eup %5875  ;;  %5895 = vpow2.f32 %v3568_v36  ;;  %v3572_v47 = vmul.f32 1.442695, %v3524_v59  ;;  %v3574_v6 = vmul.f32 1.442695, %v3525_v21  ;;  %3617 = vadd.xlane.f32.xlu1 %v3616_v19  ;;  %v4143_v63 = vadd.f32 %v8421_v24, %v8416_v20 }
 0xcb8   : > { %v4096_v48 = vmul.f32 1.442695, %v4054_v42  ;;  %v8428_v30 = vpop.eup %5877  ;;  %5897 = vpow2.f32 %v3570_v38  ;;  %v4098_v57 = vmul.f32 1.442695, %v4055_v37  ;;  %v4016_v1 = vpop.xlane.xlu1 %4015 }
 0xcb9   : > { %v3489_v46 = vpop.xlane.xlu0 %3488  ;;  %v8432_v52 = vpop.eup %5879  ;;  %5899 = vpow2.f32 %v3572_v47  ;;  %v4056_v54 = vsub.f32 %v8155_v43, %v4016_v1  ;;  %v4057_v5 = vsub.f32 %v8157_v51, %v4016_v1  ;;  %4144 = vadd.xlane.f32.xlu0 %v4143_v63  ;;  %v4146_v8 = vadd.f32 %v8428_v30, %v8426_v33 }
 0xcba   : > { %v3526_v14 = vsub.f32 %v8281_v29, %v3489_v46  ;;  %v8437_v22 = vpop.eup %5881  ;;  %5901 = vpow2.f32 %v3574_v6  ;;  %v3527_v34 = vsub.f32 %v8283_v7, %v3489_v46 }
 0xcbb   : > { %v8442_v27 = vpop.eup %5883  ;;  %5903 = vpow2.f32 %v4096_v48  ;;  %v4100_v31 = vmul.f32 1.442695, %v4056_v54  ;;  %v4102_v13 = vmul.f32 1.442695, %v4057_v5  ;;  %4147 = vadd.xlane.f32.xlu1 %v4146_v8  ;;  %v3619_v29 = vadd.f32 %v8437_v22, %v8432_v52  ;;  %v9285_v54 = vld [vmem:[#allocation19_spill] sm:$0xff] }
 0xcbc   : > { %v3576_v18 = vmul.f32 1.442695, %v3526_v14  ;;  %v8444_v43 = vpop.eup %5885  ;;  %5905 = vpow2.f32 %v4098_v57  ;;  %v3578_v51 = vmul.f32 1.442695, %v3527_v34  ;;  %v3492_v36 = vpop.xlane.xlu1 %3491  ;;  %v9286_v34 = vld [vmem:[#allocation22_spill] sm:$0xff] }
 0xcbd   : > { %v4019_v38 = vpop.xlane.xlu0 %4018  ;;  %v8448_v7 = vpop.eup %5887  ;;  %5907 = vpow2.f32 %v4100_v31  ;;  %v3528_v2 = vsub.f32 %v8290_v35, %v3492_v36  ;;  %v3529_v17 = vsub.f32 %v8295_v50, %v3492_v36  ;;  %3620 = vadd.xlane.f32.xlu0 %v3619_v29  ;;  %v3622_v37 = vadd.f32 %v8444_v43, %v8442_v27 }
 0xcbe   : > { %v4058_v59 = vsub.f32 %v8161_v60, %v4019_v38  ;;  %v8453_v21 = vpop.eup %5889  ;;  %5909 = vpow2.f32 %v4102_v13  ;;  %v4059_v42 = vsub.f32 %v8163_v39, %v4019_v38 }
 0xcbf   : > { %v8458_v19 = vpop.eup %5891  ;;  %5911 = vpow2.f32 %v3576_v18  ;;  %v3580_v47 = vmul.f32 1.442695, %v3528_v2  ;;  %v3582_v6 = vmul.f32 1.442695, %v3529_v17  ;;  %3623 = vadd.xlane.f32.xlu1 %v3622_v37  ;;  %v4149_v60 = vadd.f32 %v8453_v21, %v8448_v7  ;;  %v9288_v37 = vld [vmem:[#allocation16_spill] sm:$0xff] }
 0xcc0   : > { %v4104_v48 = vmul.f32 1.442695, %v4058_v59  ;;  %v8460_v35 = vpop.eup %5893  ;;  %5913 = vpow2.f32 %v3578_v51  ;;  %v4106_v50 = vmul.f32 1.442695, %v4059_v42  ;;  %v4022_v57 = vpop.xlane.xlu1 %4021  ;;  %v9287_v59 = vld [vmem:[#allocation17_spill] sm:$0xff] }
 0xcc1   : > { %v3495_v63 = vpop.xlane.xlu0 %3494  ;;  %v8464_v39 = vpop.eup %5895  ;;  %5915 = vpow2.f32 %v3580_v47  ;;  %v4060_v1 = vsub.f32 %v8167_v23, %v4022_v57  ;;  %v4061_v46 = vsub.f32 %v8169_v16, %v4022_v57  ;;  %4150 = vadd.xlane.f32.xlu0 %v4149_v60  ;;  %v4152_v31 = vadd.f32 %v8460_v35, %v8458_v19 }
 0xcc2   : > { %v3530_v5 = vsub.f32 %v9285_v54, %v3495_v63  ;;  %v8469_v14 = vpop.eup %5897  ;;  %5917 = vpow2.f32 %v3582_v6  ;;  %v3531_v8 = vsub.f32 %v9286_v34, %v3495_v63 }
 0xcc3   : > { %v8474_v13 = vpop.eup %5899  ;;  %5919 = vpow2.f32 %v4104_v48  ;;  %v4108_v18 = vmul.f32 1.442695, %v4060_v1  ;;  %v4110_v51 = vmul.f32 1.442695, %v4061_v46  ;;  %4153 = vadd.xlane.f32.xlu1 %v4152_v31  ;;  %v3625_v36 = vadd.f32 %v8469_v14, %v8464_v39 }
 0xcc4   : > { %v3584_v29 = vmul.f32 1.442695, %v3530_v5  ;;  %v8476_v23 = vpop.eup %5901  ;;  %5921 = vpow2.f32 %v4106_v50  ;;  %v3586_v16 = vmul.f32 1.442695, %v3531_v8  ;;  %v3498_v38 = vpop.xlane.xlu1 %3497 }
 0xcc5   : > { %v4025_v2 = vpop.xlane.xlu0 %4024  ;;  %v8480_v17 = vpop.eup %5903  ;;  %5923 = vpow2.f32 %v4108_v18  ;;  %v3532_v42 = vsub.f32 %v9287_v59, %v3498_v38  ;;  %v3533_v47 = vsub.f32 %v9288_v37, %v3498_v38  ;;  %3626 = vadd.xlane.f32.xlu0 %v3625_v36  ;;  %v3628_v60 = vadd.f32 %v8476_v23, %v8474_v13 }
 0xcc6   : > { %v4062_v6 = vsub.f32 %v8173_v25, %v4025_v2  ;;  %v8485_v48 = vpop.eup %5905  ;;  %5925 = vpow2.f32 %v4110_v51  ;;  %v4063_v50 = vsub.f32 %v8175_v61, %v4025_v2 }
 0xcc7   : > { %v8490_v57 = vpop.eup %5907  ;;  %5927 = vpow2.f32 %v3584_v29  ;;  %v3588_v63 = vmul.f32 1.442695, %v3532_v42  ;;  %v3590_v1 = vmul.f32 1.442695, %v3533_v47  ;;  %3629 = vadd.xlane.f32.xlu1 %v3628_v60  ;;  %v4155_v25 = vadd.f32 %v8485_v48, %v8480_v17 }
 0xcc8   : > { %v4112_v46 = vmul.f32 1.442695, %v4062_v6  ;;  %v8492_v54 = vpop.eup %5909  ;;  %5929 = vpow2.f32 %v3586_v16  ;;  %v4114_v5 = vmul.f32 1.442695, %v4063_v50  ;;  %v4028_v34 = vpop.xlane.xlu1 %4027  ;;  %v9289_v16 = vld [vmem:[#allocation18_spill] sm:$0xff] }
 0xcc9   : > { %v3501_v8 = vpop.xlane.xlu0 %3500  ;;  %v8496_v61 = vpop.eup %5911  ;;  %5931 = vpow2.f32 %v3588_v63  ;;  %v4064_v31 = vsub.f32 %v8179_v55, %v4028_v34  ;;  %v4065_v18 = vsub.f32 %v8181_v49, %v4028_v34  ;;  %4156 = vadd.xlane.f32.xlu0 %v4155_v25  ;;  %v4158_v38 = vadd.f32 %v8492_v54, %v8490_v57  ;;  %v9290_v63 = vld [vmem:[#allocation15_spill] sm:$0xff] }
 0xcca   : > { %v3534_v51 = vsub.f32 %v8317_v62, %v3501_v8  ;;  %v8501_v29 = vpop.eup %5913  ;;  %5933 = vpow2.f32 %v3590_v1  ;;  %v3535_v36 = vsub.f32 %v9289_v16, %v3501_v8 }
 0xccb   : > { %v8506_v2 = vpop.eup %5915  ;;  %5935 = vpow2.f32 %v4112_v46  ;;  %v4116_v59 = vmul.f32 1.442695, %v4064_v31  ;;  %v4118_v42 = vmul.f32 1.442695, %v4065_v18  ;;  %4159 = vadd.xlane.f32.xlu1 %v4158_v38  ;;  %v3631_v62 = vadd.f32 %v8501_v29, %v8496_v61 }
 0xccc   : > { %v3592_v37 = vmul.f32 1.442695, %v3534_v51  ;;  %v8508_v55 = vpop.eup %5917  ;;  %5937 = vpow2.f32 %v4114_v5  ;;  %v3594_v49 = vmul.f32 1.442695, %v3535_v36  ;;  %v3504_v47 = vpop.xlane.xlu1 %3503 }
 0xccd   : > { %v4031_v6 = vpop.xlane.xlu0 %4030  ;;  %v8512_v50 = vpop.eup %5919  ;;  %5939 = vpow2.f32 %v4116_v59  ;;  %v3536_v60 = vsub.f32 %v8326_v41, %v3504_v47  ;;  %v3537_v1 = vsub.f32 %v9290_v63, %v3504_v47  ;;  %3632 = vadd.xlane.f32.xlu0 %v3631_v62  ;;  %v3634_v34 = vadd.f32 %v8508_v55, %v8506_v2  ;;  %v9293_v59 = vld [vmem:[#allocation12_spill] sm:$0xff]  ;;  %v9294_v62 = vld [vmem:[#allocation21_spill] sm:$0xff] }
 0xcce   : > { %v4066_v46 = vsub.f32 %v8185_v28, %v4031_v6  ;;  %v8517_v25 = vpop.eup %5921  ;;  %5941 = vpow2.f32 %v4118_v42  ;;  %v4067_v5 = vsub.f32 %v8187_v9, %v4031_v6  ;;  %v9295_v47 = vld [vmem:[#allocation20_spill] sm:$0xff] }
 0xccf   : > { %v8522_v8 = vpop.eup %5923  ;;  %5943 = vpow2.f32 %v3592_v37  ;;  %v3596_v31 = vmul.f32 1.442695, %v3536_v60  ;;  %v3598_v18 = vmul.f32 1.442695, %v3537_v1  ;;  %3635 = vadd.xlane.f32.xlu1 %v3634_v34  ;;  %v4161_v28 = vadd.f32 %v8517_v25, %v8512_v50 }
 0xcd0   : > { %9291 = vst [vmem:[#allocation11_spill] sm:$0xff] %v8522_v8  ;;  %v4120_v51 = vmul.f32 1.442695, %v4066_v46  ;;  %v8524_v41 = vpop.eup %5925  ;;  %5945 = vpow2.f32 %v3594_v49  ;;  %v4122_v16 = vmul.f32 1.442695, %v4067_v5  ;;  %v4034_v36 = vpop.xlane.xlu1 %4033  ;;  %v9296_v49 = vld [vmem:[#allocation9_spill] sm:$0xff] }
 0xcd1   : > { %9292 = vst [vmem:[#allocation10_spill] sm:$0xff] %v8524_v41  ;;  %v3507_v38 = vpop.xlane.xlu0 %3506  ;;  %v8528_v9 = vpop.eup %5927  ;;  %5947 = vpow2.f32 %v3596_v31  ;;  %v4068_v42 = vsub.f32 %v9293_v59, %v4034_v36  ;;  %v4069_v37 = vsub.f32 %v9294_v62, %v4034_v36  ;;  %4162 = vadd.xlane.f32.xlu0 %v4161_v28  ;;  %v4164_v1 = vadd.f32 %v8524_v41, %v8522_v8 }
 0xcd2   : > { %v3538_v6 = vsub.f32 %v9295_v47, %v3507_v38  ;;  %v8533_v60 = vpop.eup %5929  ;;  %5949 = vpow2.f32 %v3598_v18  ;;  %v3539_v63 = vsub.f32 %v9296_v49, %v3507_v38 }
 0xcd3   : > { %v8538_v46 = vpop.eup %5931  ;;  %5951 = vpow2.f32 %v4120_v51  ;;  %v4124_v5 = vmul.f32 1.442695, %v4068_v42  ;;  %v4126_v34 = vmul.f32 1.442695, %v4069_v37  ;;  %4165 = vadd.xlane.f32.xlu1 %v4164_v1  ;;  %v3637_v18 = vadd.f32 %v8533_v60, %v8528_v9  ;;  %v9297_v42 = vld [vmem:[#allocation23_spill] sm:$0xff] }
 0xcd4   : > { %v3600_v31 = vmul.f32 1.442695, %v3538_v6  ;;  %v8540_v59 = vpop.eup %5933  ;;  %5953 = vpow2.f32 %v4122_v16  ;;  %v3602_v36 = vmul.f32 1.442695, %v3539_v63  ;;  %v4040_v28 = vpop.xlane.xlu1 %4039  ;;  %v9298_v16 = vld [vmem:[#allocation13_spill] sm:$0xff] }
 0xcd5   : > { %v4037_v62 = vpop.xlane.xlu0 %4036  ;;  %v8544_v38 = vpop.eup %5935  ;;  %5955 = vpow2.f32 %v4124_v5  ;;  %v4072_v47 = vsub.f32 %v8203_v53, %v4040_v28  ;;  %v4073_v51 = vsub.f32 %v8205_v44, %v4040_v28  ;;  %3638 = vadd.xlane.f32.xlu0 %v3637_v18  ;;  %v3640_v63 = vadd.f32 %v8540_v59, %v8538_v46 }
 0xcd6   : > { %v4070_v37 = vsub.f32 %v9297_v42, %v4037_v62  ;;  %v8549_v6 = vpop.eup %5937  ;;  %5957 = vpow2.f32 %v4126_v34  ;;  %v4071_v49 = vsub.f32 %v9298_v16, %v4037_v62  ;;  %v9299_v42 = vld [vmem:[#allocation14_spill] sm:$0xff] }
 0xcd7   : > { %v8554_v1 = vpop.eup %5939  ;;  %5959 = vpow2.f32 %v3600_v31  ;;  %v4132_v8 = vmul.f32 1.442695, %v4072_v47  ;;  %v4134_v5 = vmul.f32 1.442695, %v4073_v51  ;;  %3641 = vadd.xlane.f32.xlu1 %v3640_v63  ;;  %v4167_v34 = vadd.f32 %v8549_v6, %v8544_v38 }
 0xcd8   : > { %v4128_v41 = vmul.f32 1.442695, %v4070_v37  ;;  %v8556_v53 = vpop.eup %5941  ;;  %5961 = vpow2.f32 %v3602_v36  ;;  %v4130_v44 = vmul.f32 1.442695, %v4071_v49 }
 0xcd9   : > { %v4043_v18 = vpop.xlane.xlu0 %4042  ;;  %v8560_v28 = vpop.eup %5943  ;;  %5963 = vpow2.f32 %v4132_v8  ;;  %v4170_v31 = vadd.f32 %v8556_v53, %v8554_v1  ;;  %4168 = vadd.xlane.f32.xlu0 %v4167_v34 }
 0xcda   : > { %v4074_v62 = vsub.f32 %v8209_v12, %v4043_v18  ;;  %v4075_v16 = vsub.f32 %v9299_v42, %v4043_v18  ;;  %v8566_v47 = vpop.eup %5945  ;;  %5965 = vpow2.f32 %v4134_v5 }
 0xcdb   : > { %v8568_v36 = vpop.eup %5947  ;;  %5967 = vpow2.f32 %v4128_v41  ;;  %v3643_v49 = vadd.f32 %v8566_v47, %v8560_v28  ;;  %4171 = vadd.xlane.f32.xlu1 %v4170_v31 }
 0xcdc   : > { %9300 = vst [vmem:[#allocation8_spill] sm:$0xff] %v8568_v36  ;;  %v4136_v51 = vmul.f32 1.442695, %v4074_v62  ;;  %v4138_v37 = vmul.f32 1.442695, %v4075_v16  ;;  %v8572_v8 = vpop.eup %5949  ;;  %5969 = vpow2.f32 %v4130_v44 }
 0xcdd   : > { %9301 = vst [vmem:[#allocation19_spill] sm:$0xff] %v8572_v8  ;;  %v8574_v12 = vpop.eup %5951  ;;  %v3646_v63 = vadd.f32 %v8572_v8, %v8568_v36  ;;  %3644 = vadd.xlane.f32.xlu0 %v3643_v49 }
 0xcde   : > { %9302 = vst [vmem:[#allocation22_spill] sm:$0xff] %v8574_v12  ;;  %5971 = vpow2.f32 %v4136_v51  ;;  %v8578_v5 = vpop.eup %5953 }
 0xcdf   : > { %5973 = vpow2.f32 %v4138_v37  ;;  %v8580_v41 = vpop.eup %5955  ;;  %v4173_v34 = vadd.f32 %v8578_v5, %v8574_v12  ;;  %3647 = vadd.xlane.f32.xlu1 %v3646_v63 }
 0xce0   : > { %9303 = vst [vmem:[#allocation17_spill] sm:$0xff] %v8580_v41  ;;  %v8584_v18 = vpop.eup %5957 }
 0xce1   : > { %9304 = vst [vmem:[#allocation16_spill] sm:$0xff] %v8584_v18  ;;  %v8586_v44 = vpop.eup %5959  ;;  %v4176_v62 = vadd.f32 %v8584_v18, %v8580_v41  ;;  %4174 = vadd.xlane.f32.xlu0 %v4173_v34 }
 0xce2   : > { %9305 = vst [vmem:[#allocation18_spill] sm:$0xff] %v8586_v44  ;;  %v8590_v42 = vpop.eup %5961 }
 0xce3   : > { %9306 = vst [vmem:[#allocation15_spill] sm:$0xff] %v8590_v42  ;;  %v8592_v16 = vpop.eup %5963  ;;  %v3649_v31 = vadd.f32 %v8590_v42, %v8586_v44  ;;  %4177 = vadd.xlane.f32.xlu1 %v4176_v62 }
 0xce4   : > { %9307 = vst [vmem:[#allocation12_spill] sm:$0xff] %v8592_v16  ;;  %v8596_v51 = vpop.eup %5965 }
 0xce5   : > { %9308 = vst [vmem:[#allocation21_spill] sm:$0xff] %v8596_v51  ;;  %v8598_v37 = vpop.eup %5967  ;;  %v4182_v49 = vadd.f32 %v8596_v51, %v8592_v16  ;;  %3650 = vadd.xlane.f32.xlu0 %v3649_v31  ;;  %v6153_v16 = vld [vmem:[%s9082_s3] sm:$0xff]   ;;  %v6154_v31 = vld [vmem:[%s9082_s3 + $0x8] sm:$0xff]   ;;  %v6157_v51 = vld [vmem:[%s6490_s17 + $0x10] sm:$0xff] }
 0xce6   : > { %9309 = vst [vmem:[#allocation20_spill] sm:$0xff] %v8598_v37  ;;  %v8602_v63 = vpop.eup %5969 }
 0xce7   : > { %9310 = vst [vmem:[#allocation9_spill] sm:$0xff] %v8602_v63  ;;  %v4179_v34 = vadd.f32 %v8602_v63, %v8598_v37  ;;  %4183 = vadd.xlane.f32.xlu1 %v4182_v49  ;;  %v3296_v49 = vld [vmem:[#allocation4 + $0x18] sm:$0xc] }
 0xce8   : > { %v8604_v41 = vpop.eup %5971 }
 0xce9   : > { %9311 = vst [vmem:[#allocation23_spill] sm:$0xff] %v8604_v41  ;;  %v8608_v18 = vpop.eup %5973  ;;  %4180 = vadd.xlane.f32.xlu0 %v4179_v34  ;;  %v3719_v34 = vrot.slane %v3296_v49, 2  ;;  %v6159_v49 = vld [vmem:[%s6490_s17 + $0x20] sm:$0xff] }
 0xcea   : > { %9312 = vst [vmem:[#allocation13_spill] sm:$0xff] %v8608_v18  ;;  %v4185_v62 = vadd.f32 %v8608_v18, %v8604_v41  ;;  %v6156_v18 = vld [vmem:[%s6490_s17 + $0x8] sm:$0xff] }
 0xceb   : > { %3754 = vmatprep.mubr.bf16.mxu0 %v3719_v34  ;;  %v6160_v34 = vld [vmem:[%s6490_s17 + $0x28] sm:$0xff] }
 0xced   : > { %4186 = vadd.xlane.f32.xlu0 %v4185_v62  ;;  %v3832_v62 = vld [vmem:[#allocation4 + $0x18] sm:$0x30] }
 0xcee   : > { %v4255_v41 = vrot.slane %v3832_v62, 4  ;;  %v6162_v62 = vld [vmem:[%s6490_s17 + $0x38] sm:$0xff] }
 0xcf0   : > { %4290 = vmatprep.mubr.bf16.mxu1 %v4255_v41  ;;  %v6161_v41 = vld [vmem:[%s6490_s17 + $0x30] sm:$0xff] }
 0xcf8   : > { %3763 = vrot.lane.b32.xlu1 %v6153_v16, %s6267_s13 }
 0xcfc   : > { %4299 = vrot.lane.b32.xlu1 %v6153_v16, %s6268_s12  ;;  %v6155_v16 = vld [vmem:[%s6490_s17] sm:$0xff] }
 0xd00   : > { %4301 = vrot.lane.b32.xlu1 %v6154_v31, %s6268_s12  ;;  %s4929_s12 = sshra.s32 %s5060_s14, 7 }
 0xd01   : > { %s5152_s15 = sshll.u32 %s4929_s12, 3  ;;  %s6270_s12 = smov [#allocation5]  }
 0xd02   : > { %s4932_s30 = scalar_lea.vmem %s6383_s26, %s5152_s15  ;;  %s6169_s15 = sshll.u32 %s6270_s12, 4  ;;  %s6170_s15 = int_to_ptr.vmem [resolvable:$false] %s6169_s15 }
 0xd03   : > { %3765 = vrot.lane.b32.xlu0 %v6154_v31, %s6267_s13  ;;  %v6158_v31 = vld [vmem:[%s6490_s17 + $0x18] sm:$0xff]  ;;  %s9329_s17 = sand.u32 1, %s6235_s19   ;;  %s6165_s13 = scalar_lea.vmem %s9020_s22, 512 }
 0xd04   : > { %4371 = vrot.lane.b32.xlu1 %v6156_v18, %s6269_s9  ;;  %s9027_s10 = scalar_lea.sflag [#allocation6], %s9329_s17  ;;  %p6166_p0 = scmp.ne.s32.totalorder %s9020_s22, %s6165_s13 }
 0xd05   : > { %s6171_s16 = scalar_lea.vmem %s6170_s15, 1024  ;;  %p6172_p4 = scmp.lt.s32.totalorder %s9020_s22, %s6170_s15 }
 0xd06   : > { %p6167_p1 = pnand %p6166_p0, %p6355_p3  ;;  %p6173_p5 = scmp.lt.s32.totalorder %s6171_s16, %s6165_s13 }
 0xd07   : > { %4369 = vrot.lane.b32.xlu0 %v6155_v16, %s6269_s9 }
 0xd08   : > { %4375 = vrot.lane.b32.xlu1 %v6158_v31, %s6269_s9  ;;  %p6168_p2 = pneg %p6167_p1  ;;  %p6174_p6 = por %p6173_p5, %p6172_p4 }
 0xd0a   : > { %p6175_p7 = pnand %p6174_p6, %p6168_p2 }
 0xd0b   : > { %4373 = vrot.lane.b32.xlu0 %v6157_v51, %s6269_s9 }
 0xd0c   : > { %4379 = vrot.lane.b32.xlu1 %v6160_v34, %s6269_s9 }
 0xd0f   : > { %4377 = vrot.lane.b32.xlu0 %v6159_v49, %s6269_s9 }
 0xd10   : > { %4383 = vrot.lane.b32.xlu1 %v6162_v62, %s6269_s9 }
 0xd13   : > { %4381 = vrot.lane.b32.xlu0 %v6161_v41, %s6269_s9 }
 0xd34   : > { %v3606_v16 = vpop.xlane.xlu1 %3605 }
 0xd35   : > { %5975 = vrcp.f32 %v3606_v16 }
 0xd36   : > { %v3609_v18 = vpop.xlane.xlu0 %3608 }
 0xd37   : > { %5977 = vrcp.f32 %v3609_v18 }
 0xd3c   : > { %v3612_v51 = vpop.xlane.xlu1 %3611 }
 0xd3d   : > { %5979 = vrcp.f32 %v3612_v51 }
 0xd3f   : > { %v5976_v37 = vpop.eup %5975 }
 0xd40   : > { %v4142_v63 = vpop.xlane.xlu1 %4141  ;;  %v3615_v44 = vpop.xlane.xlu0 %3614  ;;  %v3669_v49 = vmul.f32 %v5976_v37, %v8368_v56  ;;  %v3668_v36 = vmul.f32 %v5976_v37, %v8366_v32 }
 0xd41   : > { %v5978_v31 = vpop.eup %5977  ;;  %5981 = vrcp.f32 %v3615_v44 }
 0xd42   : > { %v3671_v34 = vmul.f32 %v5978_v31, %v8375_v45  ;;  %v3670_v41 = vmul.f32 %v5978_v31, %v8370_v26  ;;  %5983 = vrcp.f32 %v4142_v63 }
 0xd44   : > { %v3701_v62 = vpack.c.bf16 %v3671_v34, %v3669_v49  ;;  %v3700_v42 = vpack.c.bf16 %v3670_v41, %v3668_v36  ;;  %v3618_v16 = vpop.xlane.xlu1 %3617 }
 0xd46   : > { %3722 = vmatprep.subr.bf16.mxu0 %v3701_v62  ;;  %v4145_v18 = vpop.xlane.xlu0 %4144 }
 0xd47   : > { %3723 = vmatpush1.bf16.xpose.msra.mxu0 %v3700_v42  ;;  %5985 = vrcp.f32 %v4145_v18  ;;  %v5980_v8 = vpop.eup %5979 }
 0xd48   : > { %v4148_v51 = vpop.xlane.xlu1 %4147  ;;  %5987 = vrcp.f32 %v3618_v16  ;;  %v3673_v32 = vmul.f32 %v5980_v8, %v8388_v40  ;;  %v3672_v36 = vmul.f32 %v5980_v8, %v8386_v10 }
 0xd4a   : > { %v3621_v12 = vpop.xlane.xlu0 %3620 }
 0xd4b   : > { %5989 = vrcp.f32 %v3621_v12  ;;  %v5982_v56 = vpop.eup %5981 }
 0xd4c   : > { %v3624_v45 = vpop.xlane.xlu1 %3623  ;;  %5991 = vrcp.f32 %v4148_v51  ;;  %v3675_v26 = vmul.f32 %v5982_v56, %v8402_v11  ;;  %v3674_v44 = vmul.f32 %v5982_v56, %v8400_v3  ;;  %v5984_v63 = vpop.eup %5983 }
 0xd4d   : > { %v4205_v40 = vmul.f32 %v5984_v63, %v8395_v15  ;;  %v4204_v11 = vmul.f32 %v5984_v63, %v8390_v58 }
 0xd4e   : > { %v4151_v37 = vpop.xlane.xlu0 %4150  ;;  %v3703_v42 = vpack.c.bf16 %v3675_v26, %v3673_v32  ;;  %v3702_v31 = vpack.c.bf16 %v3674_v44, %v3672_v36 }
 0xd4f   : > { %5993 = vrcp.f32 %v4151_v37 }
 0xd50   : > { %v4154_v49 = vpop.xlane.xlu1 %4153  ;;  %5995 = vrcp.f32 %v3624_v45  ;;  %3724 = vmatprep.subr.bf16.mxu0 %v3703_v42 }
 0xd51   : > { %v5986_v34 = vpop.eup %5985  ;;  %3725 = vmatpush1.bf16.xpose.msra.mxu0 %v3702_v31 }
 0xd52   : > { %v3627_v12 = vpop.xlane.xlu0 %3626  ;;  %v4207_v41 = vmul.f32 %v5986_v34, %v8421_v24  ;;  %v4206_v10 = vmul.f32 %v5986_v34, %v8416_v20  ;;  %v5988_v3 = vpop.eup %5987 }
 0xd53   : > { %5997 = vrcp.f32 %v3627_v12  ;;  %v3677_v56 = vmul.f32 %v5988_v3, %v8414_v0  ;;  %v3676_v15 = vmul.f32 %v5988_v3, %v8412_v4 }
 0xd54   : > { %v3630_v8 = vpop.xlane.xlu1 %3629  ;;  %v4237_v62 = vpack.c.bf16 %v4207_v41, %v4205_v40  ;;  %v4236_v16 = vpack.c.bf16 %v4206_v10, %v4204_v11  ;;  %5999 = vrcp.f32 %v4154_v49 }
 0xd55   : > { %v5990_v18 = vpop.eup %5989 }
 0xd56   : > { %4258 = vmatprep.subr.bf16.mxu1 %v4237_v62  ;;  %v4157_v51 = vpop.xlane.xlu0 %4156  ;;  %v3679_v45 = vmul.f32 %v5990_v18, %v8437_v22  ;;  %v3678_v24 = vmul.f32 %v5990_v18, %v8432_v52  ;;  %v5992_v58 = vpop.eup %5991 }
 0xd57   : > { %6001 = vrcp.f32 %v4157_v51  ;;  %4259 = vmatpush1.bf16.xpose.msra.mxu1 %v4236_v16  ;;  %v4209_v37 = vmul.f32 %v5992_v58, %v8428_v30  ;;  %v4208_v22 = vmul.f32 %v5992_v58, %v8426_v33 }
 0xd58   : > { %v4160_v20 = vpop.xlane.xlu1 %4159  ;;  %v3705_v32 = vpack.c.bf16 %v3679_v45, %v3677_v56  ;;  %v3704_v26 = vpack.c.bf16 %v3678_v24, %v3676_v15  ;;  %6003 = vrcp.f32 %v3630_v8 }
 0xd59   : > { %v5994_v36 = vpop.eup %5993 }
 0xd5a   : > { %3726 = vmatprep.subr.bf16.mxu0 %v3705_v32  ;;  %v3633_v44 = vpop.xlane.xlu0 %3632  ;;  %v4211_v0 = vmul.f32 %v5994_v36, %v8453_v21  ;;  %v4210_v4 = vmul.f32 %v5994_v36, %v8448_v7  ;;  %v5996_v63 = vpop.eup %5995 }
 0xd5b   : > { %6005 = vrcp.f32 %v3633_v44  ;;  %3727 = vmatpush1.bf16.xpose.msra.mxu0 %v3704_v26  ;;  %v3681_v12 = vmul.f32 %v5996_v63, %v8444_v43  ;;  %v3680_v21 = vmul.f32 %v5996_v63, %v8442_v27 }
 0xd5c   : > { %v3636_v52 = vpop.xlane.xlu1 %3635  ;;  %v4239_v42 = vpack.c.bf16 %v4211_v0, %v4209_v37  ;;  %v4238_v31 = vpack.c.bf16 %v4210_v4, %v4208_v22  ;;  %6007 = vrcp.f32 %v4160_v20 }
 0xd5d   : > { %v5998_v49 = vpop.eup %5997 }
 0xd5e   : > { %4260 = vmatprep.subr.bf16.mxu1 %v4239_v42  ;;  %v4163_v34 = vpop.xlane.xlu0 %4162  ;;  %v3683_v30 = vmul.f32 %v5998_v49, %v8469_v14  ;;  %v3682_v33 = vmul.f32 %v5998_v49, %v8464_v39  ;;  %v6000_v40 = vpop.eup %5999 }
 0xd5f   : > { %6009 = vrcp.f32 %v4163_v34  ;;  %4261 = vmatpush1.bf16.xpose.msra.mxu1 %v4238_v31  ;;  %v4213_v8 = vmul.f32 %v6000_v40, %v8460_v35  ;;  %v4212_v14 = vmul.f32 %v6000_v40, %v8458_v19  ;;  %v9313_v34 = vld [vmem:[#allocation10_spill] sm:$0xff] }
 0xd60   : > { %v4166_v7 = vpop.xlane.xlu1 %4165  ;;  %v3707_v41 = vpack.c.bf16 %v3683_v30, %v3681_v12  ;;  %v3706_v11 = vpack.c.bf16 %v3682_v33, %v3680_v21  ;;  %6011 = vrcp.f32 %v3636_v52  ;;  %v9314_v30 = vld [vmem:[#allocation11_spill] sm:$0xff] }
 0xd61   : > { %v6002_v10 = vpop.eup %6001 }
 0xd62   : > { %3728 = vmatprep.subr.bf16.mxu0 %v3707_v41  ;;  %v3639_v3 = vpop.xlane.xlu0 %3638  ;;  %v4215_v43 = vmul.f32 %v6002_v10, %v8485_v48  ;;  %v4214_v27 = vmul.f32 %v6002_v10, %v8480_v17  ;;  %v6004_v62 = vpop.eup %6003 }
 0xd63   : > { %6013 = vrcp.f32 %v3639_v3  ;;  %3729 = vmatpush1.bf16.xpose.msra.mxu0 %v3706_v11  ;;  %v3685_v45 = vmul.f32 %v6004_v62, %v8476_v23  ;;  %v3684_v48 = vmul.f32 %v6004_v62, %v8474_v13 }
 0xd64   : > { %v3642_v39 = vpop.xlane.xlu1 %3641  ;;  %v4241_v16 = vpack.c.bf16 %v4215_v43, %v4213_v8  ;;  %v4240_v18 = vpack.c.bf16 %v4214_v27, %v4212_v14  ;;  %6015 = vrcp.f32 %v4166_v7 }
 0xd65   : > { %v6006_v51 = vpop.eup %6005 }
 0xd66   : > { %4262 = vmatprep.subr.bf16.mxu1 %v4241_v16  ;;  %v4169_v56 = vpop.xlane.xlu0 %4168  ;;  %v3687_v35 = vmul.f32 %v6006_v51, %v8501_v29  ;;  %v3686_v19 = vmul.f32 %v6006_v51, %v8496_v61  ;;  %v6008_v15 = vpop.eup %6007 }
 0xd67   : > { %6017 = vrcp.f32 %v4169_v56  ;;  %4263 = vmatpush1.bf16.xpose.msra.mxu1 %v4240_v18  ;;  %v4217_v26 = vmul.f32 %v6008_v15, %v8492_v54  ;;  %v4216_v29 = vmul.f32 %v6008_v15, %v8490_v57  ;;  %v9316_v56 = vld [vmem:[#allocation19_spill] sm:$0xff] }
 0xd68   : > { %v4172_v17 = vpop.xlane.xlu1 %4171  ;;  %v3709_v24 = vpack.c.bf16 %v3687_v35, %v3685_v45  ;;  %v3708_v58 = vpack.c.bf16 %v3686_v19, %v3684_v48  ;;  %6019 = vrcp.f32 %v3642_v39  ;;  %v9317_v35 = vld [vmem:[#allocation15_spill] sm:$0xff]  ;;  %v9318_v19 = vld [vmem:[#allocation8_spill] sm:$0xff] }
 0xd69   : > { %v6010_v20 = vpop.eup %6009 }
 0xd6a   : > { %3730 = vmatprep.subr.bf16.mxu0 %v3709_v24  ;;  %v3645_v32 = vpop.xlane.xlu0 %3644  ;;  %v4219_v23 = vmul.f32 %v6010_v20, %v8517_v25  ;;  %v4218_v13 = vmul.f32 %v6010_v20, %v8512_v50  ;;  %v6012_v36 = vpop.eup %6011  ;;  %v9320_v20 = vld [vmem:[#allocation16_spill] sm:$0xff] }
 0xd6b   : > { %6021 = vrcp.f32 %v3645_v32  ;;  %3731 = vmatpush1.bf16.xpose.msra.mxu0 %v3708_v58  ;;  %v3689_v4 = vmul.f32 %v6012_v36, %v8508_v55  ;;  %v3688_v25 = vmul.f32 %v6012_v36, %v8506_v2  ;;  %v9323_v36 = vld [vmem:[#allocation20_spill] sm:$0xff] }
 0xd6c   : > { %v3648_v61 = vpop.xlane.xlu1 %3647  ;;  %v4243_v44 = vpack.c.bf16 %v4219_v23, %v4217_v26  ;;  %v4242_v37 = vpack.c.bf16 %v4218_v13, %v4216_v29  ;;  %6023 = vrcp.f32 %v4172_v17  ;;  %v9321_v26 = vld [vmem:[#allocation9_spill] sm:$0xff] }
 0xd6d   : > { %v6014_v0 = vpop.eup %6013  ;;  %v9322_v29 = vld [vmem:[#allocation17_spill] sm:$0xff] }
 0xd6e   : > { %4264 = vmatprep.subr.bf16.mxu1 %v4243_v44  ;;  %v4175_v22 = vpop.xlane.xlu0 %4174  ;;  %v3691_v54 = vmul.f32 %v6014_v0, %v8533_v60  ;;  %v3690_v57 = vmul.f32 %v6014_v0, %v8528_v9  ;;  %v6016_v63 = vpop.eup %6015 }
 0xd6f   : > { %6025 = vrcp.f32 %v4175_v22  ;;  %4265 = vmatpush1.bf16.xpose.msra.mxu1 %v4242_v37  ;;  %v4221_v12 = vmul.f32 %v6016_v63, %v9313_v34  ;;  %v4220_v60 = vmul.f32 %v6016_v63, %v9314_v30  ;;  %v3295_v37 = vld [vmem:[#allocation4 + $0x10] sm:$0xc]  ;;  %v9325_v63 = vld [vmem:[#allocation13_spill] sm:$0xff] }
 0xd70   : > { %v4178_v50 = vpop.xlane.xlu1 %4177  ;;  %v3711_v52 = vpack.c.bf16 %v3691_v54, %v3689_v4  ;;  %v3710_v42 = vpack.c.bf16 %v3690_v57, %v3688_v25  ;;  %6027 = vrcp.f32 %v3648_v61  ;;  %v3718_v54 = vrot.slane %v3295_v37, 2  ;;  %v9324_v25 = vld [vmem:[#allocation21_spill] sm:$0xff] }
 0xd71   : > { %v6018_v31 = vpop.eup %6017 }
 0xd72   : > { %3732 = vmatprep.subr.bf16.mxu0 %v3711_v52  ;;  %v3651_v49 = vpop.xlane.xlu0 %3650  ;;  %v4223_v55 = vmul.f32 %v6018_v31, %v8549_v6  ;;  %v4222_v2 = vmul.f32 %v6018_v31, %v8544_v38  ;;  %v6020_v21 = vpop.eup %6019 }
 0xd73   : > { %6029 = vrcp.f32 %v3651_v49  ;;  %3733 = vmatpush1.bf16.xpose.msra.mxu0 %v3710_v42  ;;  %v3693_v11 = vmul.f32 %v6020_v21, %v8540_v59  ;;  %v3692_v6 = vmul.f32 %v6020_v21, %v8538_v46  ;;  %v9326_v42 = vld [vmem:[#allocation23_spill] sm:$0xff]  ;;  %v9327_v49 = vld [vmem:[#allocation12_spill] sm:$0xff] }
 0xd74   : > { %v4245_v9 = vpack.c.bf16 %v4223_v55, %v4221_v12  ;;  %v4244_v33 = vpack.c.bf16 %v4222_v2, %v4220_v60  ;;  %6031 = vrcp.f32 %v4178_v50  ;;  %v4184_v7 = vpop.xlane.xlu1 %4183  ;;  %v3831_v55 = vld [vmem:[#allocation4 + $0x10] sm:$0x30] }
 0xd75   : > { %v6022_v40 = vpop.eup %6021  ;;  %v4254_v30 = vrot.slane %v3831_v55, 4 }
 0xd76   : > { %4266 = vmatprep.subr.bf16.mxu1 %v4245_v9  ;;  %v4181_v41 = vpop.xlane.xlu0 %4180  ;;  %v3695_v10 = vmul.f32 %v6022_v40, %v8566_v47  ;;  %v3694_v3 = vmul.f32 %v6022_v40, %v8560_v28  ;;  %v6024_v8 = vpop.eup %6023  ;;  %v9315_v47 = vld [vmem:[#allocation22_spill] sm:$0xff] }
 0xd77   : > { %6033 = vrcp.f32 %v4181_v41  ;;  %4267 = vmatpush1.bf16.xpose.msra.mxu1 %v4244_v33  ;;  %v4225_v62 = vmul.f32 %v6024_v8, %v8556_v53  ;;  %v4224_v59 = vmul.f32 %v6024_v8, %v8554_v1  ;;  %v9319_v53 = vld [vmem:[#allocation18_spill] sm:$0xff] }
 0xd78   : > { %v3713_v38 = vpack.c.bf16 %v3695_v10, %v3693_v11  ;;  %v3712_v43 = vpack.c.bf16 %v3694_v3, %v3692_v6  ;;  %6035 = vrcp.f32 %v4184_v7  ;;  %v3764_v60 = vpop.permute.xlu1 %3763  ;;  %v4366_v10 = vld [vmem:[#allocation3 + $0x18] sm:$0xc0]  ;;  %v4365_v6 = vld [vmem:[#allocation3 + $0x10] sm:$0xc0] }
 0xd79   : > { %v6026_v14 = vpop.eup %6025 }
 0xd7a   : > { %3734 = vmatprep.subr.bf16.mxu0 %v3713_v38  ;;  %v4187_v27 = vpop.xlane.xlu0 %4186  ;;  %v4227_v39 = vmul.f32 %v6026_v14, %v8578_v5  ;;  %v4226_v16 = vmul.f32 %v6026_v14, %v9315_v47  ;;  %v6028_v46 = vpop.eup %6027  ;;  %v4387_v14 = vrot.slane %v4365_v6, 6 }
 0xd7b   : > { %6037 = vrcp.f32 %v4187_v27  ;;  %3735 = vmatpush1.bf16.xpose.msra.mxu0 %v3712_v43  ;;  %v3697_v45 = vmul.f32 %v6028_v46, %v9316_v56  ;;  %v3696_v15 = vmul.f32 %v6028_v46, %v9318_v19  ;;  %v4388_v43 = vrot.slane %v4366_v10, 6 }
 0xd7c   : > { %v4247_v28 = vpack.c.bf16 %v4227_v39, %v4225_v62  ;;  %v4246_v18 = vpack.c.bf16 %v4226_v16, %v4224_v59  ;;  %v4300_v11 = vpop.permute.xlu1 %4299  ;;  %v4414_v47 = vsel %vm666_vm1, %v4387_v14, 0  ;;  %v9328_v16 = vmov 0  }
 0xd7d   : > { %v6030_v51 = vpop.eup %6029 }
 0xd7e   : > { %4268 = vmatprep.subr.bf16.mxu1 %v4247_v28  ;;  %v3699_v48 = vmul.f32 %v6030_v51, %v9317_v35  ;;  %v3698_v17 = vmul.f32 %v6030_v51, %v9319_v53  ;;  %v6032_v5 = vpop.eup %6031  ;;  %v3766_v41 = vpop.permute.xlu0 %3765 }
 0xd7f   : > { %4269 = vmatpush1.bf16.xpose.msra.mxu1 %v4246_v18  ;;  %v4229_v32 = vmul.f32 %v6032_v5, %v9320_v20  ;;  %v4228_v13 = vmul.f32 %v6032_v5, %v9322_v29 }
 0xd80   : > { %v3715_v1 = vpack.c.bf16 %v3699_v48, %v3697_v45  ;;  %v3714_v24 = vpack.c.bf16 %v3698_v17, %v3696_v15  ;;  %v4302_v59 = vpop.permute.xlu1 %4301 }
 0xd81   : > { %v6034_v58 = vpop.eup %6033 }
 0xd82   : > { %3736 = vmatprep.subr.bf16.mxu0 %v3715_v1  ;;  %v4231_v23 = vmul.f32 %v6034_v58, %v9321_v26  ;;  %v4230_v61 = vmul.f32 %v6034_v58, %v9323_v36  ;;  %v6036_v44 = vpop.eup %6035  ;;  %v4370_v46 = vpop.permute.xlu0 %4369 }
 0xd83   : > { %3737 = vmatpush1.bf16.xpose.msra.mxu0 %v3714_v24  ;;  %v4233_v57 = vmul.f32 %v6036_v44, %v9324_v25  ;;  %v4232_v34 = vmul.f32 %v6036_v44, %v9327_v49 }
 0xd84   : > { %v4249_v0 = vpack.c.bf16 %v4231_v23, %v4229_v32  ;;  %v4248_v22 = vpack.c.bf16 %v4230_v61, %v4228_v13  ;;  %v4372_v28 = vpop.permute.xlu1 %4371 }
 0xd85   : > { %v6038_v4 = vpop.eup %6037 }
 0xd86   : > { %4270 = vmatprep.subr.bf16.mxu1 %v4249_v0  ;;  %v4235_v50 = vmul.f32 %v6038_v4, %v9325_v63  ;;  %v4234_v31 = vmul.f32 %v6038_v4, %v9326_v42  ;;  %v4374_v18 = vpop.permute.xlu0 %4373 }
 0xd87   : > { %4271 = vmatpush1.bf16.xpose.msra.mxu1 %v4248_v22 }
 0xd88   : > { %v4251_v52 = vpack.c.bf16 %v4235_v50, %v4233_v57  ;;  %v4250_v12 = vpack.c.bf16 %v4234_v31, %v4232_v34  ;;  %v4376_v51 = vpop.permute.xlu1 %4375 }
 0xd8a   : > { %3755 = vmatmul.mubr.bf16.vlgmr.msra.gmra.mrb[104].mxu0 %v3718_v54  ;;  %4272 = vmatprep.subr.bf16.mxu1 %v4251_v52  ;;  %v4378_v56 = vpop.permute.xlu0 %4377 }
 0xd8b   : > { %5215 = vmatprep.mubr.msk.bf16.mxu0 %vm641_vm2, %v3764_v60 }
 0xd8c   : > { %v4380_v45 = vpop.permute.xlu1 %4379 }
 0xd8e   : > { %v4382_v35 = vpop.permute.xlu0 %4381 }
 0xd8f   : > { %4273 = vmatpush1.bf16.xpose.msra.mxu1 %v4250_v12 }
 0xd90   : > { %v4384_v48 = vpop.permute.xlu1 %4383 }
 0xd96   : > { %4291 = vmatmul.mubr.bf16.vlgmr.msra.gmra.mrb[144].mxu1 %v4254_v30 }
 0xe5d   : > { %v3756_v2 = vpop.f32.mrb[104].mxu0 }
 0xe5e   : > { %v3762_v21 = vpack.c.bf16 %v3756_v2, %v3756_v2  ;;  %v3758_v9 = vpop.f32.mrb[105].mxu0 }
 0xe5f   : > { %v3759_v33 = vpop.f32.mrb[106].mxu0 }
 0xe60   : > { %v3774_v40 = vsel %vm666_vm1, %v3762_v21, 0  ;;  %5268 = vmatprep.subr.msk.bf16.mxu0 %vm666_vm1, %v3762_v21  ;;  %v3760_v7 = vpop.f32.mrb[107].mxu0 }
 0xe61   : > { %5214 = vmatpush3.bf16.msra.mxu0 %v3774_v40 }
 0xe64   : > { %5216 = vmatmul.mubr.msk.bf16.vlgmr.msra.gmra.mrb[32].mxu0 %vm641_vm2, %v3766_v41 }
 0xe65   : > { %5221 = vmatprep.mubr.msk.bf16.mxu0 %vm641_vm2, %v4300_v11 }
 0xe69   : > { %v4292_v3 = vpop.f32.mrb[144].mxu1 }
 0xe6a   : > { %v4298_v8 = vpack.c.bf16 %v4292_v3, %v4292_v3  ;;  %v4294_v38 = vpop.f32.mrb[145].mxu1 }
 0xe6b   : > { %v4295_v27 = vpop.f32.mrb[146].mxu1 }
 0xe6c   : > { %v4310_v62 = vsel %vm666_vm1, %v4298_v8, 0  ;;  %v4296_v39 = vpop.f32.mrb[147].mxu1  ;;  %5269 = vmatprep.subr.msk.bf16.mxu0 %vm666_vm1, %v4298_v8 }
 0xe6d   : > { %5220 = vmatpush3.bf16.msra.mxu0 %v4310_v62 }
 0xe6e   : > { %5141 = vmatprep.subr.msk.bf16.mxu0 %vm666_vm1, %v4388_v43 }
 0xe70   : > { %5222 = vmatmul.mubr.msk.bf16.vlgmr.msra.gmra.mrb[32].mxu0 %vm641_vm2, %v4302_v59 }
 0xe71   : > { %4420 = vmatpush1.bf16.msra.mxu0 %v4414_v47  ;;  %4451 = vmatprep.mubr.bf16.mxu0 %v9328_v16 }
 0xe78   : > { %5142 = vmatmul.mubr.msk.bf16.vlgmr.msra.gmra.mrb[108].mxu0 %vm641_vm2, %v4370_v46 }
 0xe79   : > { %4461 = vmatprep.mubr.bf16.mxu0 %v9328_v16 }
 0xe80   : > { %5143 = vmatmul.mubr.msk.bf16.gmra.mrb[112].mxu0 %vm641_vm2, %v4372_v28 }
 0xe81   : > { %4471 = vmatprep.mubr.bf16.mxu0 %v9328_v16 }
 0xe88   : > { %5144 = vmatmul.mubr.msk.bf16.gmra.mrb[116].mxu0 %vm641_vm2, %v4374_v18 }
 0xe89   : > { %4481 = vmatprep.mubr.bf16.mxu0 %v9328_v16 }
 0xe90   : > { %5145 = vmatmul.mubr.msk.bf16.gmra.mrb[120].mxu0 %vm641_vm2, %v4376_v51 }
 0xe91   : > { %4491 = vmatprep.mubr.bf16.mxu0 %v9328_v16 }
 0xe98   : > { %5146 = vmatmul.mubr.msk.bf16.gmra.mrb[124].mxu0 %vm641_vm2, %v4378_v56 }
 0xe99   : > { %4501 = vmatprep.mubr.bf16.mxu0 %v9328_v16 }
 0xea0   : > { %5147 = vmatmul.mubr.msk.bf16.gmra.mrb[128].mxu0 %vm641_vm2, %v4380_v45 }
 0xea1   : > { %4511 = vmatprep.mubr.bf16.mxu0 %v9328_v16 }
 0xea8   : > { %5148 = vmatmul.mubr.msk.bf16.gmra.mrb[132].mxu0 %vm641_vm2, %v4382_v35 }
 0xea9   : > { %4521 = vmatprep.mubr.bf16.mxu0 %v9328_v16 }
 0xeb0   : > { %5149 = vmatmul.mubr.msk.bf16.gmra.mrb[136].mxu0 %vm641_vm2, %v4384_v48 }
 0xf4b   : > { %v8728_v19 = vpop.f32.mrb[108].mxu0 }
 0xf4c   : > { %v8730_v15 = vpop.f32.mrb[109].mxu0 }
 0xf4d   : > { %v4532_v53 = vmax.f32 %v8728_v19, %v8730_v15  ;;  %v8734_v17 = vpop.f32.mrb[110].mxu0 }
 0xf4e   : > { %v8736_v5 = vpop.f32.mrb[111].mxu0 }
 0xf4f   : > { %v4535_v1 = vmax.f32 %v8734_v17, %v8736_v5  ;;  %4533 = vmax.xlane.f32.xlu0 %v4532_v53 }
 0xf51   : > { %4536 = vmax.xlane.f32.xlu1 %v4535_v1 }
 0xf53   : > { %v8740_v24 = vpop.f32.mrb[112].mxu0 }
 0xf54   : > { %v8742_v58 = vpop.f32.mrb[113].mxu0 }
 0xf55   : > { %v4538_v20 = vmax.f32 %v8740_v24, %v8742_v58  ;;  %v8746_v32 = vpop.f32.mrb[114].mxu0 }
 0xf56   : > { %v8748_v26 = vpop.f32.mrb[115].mxu0 }
 0xf57   : > { %4539 = vmax.xlane.f32.xlu0 %v4538_v20  ;;  %v4541_v23 = vmax.f32 %v8746_v32, %v8748_v26 }
 0xf5b   : > { %4542 = vmax.xlane.f32.xlu0 %v4541_v23  ;;  %v8752_v29 = vpop.f32.mrb[116].mxu0 }
 0xf5c   : > { %v8754_v13 = vpop.f32.mrb[117].mxu0 }
 0xf5d   : > { %v4544_v36 = vmax.f32 %v8752_v29, %v8754_v13  ;;  %v8758_v61 = vpop.f32.mrb[118].mxu0 }
 0xf5e   : > { %v8760_v44 = vpop.f32.mrb[119].mxu0 }
 0xf5f   : > { %v4547_v37 = vmax.f32 %v8758_v61, %v8760_v44  ;;  %4545 = vmax.xlane.f32.xlu1 %v4544_v36 }
 0xf61   : > { %4548 = vmax.xlane.f32.xlu0 %v4547_v37 }
 0xf63   : > { %v8764_v0 = vpop.f32.mrb[120].mxu0 }
 0xf64   : > { %v8766_v22 = vpop.f32.mrb[121].mxu0 }
 0xf65   : > { %v4550_v4 = vmax.f32 %v8764_v0, %v8766_v22  ;;  %v8770_v54 = vpop.f32.mrb[122].mxu0 }
 0xf66   : > { %v8772_v25 = vpop.f32.mrb[123].mxu0 }
 0xf67   : > { %v4553_v57 = vmax.f32 %v8770_v54, %v8772_v25  ;;  %4551 = vmax.xlane.f32.xlu1 %v4550_v4 }
 0xf69   : > { %4554 = vmax.xlane.f32.xlu0 %v4553_v57 }
 0xf6b   : > { %v8776_v63 = vpop.f32.mrb[124].mxu0 }
 0xf6c   : > { %v8778_v50 = vpop.f32.mrb[125].mxu0 }
 0xf6d   : > { %v4556_v52 = vmax.f32 %v8776_v63, %v8778_v50  ;;  %v8782_v42 = vpop.f32.mrb[126].mxu0 }
 0xf6e   : > { %v8784_v31 = vpop.f32.mrb[127].mxu0 }
 0xf6f   : > { %v4559_v49 = vmax.f32 %v8782_v42, %v8784_v31  ;;  %4557 = vmax.xlane.f32.xlu1 %v4556_v52 }
 0xf71   : > { %4560 = vmax.xlane.f32.xlu0 %v4559_v49 }
 0xf73   : > { %v8788_v34 = vpop.f32.mrb[128].mxu0 }
 0xf74   : > { %v8790_v12 = vpop.f32.mrb[129].mxu0 }
 0xf75   : > { %v4562_v55 = vmax.f32 %v8788_v34, %v8790_v12  ;;  %v8794_v30 = vpop.f32.mrb[130].mxu0 }
 0xf76   : > { %v8796_v60 = vpop.f32.mrb[131].mxu0 }
 0xf77   : > { %v4565_v2 = vmax.f32 %v8794_v30, %v8796_v60  ;;  %4563 = vmax.xlane.f32.xlu1 %v4562_v55 }
 0xf79   : > { %4566 = vmax.xlane.f32.xlu0 %v4565_v2 }
 0xf7b   : > { %v8800_v21 = vpop.f32.mrb[132].mxu0 }
 0xf7c   : > { %v8802_v9 = vpop.f32.mrb[133].mxu0 }
 0xf7d   : > { %v4568_v33 = vmax.f32 %v8800_v21, %v8802_v9  ;;  %v8806_v40 = vpop.f32.mrb[134].mxu0 }
 0xf7e   : > { %v8808_v7 = vpop.f32.mrb[135].mxu0 }
 0xf7f   : > { %v4571_v41 = vmax.f32 %v8806_v40, %v8808_v7  ;;  %4569 = vmax.xlane.f32.xlu1 %v4568_v33 }
 0xf81   : > { %4572 = vmax.xlane.f32.xlu0 %v4571_v41 }
 0xf83   : > { %v8812_v11 = vpop.f32.mrb[136].mxu0 }
 0xf84   : > { %v8814_v10 = vpop.f32.mrb[137].mxu0 }
 0xf85   : > { %v4574_v6 = vmax.f32 %v8812_v11, %v8814_v10  ;;  %v8818_v3 = vpop.f32.mrb[138].mxu0 }
 0xf86   : > { %v8820_v8 = vpop.f32.mrb[139].mxu0 }
 0xf87   : > { %v4577_v38 = vmax.f32 %v8818_v3, %v8820_v8  ;;  %4575 = vmax.xlane.f32.xlu1 %v4574_v6 }
 0xf89   : > { %4578 = vmax.xlane.f32.xlu0 %v4577_v38 }
 0xfdc   : > { %v4534_v43 = vpop.xlane.xlu0 %4533 }
 0xfdd   : > { %v4580_v14 = vsub.f32 %v8728_v19, %v4534_v43  ;;  %v4581_v27 = vsub.f32 %v8730_v15, %v4534_v43 }
 0xfde   : > { %v4537_v62 = vpop.xlane.xlu1 %4536 }
 0xfdf   : > { %v4612_v39 = vmul.f32 1.442695, %v4580_v14  ;;  %v4614_v59 = vmul.f32 1.442695, %v4581_v27  ;;  %v4582_v47 = vsub.f32 %v8734_v17, %v4537_v62  ;;  %v4583_v16 = vsub.f32 %v8736_v5, %v4537_v62 }
 0xfe1   : > { %6039 = vpow2.f32 %v4612_v39  ;;  %v4616_v46 = vmul.f32 1.442695, %v4582_v47  ;;  %v4618_v28 = vmul.f32 1.442695, %v4583_v16 }
 0xfe2   : > { %6041 = vpow2.f32 %v4614_v59 }
 0xfe3   : > { %6043 = vpow2.f32 %v4616_v46 }
 0xfe4   : > { %6045 = vpow2.f32 %v4618_v28  ;;  %v4540_v18 = vpop.xlane.xlu0 %4539 }
 0xfe5   : > { %v4584_v51 = vsub.f32 %v8740_v24, %v4540_v18  ;;  %v4585_v56 = vsub.f32 %v8742_v58, %v4540_v18 }
 0xfe7   : > { %v4620_v45 = vmul.f32 1.442695, %v4584_v51  ;;  %v4622_v35 = vmul.f32 1.442695, %v4585_v56 }
 0xfe8   : > { %v4543_v48 = vpop.xlane.xlu0 %4542 }
 0xfe9   : > { %6047 = vpow2.f32 %v4620_v45  ;;  %v4586_v19 = vsub.f32 %v8746_v32, %v4543_v48  ;;  %v4587_v15 = vsub.f32 %v8748_v26, %v4543_v48 }
 0xfea   : > { %6049 = vpow2.f32 %v4622_v35 }
 0xfeb   : > { %v8832_v53 = vpop.eup %6039  ;;  %v4624_v17 = vmul.f32 1.442695, %v4586_v19  ;;  %v4626_v5 = vmul.f32 1.442695, %v4587_v15 }
 0xfec   : > { %v8834_v1 = vpop.eup %6041  ;;  %v4546_v20 = vpop.xlane.xlu1 %4545 }
 0xfed   : > { %v8836_v23 = vpop.eup %6043  ;;  %6051 = vpow2.f32 %v4624_v17  ;;  %v4588_v24 = vsub.f32 %v8752_v29, %v4546_v20  ;;  %v4589_v58 = vsub.f32 %v8754_v13, %v4546_v20  ;;  %v4676_v32 = vadd.f32 %v8834_v1, %v8832_v53 }
 0xfee   : > { %v8842_v36 = vpop.eup %6045  ;;  %6053 = vpow2.f32 %v4626_v5  ;;  %v4549_v26 = vpop.xlane.xlu0 %4548 }
 0xfef   : > { %v4628_v37 = vmul.f32 1.442695, %v4588_v24  ;;  %v4630_v4 = vmul.f32 1.442695, %v4589_v58  ;;  %4677 = vadd.xlane.f32.xlu1 %v4676_v32  ;;  %v4590_v57 = vsub.f32 %v8758_v61, %v4549_v26  ;;  %v4591_v52 = vsub.f32 %v8760_v44, %v4549_v26 }
 0xff0   : > { %v4679_v49 = vadd.f32 %v8842_v36, %v8836_v23 }
 0xff1   : > { %6055 = vpow2.f32 %v4628_v37  ;;  %v4632_v29 = vmul.f32 1.442695, %v4590_v57  ;;  %v4634_v13 = vmul.f32 1.442695, %v4591_v52 }
 0xff2   : > { %6057 = vpow2.f32 %v4630_v4  ;;  %4680 = vadd.xlane.f32.xlu0 %v4679_v49 }
 0xff3   : > { %v8848_v55 = vpop.eup %6047  ;;  %6059 = vpow2.f32 %v4632_v29 }
 0xff4   : > { %v8850_v2 = vpop.eup %6049  ;;  %6061 = vpow2.f32 %v4634_v13  ;;  %v4552_v33 = vpop.xlane.xlu1 %4551 }
 0xff5   : > { %v4592_v41 = vsub.f32 %v8764_v0, %v4552_v33  ;;  %v4593_v61 = vsub.f32 %v8766_v22, %v4552_v33  ;;  %v4682_v44 = vadd.f32 %v8850_v2, %v8848_v55 }
 0xff6   : > { %v4555_v6 = vpop.xlane.xlu0 %4554 }
 0xff7   : > { %v8856_v38 = vpop.eup %6051  ;;  %v4636_v43 = vmul.f32 1.442695, %v4592_v41  ;;  %v4638_v14 = vmul.f32 1.442695, %v4593_v61  ;;  %4683 = vadd.xlane.f32.xlu1 %v4682_v44  ;;  %v4594_v27 = vsub.f32 %v8770_v54, %v4555_v6  ;;  %v4595_v62 = vsub.f32 %v8772_v25, %v4555_v6 }
 0xff8   : > { %v8860_v39 = vpop.eup %6053 }
 0xff9   : > { %6063 = vpow2.f32 %v4636_v43  ;;  %v4640_v59 = vmul.f32 1.442695, %v4594_v27  ;;  %v4642_v0 = vmul.f32 1.442695, %v4595_v62  ;;  %v4685_v22 = vadd.f32 %v8860_v39, %v8856_v38 }
 0xffa   : > { %6065 = vpow2.f32 %v4638_v14 }
 0xffb   : > { %v8864_v47 = vpop.eup %6055  ;;  %6067 = vpow2.f32 %v4640_v59  ;;  %4686 = vadd.xlane.f32.xlu0 %v4685_v22 }
 0xffc   : > { %v8866_v16 = vpop.eup %6057  ;;  %6069 = vpow2.f32 %v4642_v0  ;;  %v4558_v46 = vpop.xlane.xlu1 %4557 }
 0xffd   : > { %v8868_v54 = vpop.eup %6059  ;;  %v4596_v25 = vsub.f32 %v8776_v63, %v4558_v46  ;;  %v4597_v28 = vsub.f32 %v8778_v50, %v4558_v46  ;;  %v4688_v18 = vadd.f32 %v8866_v16, %v8864_v47 }
 0xffe   : > { %v8874_v51 = vpop.eup %6061  ;;  %v4561_v56 = vpop.xlane.xlu0 %4560 }
 0xfff   : > { %v4644_v45 = vmul.f32 1.442695, %v4596_v25  ;;  %v4646_v35 = vmul.f32 1.442695, %v4597_v28  ;;  %4689 = vadd.xlane.f32.xlu1 %v4688_v18  ;;  %v4598_v48 = vsub.f32 %v8782_v42, %v4561_v56  ;;  %v4599_v19 = vsub.f32 %v8784_v31, %v4561_v56 }
0x1000   : > { %v4691_v15 = vadd.f32 %v8874_v51, %v8868_v54 }
0x1001   : > { %6071 = vpow2.f32 %v4644_v45  ;;  %v4648_v63 = vmul.f32 1.442695, %v4598_v48  ;;  %v4650_v17 = vmul.f32 1.442695, %v4599_v19 }
0x1002   : > { %6073 = vpow2.f32 %v4646_v35  ;;  %4692 = vadd.xlane.f32.xlu0 %v4691_v15 }
0x1003   : > { %v8880_v50 = vpop.eup %6063  ;;  %6075 = vpow2.f32 %v4648_v63 }
0x1004   : > { %v8882_v5 = vpop.eup %6065  ;;  %6077 = vpow2.f32 %v4650_v17  ;;  %v4564_v20 = vpop.xlane.xlu1 %4563 }
0x1005   : > { %v8884_v24 = vpop.eup %6067  ;;  %v4600_v42 = vsub.f32 %v8788_v34, %v4564_v20  ;;  %v4601_v31 = vsub.f32 %v8790_v12, %v4564_v20  ;;  %v4694_v58 = vadd.f32 %v8882_v5, %v8880_v50 }
0x1006   : > { %v8890_v32 = vpop.eup %6069  ;;  %v4567_v26 = vpop.xlane.xlu0 %4566 }
0x1007   : > { %v4652_v37 = vmul.f32 1.442695, %v4600_v42  ;;  %v4654_v4 = vmul.f32 1.442695, %v4601_v31  ;;  %4695 = vadd.xlane.f32.xlu1 %v4694_v58  ;;  %v4602_v57 = vsub.f32 %v8794_v30, %v4567_v26  ;;  %v4603_v52 = vsub.f32 %v8796_v60, %v4567_v26 }
0x1008   : > { %v4697_v49 = vadd.f32 %v8890_v32, %v8884_v24 }
0x1009   : > { %6079 = vpow2.f32 %v4652_v37  ;;  %v4656_v34 = vmul.f32 1.442695, %v4602_v57  ;;  %v4658_v29 = vmul.f32 1.442695, %v4603_v52  ;;  %v6163_v52 = vld [vmem:[%s9082_s3] sm:$0xff]  }
0x100a   : > { %6081 = vpow2.f32 %v4654_v4  ;;  %4698 = vadd.xlane.f32.xlu0 %v4697_v49  ;;  %v6164_v49 = vld [vmem:[%s9082_s3 + $0x8] sm:$0xff]  }
0x100b   : > { %v8896_v12 = vpop.eup %6071  ;;  %6083 = vpow2.f32 %v4656_v34  ;;  %v4368_v34 = vld [vmem:[#allocation4 + $0x18] sm:$0xc0] }
0x100c   : > { %v8898_v13 = vpop.eup %6073  ;;  %6085 = vpow2.f32 %v4658_v29  ;;  %v4570_v33 = vpop.xlane.xlu1 %4569  ;;  %v4791_v29 = vrot.slane %v4368_v34, 6 }
0x100d   : > { %v8900_v41 = vpop.eup %6075  ;;  %v4604_v30 = vsub.f32 %v8800_v21, %v4570_v33  ;;  %v4605_v60 = vsub.f32 %v8802_v9, %v4570_v33  ;;  %v4700_v61 = vadd.f32 %v8898_v13, %v8896_v12 }
0x100e   : > { %v8906_v44 = vpop.eup %6077  ;;  %v4573_v6 = vpop.xlane.xlu0 %4572  ;;  %4826 = vmatprep.mubr.bf16.mxu0 %v4791_v29 }
0x100f   : > { %v4660_v43 = vmul.f32 1.442695, %v4604_v30  ;;  %v4662_v14 = vmul.f32 1.442695, %v4605_v60  ;;  %4701 = vadd.xlane.f32.xlu1 %v4700_v61  ;;  %v4606_v27 = vsub.f32 %v8806_v40, %v4573_v6  ;;  %v4607_v62 = vsub.f32 %v8808_v7, %v4573_v6 }
0x1010   : > { %v4703_v59 = vadd.f32 %v8906_v44, %v8900_v41 }
0x1011   : > { %6087 = vpow2.f32 %v4660_v43  ;;  %v4664_v21 = vmul.f32 1.442695, %v4606_v27  ;;  %v4666_v0 = vmul.f32 1.442695, %v4607_v62 }
0x1012   : > { %6089 = vpow2.f32 %v4662_v14  ;;  %4704 = vadd.xlane.f32.xlu0 %v4703_v59 }
0x1013   : > { %v8912_v9 = vpop.eup %6079  ;;  %6091 = vpow2.f32 %v4664_v21 }
0x1014   : > { %v8914_v22 = vpop.eup %6081  ;;  %6093 = vpow2.f32 %v4666_v0  ;;  %v4576_v46 = vpop.xlane.xlu1 %4575 }
0x1015   : > { %v8916_v25 = vpop.eup %6083  ;;  %v4608_v40 = vsub.f32 %v8812_v11, %v4576_v46  ;;  %v4609_v7 = vsub.f32 %v8814_v10, %v4576_v46  ;;  %v4706_v28 = vadd.f32 %v8914_v22, %v8912_v9 }
0x1016   : > { %v8922_v18 = vpop.eup %6085  ;;  %v4579_v56 = vpop.xlane.xlu0 %4578 }
0x1017   : > { %v4668_v45 = vmul.f32 1.442695, %v4608_v40  ;;  %v4670_v35 = vmul.f32 1.442695, %v4609_v7  ;;  %4707 = vadd.xlane.f32.xlu1 %v4706_v28  ;;  %v4610_v48 = vsub.f32 %v8818_v3, %v4579_v56  ;;  %v4611_v19 = vsub.f32 %v8820_v8, %v4579_v56 }
0x1018   : > { %v4709_v15 = vadd.f32 %v8922_v18, %v8916_v25 }
0x1019   : > { %6095 = vpow2.f32 %v4668_v45  ;;  %v4672_v11 = vmul.f32 1.442695, %v4610_v48  ;;  %v4674_v63 = vmul.f32 1.442695, %v4611_v19 }
0x101a   : > { %6097 = vpow2.f32 %v4670_v35  ;;  %4710 = vadd.xlane.f32.xlu0 %v4709_v15 }
0x101b   : > { %v8928_v10 = vpop.eup %6087  ;;  %6099 = vpow2.f32 %v4672_v11 }
0x101c   : > { %v8930_v17 = vpop.eup %6089  ;;  %6101 = vpow2.f32 %v4674_v63 }
0x101d   : > { %v8932_v20 = vpop.eup %6091  ;;  %v4712_v3 = vadd.f32 %v8930_v17, %v8928_v10 }
0x101e   : > { %v8936_v8 = vpop.eup %6093 }
0x101f   : > { %4713 = vadd.xlane.f32.xlu1 %v4712_v3  ;;  %v4715_v42 = vadd.f32 %v8936_v8, %v8932_v20 }
0x1021   : > { %4716 = vadd.xlane.f32.xlu0 %v4715_v42 }
0x1023   : > { %v8940_v31 = vpop.eup %6095 }
0x1024   : > { %v8942_v58 = vpop.eup %6097 }
0x1025   : > { %v8944_v26 = vpop.eup %6099  ;;  %v4718_v37 = vadd.f32 %v8942_v58, %v8940_v31 }
0x1026   : > { %v8948_v4 = vpop.eup %6101 }
0x1027   : > { %4719 = vadd.xlane.f32.xlu1 %v4718_v37  ;;  %v4721_v57 = vadd.f32 %v8948_v4, %v8944_v26 }
0x1029   : > { %4722 = vadd.xlane.f32.xlu0 %v4721_v57 }
0x1038   : > { %4835 = vrot.lane.b32.xlu1 %v6163_v52, %s6269_s9 }
0x103f   : > { %4837 = vrot.lane.b32.xlu0 %v6164_v49, %s6269_s9  ;;  %s5155_s9 = sshll.u32 %s4957_s8, 7 }
0x1040   : > { %s9017_s14 = scalar_lea.hbm %s9084_s5, %s5155_s9 }
0x107c   : > { %v4678_v33 = vpop.xlane.xlu1 %4677 }
0x107d   : > { %6103 = vrcp.f32 %v4678_v33 }
0x107f   : > { %v4681_v30 = vpop.xlane.xlu0 %4680 }
0x1080   : > { %6105 = vrcp.f32 %v4681_v30 }
0x1084   : > { %v4684_v60 = vpop.xlane.xlu1 %4683 }
0x1085   : > { %6107 = vrcp.f32 %v4684_v60 }
0x1087   : > { %v6104_v61 = vpop.eup %6103 }
0x1088   : > { %v4687_v6 = vpop.xlane.xlu0 %4686  ;;  %v4741_v14 = vmul.f32 %v6104_v61, %v8834_v1  ;;  %v4740_v62 = vmul.f32 %v6104_v61, %v8832_v53 }
0x1089   : > { %6109 = vrcp.f32 %v4687_v6 }
0x108a   : > { %v6106_v43 = vpop.eup %6105 }
0x108b   : > { %v4743_v27 = vmul.f32 %v6106_v43, %v8842_v36  ;;  %v4742_v59 = vmul.f32 %v6106_v43, %v8836_v23 }
0x108c   : > { %v4690_v21 = vpop.xlane.xlu1 %4689 }
0x108d   : > { %v4773_v0 = vpack.c.bf16 %v4743_v27, %v4741_v14  ;;  %v4772_v46 = vpack.c.bf16 %v4742_v59, %v4740_v62  ;;  %6111 = vrcp.f32 %v4690_v21 }
0x108f   : > { %4794 = vmatprep.subr.bf16.mxu0 %v4773_v0  ;;  %v4693_v40 = vpop.xlane.xlu0 %4692  ;;  %v6108_v7 = vpop.eup %6107 }
0x1090   : > { %6113 = vrcp.f32 %v4693_v40  ;;  %4795 = vmatpush1.bf16.xpose.msra.mxu0 %v4772_v46  ;;  %v4745_v45 = vmul.f32 %v6108_v7, %v8850_v2  ;;  %v4744_v36 = vmul.f32 %v6108_v7, %v8848_v55 }
0x1093   : > { %v6110_v28 = vpop.eup %6109 }
0x1094   : > { %v4696_v56 = vpop.xlane.xlu1 %4695  ;;  %v4747_v1 = vmul.f32 %v6110_v28, %v8860_v39  ;;  %v4746_v53 = vmul.f32 %v6110_v28, %v8856_v38 }
0x1095   : > { %6115 = vrcp.f32 %v4696_v56 }
0x1096   : > { %v4775_v23 = vpack.c.bf16 %v4747_v1, %v4745_v45  ;;  %v4774_v35 = vpack.c.bf16 %v4746_v53, %v4744_v36 }
0x1097   : > { %v4699_v48 = vpop.xlane.xlu0 %4698  ;;  %v6112_v19 = vpop.eup %6111 }
0x1098   : > { %6117 = vrcp.f32 %v4699_v48  ;;  %4796 = vmatprep.subr.bf16.mxu0 %v4775_v23  ;;  %v4749_v11 = vmul.f32 %v6112_v19, %v8866_v16  ;;  %v4748_v55 = vmul.f32 %v6112_v19, %v8864_v47 }
0x1099   : > { %4797 = vmatpush1.bf16.xpose.msra.mxu0 %v4774_v35 }
0x109a   : > { %v6114_v15 = vpop.eup %6113 }
0x109b   : > { %v4751_v63 = vmul.f32 %v6114_v15, %v8874_v51  ;;  %v4750_v2 = vmul.f32 %v6114_v15, %v8868_v54 }
0x109c   : > { %v4702_v39 = vpop.xlane.xlu1 %4701 }
0x109d   : > { %v4777_v3 = vpack.c.bf16 %v4751_v63, %v4749_v11  ;;  %6119 = vrcp.f32 %v4702_v39  ;;  %v4776_v42 = vpack.c.bf16 %v4750_v2, %v4748_v55 }
0x109f   : > { %4798 = vmatprep.subr.bf16.mxu0 %v4777_v3  ;;  %v4705_v38 = vpop.xlane.xlu0 %4704  ;;  %v6116_v37 = vpop.eup %6115 }
0x10a0   : > { %6121 = vrcp.f32 %v4705_v38  ;;  %v4753_v52 = vmul.f32 %v6116_v37, %v8882_v5  ;;  %v4752_v34 = vmul.f32 %v6116_v37, %v8880_v50  ;;  %v4935_v37 = vld [vmem:[%s4932_s30 + $0x20] sm:$0xff] }
0x10a1   : > { %4799 = vmatpush1.bf16.xpose.msra.mxu0 %v4776_v42 }
0x10a2   : > { %v6118_v57 = vpop.eup %6117 }
0x10a3   : > { %v4755_v16 = vmul.f32 %v6118_v57, %v8890_v32  ;;  %v4754_v51 = vmul.f32 %v6118_v57, %v8884_v24 }
0x10a4   : > { %v4708_v49 = vpop.xlane.xlu1 %4707 }
0x10a5   : > { %v4779_v54 = vpack.c.bf16 %v4755_v16, %v4753_v52  ;;  %6123 = vrcp.f32 %v4708_v49  ;;  %v4778_v29 = vpack.c.bf16 %v4754_v51, %v4752_v34  ;;  %v4933_v16 = vld [vmem:[%s4932_s30] sm:$0xff]  ;;  %v4936_v34 = vld [vmem:[%s4932_s30 + $0x30] sm:$0xff] }
0x10a7   : > { %4800 = vmatprep.subr.bf16.mxu0 %v4779_v54  ;;  %v4711_v47 = vpop.xlane.xlu0 %4710  ;;  %v6120_v33 = vpop.eup %6119 }
0x10a8   : > { %6125 = vrcp.f32 %v4711_v47  ;;  %v4757_v60 = vmul.f32 %v6120_v33, %v8898_v13  ;;  %v4756_v6 = vmul.f32 %v6120_v33, %v8896_v12 }
0x10a9   : > { %4801 = vmatpush1.bf16.xpose.msra.mxu0 %v4778_v29 }
0x10aa   : > { %v6122_v30 = vpop.eup %6121 }
0x10ab   : > { %v4759_v5 = vmul.f32 %v6122_v30, %v8906_v44  ;;  %v4758_v32 = vmul.f32 %v6122_v30, %v8900_v41  ;;  %v4934_v30 = vld [vmem:[%s4932_s30 + $0x10] sm:$0xff] }
0x10ac   : > { %v4714_v61 = vpop.xlane.xlu1 %4713 }
0x10ad   : > { %6127 = vrcp.f32 %v4714_v61  ;;  %v4781_v24 = vpack.c.bf16 %v4759_v5, %v4757_v60  ;;  %v4780_v43 = vpack.c.bf16 %v4758_v32, %v4756_v6 }
0x10ae   : > { %v4717_v50 = vpop.xlane.xlu0 %4716 }
0x10af   : > { %4802 = vmatprep.subr.bf16.mxu0 %v4781_v24  ;;  %6129 = vrcp.f32 %v4717_v50  ;;  %v6124_v14 = vpop.eup %6123 }
0x10b0   : > { %v4761_v62 = vmul.f32 %v6124_v14, %v8914_v22  ;;  %v4760_v21 = vmul.f32 %v6124_v14, %v8912_v9 }
0x10b1   : > { %4803 = vmatpush1.bf16.xpose.msra.mxu0 %v4780_v43 }
0x10b2   : > { %v6126_v27 = vpop.eup %6125 }
0x10b3   : > { %v4763_v13 = vmul.f32 %v6126_v27, %v8922_v18  ;;  %v4762_v44 = vmul.f32 %v6126_v27, %v8916_v25 }
0x10b4   : > { %v4720_v59 = vpop.xlane.xlu1 %4719 }
0x10b5   : > { %6131 = vrcp.f32 %v4720_v59  ;;  %v4783_v41 = vpack.c.bf16 %v4763_v13, %v4761_v62  ;;  %v4782_v46 = vpack.c.bf16 %v4762_v44, %v4760_v21 }
0x10b6   : > { %v4723_v0 = vpop.xlane.xlu0 %4722 }
0x10b7   : > { %v6128_v12 = vpop.eup %6127  ;;  %4804 = vmatprep.subr.bf16.mxu0 %v4783_v41  ;;  %6133 = vrcp.f32 %v4723_v0 }
0x10b8   : > { %v4765_v7 = vmul.f32 %v6128_v12, %v8930_v17  ;;  %v4764_v25 = vmul.f32 %v6128_v12, %v8928_v10  ;;  %v4836_v10 = vpop.permute.xlu1 %4835 }
0x10b9   : > { %v6130_v40 = vpop.eup %6129  ;;  %4805 = vmatpush1.bf16.xpose.msra.mxu0 %v4782_v46 }
0x10ba   : > { %v4767_v22 = vmul.f32 %v6130_v40, %v8936_v8  ;;  %v4766_v18 = vmul.f32 %v6130_v40, %v8932_v20  ;;  %v4367_v20 = vld [vmem:[#allocation4 + $0x10] sm:$0xc0]  ;;  %v4838_v39 = vpop.permute.xlu0 %4837 }
0x10bb   : > { %v4790_v35 = vrot.slane %v4367_v20, 6 }
0x10bc   : > { %v4785_v28 = vpack.c.bf16 %v4767_v22, %v4765_v7  ;;  %v4784_v45 = vpack.c.bf16 %v4766_v18, %v4764_v25 }
0x10be   : > { %4806 = vmatprep.subr.bf16.mxu0 %v4785_v28 }
0x10bf   : > { %v6132_v56 = vpop.eup %6131 }
0x10c0   : > { %v4769_v1 = vmul.f32 %v6132_v56, %v8942_v58  ;;  %v4768_v17 = vmul.f32 %v6132_v56, %v8940_v31  ;;  %v4901_v58 = vld [vmem:[%s9083_s4] sm:$0xff]  ;;  %v4902_v31 = vld [vmem:[%s9083_s4 + $0x8] sm:$0xff] }
0x10c1   : > { %v6134_v9 = vpop.eup %6133  ;;  %4807 = vmatpush1.bf16.xpose.msra.mxu0 %v4784_v45  ;;  %4907 = vperm.xlu1 %5363, %v4901_v58  }
0x10c2   : > { %v4771_v36 = vmul.f32 %v6134_v9, %v8948_v4  ;;  %v4770_v53 = vmul.f32 %v6134_v9, %v8944_v26  ;;  %v4903_v26 = vld [vmem:[%s9083_s4 + $0x10] sm:$0xff]  ;;  %v4904_v4 = vld [vmem:[%s9083_s4 + $0x18] sm:$0xff] }
0x10c3   : > { %4917 = vperm.xlu0 %5364, %v4903_v26  }
0x10c4   : > { %v4787_v23 = vpack.c.bf16 %v4771_v36, %v4769_v1  ;;  %v4786_v8 = vpack.c.bf16 %v4770_v53, %v4768_v17 }
0x10c5   : > { %4912 = vperm.xlu1 %5363, %v4902_v31  }
0x10c6   : > { %4808 = vmatprep.subr.bf16.mxu0 %v4787_v23 }
0x10c9   : > { %4809 = vmatpush1.bf16.xpose.msra.mxu0 %v4786_v8  ;;  %4922 = vperm.xlu1 %5363, %v4904_v4  }
0x10d0   : > { %4827 = vmatmul.mubr.bf16.vlgmr.msra.gmra.mrb[140].mxu0 %v4790_v35 }
0x10d1   : > { %5227 = vmatprep.mubr.msk.bf16.mxu0 %vm641_vm2, %v4836_v10 }
0x1140   : > { %v4908_v3 = vpop.permute.xlu1 %4907 }
0x1142   : > { %v4918_v38 = vpop.permute.xlu0 %4917 }
0x1144   : > { %v4913_v55 = vpop.permute.xlu1 %4912 }
0x1148   : > { %v4923_v49 = vpop.permute.xlu1 %4922 }
0x11a3   : > { %v4828_v48 = vpop.f32.mrb[140].mxu0 }
0x11a4   : > { %v4834_v19 = vpack.c.bf16 %v4828_v48, %v4828_v48  ;;  %v4830_v15 = vpop.f32.mrb[141].mxu0 }
0x11a5   : > { %v4831_v11 = vpop.f32.mrb[142].mxu0 }
0x11a6   : > { %v4846_v63 = vsel %vm666_vm1, %v4834_v19, 0  ;;  %5270 = vmatprep.subr.msk.bf16.mxu0 %vm666_vm1, %v4834_v19  ;;  %v4832_v2 = vpop.f32.mrb[143].mxu0 }
0x11a7   : > { %5226 = vmatpush3.bf16.msra.mxu0 %v4846_v63 }
0x11aa   : > { %5228 = vmatmul.mubr.msk.bf16.vlgmr.msra.gmra.mrb[32].mxu0 %vm641_vm2, %v4838_v39 }
0x127d   : > { %v5229_v42 = vpop.f32.mrb[32].mxu0 }
0x127e   : > { %v4927_v57 = vadd.f32 %v5229_v42, %v4918_v38  ;;  %v4882_v52 = vpop.f32.mrb[33].mxu0 }
0x127f   : > { %v4925_v51 = vadd.f32 %v4908_v3, %v4882_v52  ;;  %v5230_v54 = vpop.f32.mrb[34].mxu0 }
0x1280   : > { %v4939_v47 = vadd.f32 %v4935_v37, %v4927_v57  ;;  %v4928_v29 = vadd.f32 %v5230_v54, %v4923_v49  ;;  %v4885_v33 = vpop.f32.mrb[35].mxu0 }
0x1281   : > { %v4937_v60 = vadd.f32 %v4933_v16, %v4925_v51  ;;  %v4926_v5 = vadd.f32 %v4913_v55, %v4885_v33 }
0x1282   : > { %4943 = vst [vmem:[%s6385_s27 + $0x10] sm:$0xff] %v4939_v47  ;;  %v4940_v32 = vadd.f32 %v4936_v34, %v4928_v29 }
0x1283   : > { %4941 = vst [vmem:[%s6385_s27] sm:$0xff] %v4937_v60  ;;  %v4938_v61 = vadd.f32 %v4934_v30, %v4926_v5 }
0x1284   : > { %4944 = vst [vmem:[%s6385_s27 + $0x18] sm:$0xff] %v4940_v32 }
0x1285   : > { %4942 = vst [vmem:[%s6385_s27 + $0x8] sm:$0xff] %v4938_v61 }
0x1286   : > { %6178 = shalt.err (!%p6175_p7)
}
0x1287   : > { %s6179_s27 = scalar_lea.hbm %s9017_s14, 512  ;;  %s6183_s9 = scalar_lea.hbm %s9084_s5, 2048 }
0x1288   : > { %p6180_p9 = scmp.ne.s32.totalorder %s9017_s14, %s6179_s27  ;;  %p6184_p12 = scmp.lt.u32.totalorder %s9017_s14, %s9084_s5 }
0x1289   : > { %p6185_p13 = scmp.lt.u32.totalorder %s6183_s9, %s6179_s27  ;;  %p6187_p1 = scmp.lt.u32.totalorder %s6179_s27, %s9017_s14 }
0x128a   : > { %p6181_p10 = pnand %p6180_p9, %p6355_p3 }
0x128b   : > { %p6186_p0 = por %p6185_p13, %p6184_p12 }
0x128c   : > { %p6182_p11 = pneg %p6181_p10 }
0x128d   : > { %p6188_p2 = por %p6187_p1, %p6186_p0 }
0x128f   : > { %p6189_p4 = pnand %p6188_p2, %p6182_p11 }
0x1291   : > { %6192 = shalt.err (!%p6189_p4)
}
0x1292   : > { %s6271_s17 = smov 128   ;;  %s6272_s13 = smov 256  }
0x1293   : > { %s6273_s12 = smov 8  }
0x1294   : > { %5271 = dma.vmem_to_hbm [thread:$0]  (%p6355_p3), %s9020_s22, 512, %s9017_s14, %s9027_s10, %s6271_s17, %s6272_s13, %s6273_s12  }
0x1295 PF: > { %p5277_p5 = scmp.ge.s32.totalorder %s6259_s25, 2  ;;  %s4975_s15 = sand.u32 1, %s6231_s18  }
0x1296   : > { %s4976_s16 = scalar_lea.sflag [#allocation6], %s4975_s15 }
0x1297   : > { %p5274_p6 = pnand %p5277_p5, %p6364_p8 }
0x1299   : > { %6226 = dma.done.wait (!%p5274_p6), %s4976_s16, 512  }
0x129a   : > { %6228 = vsyncadd (!%p5274_p6), %s4976_s16, 4294966784  ;;  %s18_s25 = sadd.s32 1, %s6259_s25   ;;  %s9330_s18 = smov %s6235_s19 }
0x129b   : > { %p15_p7 = scmp.ge.s32.totalorder %s18_s25, 6   ;;  %s9331_s19 = smov %s6239_s20 }
0x129c   : > { %s9332_s20 = smov %s6373_s11  ;;  %s9333_s21 = smov %s6251_s23 }
0x129d   : > { %s9334_s22 = smov %s6255_s24  ;;  %s9335_s23 = smov %s9338_s28 }
0x129e   : > { %s9336_s24 = smov %s9342_s29  ;;  %17 = sbr.rel (!%p15_p7) target bundleno = 5 (0x5), region = 81 }
0x12a5   :  { %4981 = vsyncpa [#allocation6], 1 }
0x12a6   :  { %4983 = vsyncpa [#allocation6 + $0x1], 1 }

</bundles_post_ra>
